<compile_context>
chip_gen: v5e
topology: v5e:2x2
jax: 0.10.0
libtpu: 0.0.40
codegen_flags: <defaults>
</compile_context>

<pallas_src>
import functools

import jax
import jax.numpy as jnp
from jax import lax
from jax.experimental import pallas as pl
from jax.experimental.pallas import tpu as pltpu

EPS = 1e-5          # nn.BatchNorm2d default eps
NEG_SLOPE = 0.01    # nn.LeakyReLU default negative_slope
EXPANSION = 4       # ResNeXt bottleneck expansion


# ---------------------------------------------------------------------------
# Chip-aware knobs / small helpers
# ---------------------------------------------------------------------------
def _round_up(x, m):
    return ((x + m - 1) // m) * m


@functools.lru_cache(maxsize=None)
def _vmem_limit_bytes():
    # ~96 MiB on v5e/v6e (128 MiB physical), ~48 MiB on v7x (64 MiB physical).
    try:
        cap = int(pltpu.get_tpu_info().vmem_capacity_bytes)
    except Exception:
        cap = 64 * 1024 * 1024
    return int(min(96 * 1024 * 1024, cap * 3 // 4))


@functools.lru_cache(maxsize=None)
def _buffered_one():
    """Single-buffer pipeline mode for grid-constant blocks (version-gated)."""
    try:
        pm = pl.Buffered(1)
        pl.BlockSpec((8, 128), lambda j: (0, 0), pipeline_mode=pm)
        return pm
    except Exception:
        return None


def _pick_tn(cout_p):
    # tn=256 only when it still leaves a >=2-long grid (v7x megacore sharding).
    return 256 if (cout_p % 256 == 0 and cout_p >= 512) else 128


def _pick_tm(m, tn):
    # Cap the f32 matmul sub-tile at 32 vregs (256x128 or 128x256) to avoid
    # spills competing with the ld/st slots on v5e/v6e.
    cap = 256 if tn == 128 else 128
    tm = min(cap, _round_up(m, 8))
    m_pad = _round_up(m, tm)
    return tm, m_pad, m_pad // tm, m_pad - m


# ---------------------------------------------------------------------------
# Kernel bodies
# ---------------------------------------------------------------------------
def _bn_norm_store(y_ref, o_ref, g_ref, b_ref, res_ref, s,
                   *, apply_act, tm, n_sub, m_valid, n_pad):
    """Two-pass BN (given per-channel sum `s`), [+residual], [LeakyReLU], store."""
    tn = o_ref.shape[1]
    inv_m = 1.0 / float(m_valid)
    mean = s * inv_m

    def var_body(i, ss):
        r = pl.multiple_of(i * tm, tm)
        d = y_ref[pl.ds(r, tm), :] - mean
        return ss + jnp.sum(d * d, axis=0, keepdims=True)

    ss = lax.fori_loop(0, n_sub, var_body,
                       jnp.zeros((1, tn), jnp.float32), unroll=n_sub <= 8)
    if n_pad:
        # zero-padded rows contributed exactly (0 - mean)^2 each: remove them.
        ss = ss - float(n_pad) * mean * mean
    var = jnp.maximum(ss * inv_m, 0.0)
    scale = lax.rsqrt(var + EPS) * g_ref[...]
    shift = b_ref[...] - mean * scale

    def out_body(i, c):
        r = pl.multiple_of(i * tm, tm)
        y = y_ref[pl.ds(r, tm), :] * scale + shift
        if res_ref is not None:
            y = y + res_ref[pl.ds(r, tm), :].astype(jnp.float32)
        if apply_act:
            y = jnp.where(y > 0, y, NEG_SLOPE * y)
        o_ref[pl.ds(r, tm), :] = y.astype(o_ref.dtype)
        return c

    lax.fori_loop(0, n_sub, out_body, 0, unroll=n_sub <= 8)


def _matmul_bn_kernel(x_ref, w_ref, g_ref, b_ref, *rest,
                      apply_act, has_residual, tm, n_sub, m_valid, n_pad):
    """1x1 conv tile: Y = X @ W (bf16 in, f32 acc into VMEM scratch), BN(batch
    stats), [+residual], [LeakyReLU]; only the final bf16 result hits HBM."""
    if has_residual:
        res_ref, o_ref, y_ref = rest
    else:
        res_ref = None
        o_ref, y_ref = rest
    tn = o_ref.shape[1]

    def mm_body(i, s):
        r = pl.multiple_of(i * tm, tm)
        y = jnp.dot(x_ref[pl.ds(r, tm), :], w_ref[...],
                    preferred_element_type=jnp.float32)
        y_ref[pl.ds(r, tm), :] = y
        return s + jnp.sum(y, axis=0, keepdims=True)

    s = lax.fori_loop(0, n_sub, mm_body,
                      jnp.zeros((1, tn), jnp.float32), unroll=n_sub <= 8)
    _bn_norm_store(y_ref, o_ref, g_ref, b_ref, res_ref, s,
                   apply_act=apply_act, tm=tm, n_sub=n_sub,
                   m_valid=m_valid, n_pad=n_pad)


def _grouped_conv_bn_kernel(*refs, tm, n_sub, m_valid, n_pad):
    """Grouped 3x3 conv tile: 9 tap slabs x per-tile block-diagonal weight,
    accumulated in f32, then BN(batch stats) + LeakyReLU, bf16 store."""
    x_refs = refs[:9]
    w_ref, g_ref, b_ref, o_ref, y_ref = refs[9:]
    tn = o_ref.shape[1]

    def mm_body(i, s):
        r = pl.multiple_of(i * tm, tm)
        y = jnp.dot(x_refs[0][pl.ds(r, tm), :], w_ref[pl.ds(0, tn), :],
                    preferred_element_type=jnp.float32)
        for t in range(1, 9):
            y = y + jnp.dot(x_refs[t][pl.ds(r, tm), :],
                            w_ref[pl.ds(t * tn, tn), :],
                            preferred_element_type=jnp.float32)
        y_ref[pl.ds(r, tm), :] = y
        return s + jnp.sum(y, axis=0, keepdims=True)

    s = lax.fori_loop(0, n_sub, mm_body,
                      jnp.zeros((1, tn), jnp.float32), unroll=n_sub <= 8)
    _bn_norm_store(y_ref, o_ref, g_ref, b_ref, None, s, apply_act=True,
                   tm=tm, n_sub=n_sub, m_valid=m_valid, n_pad=n_pad)


# ---------------------------------------------------------------------------
# Pallas-call wrappers
# ---------------------------------------------------------------------------
def matmul_bn(x, w_t, gamma, beta, *, residual=None, apply_act=True,
              out_dtype=jnp.bfloat16):
    """x: (M, K) bf16.  w_t: (K, Cout) bf16, pre-transposed.  gamma/beta:
    (1, Cout) f32.  residual: (M, Cout) bf16 or None."""
    M, K = x.shape
    cout = w_t.shape[1]
    tn = _pick_tn(cout)
    tm, m_pad, n_sub, n_pad = _pick_tm(M, tn)
    if n_pad:
        x = jnp.pad(x, ((0, n_pad), (0, 0)))
        if residual is not None:
            residual = jnp.pad(residual, ((0, n_pad), (0, 0)))

    pm = _buffered_one()
    if pm is not None:                       # X is grid-constant: single-buffer
        x_spec = pl.BlockSpec((m_pad, K), lambda j: (0, 0), pipeline_mode=pm)
    else:
        x_spec = pl.BlockSpec((m_pad, K), lambda j: (0, 0))

    in_specs = [x_spec,
                pl.BlockSpec((K, tn), lambda j: (0, j)),
                pl.BlockSpec((1, tn), lambda j: (0, j)),
                pl.BlockSpec((1, tn), lambda j: (0, j))]
    args = [x, w_t, gamma, beta]
    if residual is not None:
        in_specs.append(pl.BlockSpec((m_pad, tn), lambda j: (0, j)))
        args.append(residual)

    kernel = functools.partial(_matmul_bn_kernel, apply_act=apply_act,
                               has_residual=residual is not None,
                               tm=tm, n_sub=n_sub, m_valid=M, n_pad=n_pad)
    out = pl.pallas_call(
        kernel,
        out_shape=jax.ShapeDtypeStruct((m_pad, cout), out_dtype),
        grid=(cout // tn,),
        in_specs=in_specs,
        out_specs=pl.BlockSpec((m_pad, tn), lambda j: (0, j)),
        scratch_shapes=[pltpu.VMEM((m_pad, tn), jnp.float32)],
        compiler_params=pltpu.CompilerParams(
            dimension_semantics=("parallel",),
            vmem_limit_bytes=_vmem_limit_bytes()),
    )(*args)
    return out[:M] if n_pad else out


def grouped_conv3x3_bn_act(x, w_tiles, gamma, beta, *, stride,
                           out_dtype=jnp.bfloat16):
    """x: (N,H,W,C) bf16 (group-contiguous channels).  w_tiles:
    (n_tiles, 9*tn, tn) bf16 per-output-tile block-diagonal weights."""
    N, H, W_, C = x.shape
    n_tiles, ktile, tn = w_tiles.shape
    assert ktile == 9 * tn and n_tiles * tn == C
    Ho = (H + 2 - 3) // stride + 1
    Wo = (W_ + 2 - 3) // stride + 1
    M = N * Ho * Wo
    tm, m_pad, n_sub, n_pad = _pick_tm(M, tn)

    # 9 strided window-tap slabs (bf16); no (M, 9*C) im2col stack in HBM.
    xp = jnp.pad(x, ((0, 0), (1, 1), (1, 1), (0, 0)))
    slabs = []
    for i in range(3):
        for j in range(3):
            s = lax.slice(
                xp, (0, i, j, 0),
                (N, i + stride * (Ho - 1) + 1, j + stride * (Wo - 1) + 1, C),
                (1, stride, stride, 1)).reshape(M, C)
            if n_pad:
                s = jnp.pad(s, ((0, n_pad), (0, 0)))
            slabs.append(s)

    in_specs = ([pl.BlockSpec((m_pad, tn), lambda j: (0, j)) for _ in range(9)]
                + [pl.BlockSpec((None, 9 * tn, tn), lambda j: (j, 0, 0)),
                   pl.BlockSpec((1, tn), lambda j: (0, j)),
                   pl.BlockSpec((1, tn), lambda j: (0, j))])
    kernel = functools.partial(_grouped_conv_bn_kernel,
                               tm=tm, n_sub=n_sub, m_valid=M, n_pad=n_pad)
    out = pl.pallas_call(
        kernel,
        out_shape=jax.ShapeDtypeStruct((m_pad, C), out_dtype),
        grid=(n_tiles,),
        in_specs=in_specs,
        out_specs=pl.BlockSpec((m_pad, tn), lambda j: (0, j)),
        scratch_shapes=[pltpu.VMEM((m_pad, tn), jnp.float32)],
        compiler_params=pltpu.CompilerParams(
            dimension_semantics=("parallel",),
            vmem_limit_bytes=_vmem_limit_bytes()),
    )(*slabs, w_tiles, gamma, beta)
    out = out[:M] if n_pad else out
    return out.reshape(N, Ho, Wo, C)


# ---------------------------------------------------------------------------
# Parameter prep (done ONCE, outside the forward pass)
# ---------------------------------------------------------------------------
def _prep_1x1(w, g, b):
    cout, cin = w.shape[0], w.shape[1]
    assert cout % 128 == 0, "channel counts must be multiples of 128"
    w_t = w.reshape(cout, cin).T.astype(jnp.bfloat16)            # (K, Cout)
    return (w_t,
            g.reshape(1, cout).astype(jnp.float32),
            b.reshape(1, cout).astype(jnp.float32))


def _prep_grouped_weight(w, groups, tn):
    """torch layout (Cout, Cin/groups, 3, 3) -> per-output-tile block-diagonal
    (n_tiles, 9*tn, tn) bf16, tap-major K within each tile."""
    cout, cg_in, kh, kw = w.shape
    cg_out = cout // groups
    assert cg_in == cg_out and kh == 3 and kw == 3
    assert cout % tn == 0 and tn % cg_out == 0
    gpt = tn // cg_out                         # groups per output tile
    n_tiles = cout // tn
    wt = w.reshape(groups, cg_out, cg_in, 9)   # [group, o, i, k]
    wt = wt.transpose(0, 3, 2, 1)              # [group, k, i, o]
    wt = wt.reshape(n_tiles, gpt, 9, cg_in, cg_out)
    eye = jnp.eye(gpt, dtype=wt.dtype)
    blk = jnp.einsum('ngkio,gh->nkgiho', wt, eye)   # block-diag within tile
    return blk.reshape(n_tiles, 9 * tn, tn).astype(jnp.bfloat16)


def make_raw_params(key, in_channels, out_channels, stride,
                    cardinality=32, base_width=4):
    """Deterministic synthetic torch-layout parameters for one bottleneck."""
    D = (out_channels * base_width) // 64
    width = D * cardinality
    out_ch = out_channels * EXPANSION
    keys = jax.random.split(key, 8)

    def conv_w(k, cout, cin, kh, kw):
        fan_in = cin * kh * kw
        return jax.random.normal(k, (cout, cin, kh, kw), jnp.float32) \
            * jnp.sqrt(2.0 / fan_in)

    def bn_p(k, c):
        k1, k2 = jax.random.split(k)
        return (1.0 + 0.1 * jax.random.normal(k1, (c,), jnp.float32),
                0.05 * jax.random.normal(k2, (c,), jnp.float32))

    raw = {'stride': stride, 'cardinality': cardinality,
           'width': width, 'out_ch': out_ch}
    raw['w1'] = conv_w(keys[0], width, in_channels, 1, 1)
    raw['g1'], raw['b1'] = bn_p(keys[1], width)
    raw['w2'] = conv_w(keys[2], width, width // cardinality, 3, 3)
    raw['g2'], raw['b2'] = bn_p(keys[3], width)
    raw['w3'] = conv_w(keys[4], out_ch, width, 1, 1)
    raw['g3'], raw['b3'] = bn_p(keys[5], out_ch)
    if stride != 1 or in_channels != out_ch:
        raw['ds_w'] = conv_w(keys[6], out_ch, in_channels, 1, 1)
        raw['ds_g'], raw['ds_b'] = bn_p(keys[7], out_ch)
    else:
        raw['ds_w'] = None
    return raw


def prepare_params(raw):
    """Convert torch-layout params into kernel-ready (bf16, transposed,
    per-tile block-diagonal) layouts -- hoisted out of the forward pass."""
    width, out_ch = raw['width'], raw['out_ch']
    assert width % 128 == 0 and out_ch % 128 == 0
    p = {'stride': raw['stride']}
    p['w1_t'], p['g1'], p['b1'] = _prep_1x1(raw['w1'], raw['g1'], raw['b1'])
    tn2 = _pick_tn(width)
    p['w2_tiles'] = _prep_grouped_weight(raw['w2'], raw['cardinality'], tn2)
    p['g2'] = raw['g2'].reshape(1, width).astype(jnp.float32)
    p['b2'] = raw['b2'].reshape(1, width).astype(jnp.float32)
    p['w3_t'], p['g3'], p['b3'] = _prep_1x1(raw['w3'], raw['g3'], raw['b3'])
    if raw['ds_w'] is not None:
        p['ds_w_t'], p['ds_g'], p['ds_b'] = _prep_1x1(
            raw['ds_w'], raw['ds_g'], raw['ds_b'])
    else:
        p['ds_w_t'] = None
    return p


# ---------------------------------------------------------------------------
# Forward pass of one ResNeXtBottleneck2D block
# ---------------------------------------------------------------------------
def resnext_bottleneck_forward(p, x_nchw):
    x = jnp.transpose(x_nchw, (0, 2, 3, 1)).astype(jnp.bfloat16)   # NHWC bf16
    N, H, W_, cin = x.shape
    s = p['stride']
    width = p['w1_t'].shape[1]
    out_ch = p['w3_t'].shape[1]

    # conv1 (1x1) + bn1 + LeakyReLU
    out = matmul_bn(x.reshape(N * H * W_, cin), p['w1_t'], p['g1'], p['b1'],
                    apply_act=True)
    out = out.reshape(N, H, W_, width)

    # conv2 (grouped 3x3, stride) + bn2 + LeakyReLU
    out = grouped_conv3x3_bn_act(out, p['w2_tiles'], p['g2'], p['b2'], stride=s)
    N2, Ho, Wo, _ = out.shape
    mo = N2 * Ho * Wo

    # skip path: downsample (1x1 stride conv + BN) or identity, kept in bf16
    if p['ds_w_t'] is not None:
        xs = x[:, ::s, ::s, :] if s > 1 else x
        residual = matmul_bn(xs.reshape(mo, cin), p['ds_w_t'],
                             p['ds_g'], p['ds_b'], apply_act=False)
    else:
        residual = x.reshape(mo, cin)

    # conv3 (1x1) + bn3 + residual + LeakyReLU (final output in f32)
    out = matmul_bn(out.reshape(mo, width), p['w3_t'], p['g3'], p['b3'],
                    residual=residual, apply_act=True, out_dtype=jnp.float32)
    out = out.reshape(N2, Ho, Wo, out_ch)
    return jnp.transpose(out, (0, 3, 1, 2))                        # back to NCHW


# ---------------------------------------------------------------------------
# Pure-JAX (XLA conv) reference with matched bf16 quantization points
# ---------------------------------------------------------------------------
def ref_forward(raw, x_nchw):
    x = jnp.transpose(x_nchw, (0, 2, 3, 1)).astype(jnp.bfloat16) \
        .astype(jnp.float32)

    def conv(x, w, stride, pad, groups=1):
        return lax.conv_general_dilated(
            x.astype(jnp.bfloat16),
            jnp.transpose(w, (2, 3, 1, 0)).astype(jnp.bfloat16),   # HWIO
            window_strides=(stride, stride),
            padding=[(pad, pad), (pad, pad)],
            dimension_numbers=('NHWC', 'HWIO', 'NHWC'),
            feature_group_count=groups,
            preferred_element_type=jnp.float32)

    def bn(y, g, b):
        mean = jnp.mean(y, axis=(0, 1, 2), keepdims=True)
        var = jnp.mean((y - mean) ** 2, axis=(0, 1, 2), keepdims=True)
        return (y - mean) * lax.rsqrt(var + EPS) * g + b

    def leaky(y):
        return jnp.where(y > 0, y, NEG_SLOPE * y)

    def q(y):  # match the kernel's bf16 intermediate writebacks
        return y.astype(jnp.bfloat16).astype(jnp.float32)

    s = raw['stride']
    out = q(leaky(bn(conv(x, raw['w1'], 1, 0), raw['g1'], raw['b1'])))
    out = q(leaky(bn(conv(out, raw['w2'], s, 1, groups=raw['cardinality']),
                     raw['g2'], raw['b2'])))
    if raw['ds_w'] is not None:
        residual = q(bn(conv(x, raw['ds_w'], s, 0), raw['ds_g'], raw['ds_b']))
    else:
        residual = x
    out = leaky(bn(conv(out, raw['w3'], 1, 0), raw['g3'], raw['b3']) + residual)
    return jnp.transpose(out, (0, 3, 1, 2))


# ---------------------------------------------------------------------------
if __name__ == "__main__":
    key = jax.random.PRNGKey(0)
    k1, k2, k3, k4 = jax.random.split(key, 4)
    cardinality, base_width = 32, 4

    # Case 1: stride-2 block with a (1x1 conv + BN) downsample on the skip path.
    raw1 = make_raw_params(k1, in_channels=64, out_channels=64, stride=2,
                           cardinality=cardinality, base_width=base_width)
    p1 = prepare_params(raw1)
    x1 = jax.random.normal(k2, (2, 64, 16, 16), jnp.float32)
    out1 = jax.block_until_ready(
        jax.jit(lambda x: resnext_bottleneck_forward(p1, x))(x1))
    assert out1.shape == (2, 256, 8, 8), out1.shape
    ref1 = jax.block_until_ready(jax.jit(lambda x: ref_forward(raw1, x))(x1))
    err1 = float(jnp.max(jnp.abs(out1 - ref1)))
    assert err1 < 4e-2, f"case1 max abs err {err1}"

    # Case 2: stride-1 identity-skip block (in_channels == out_channels * 4).
    raw2 = make_raw_params(k3, in_channels=256, out_channels=64, stride=1,
                           cardinality=cardinality, base_width=base_width)
    p2 = prepare_params(raw2)
    x2 = jax.random.normal(k4, (2, 256, 8, 8), jnp.float32)
    out2 = jax.block_until_ready(
        jax.jit(lambda x: resnext_bottleneck_forward(p2, x))(x2))
    assert out2.shape == (2, 256, 8, 8), out2.shape
    ref2 = jax.block_until_ready(jax.jit(lambda x: ref_forward(raw2, x))(x2))
    err2 = float(jnp.max(jnp.abs(out2 - ref2)))
    assert err2 < 4e-2, f"case2 max abs err {err2}"

    print("KERNEL_OK")
</pallas_src>

<mosaic_0001>
module attributes {stable_mosaic.version = 11 : i64} {
  func.func @_matmul_bn_kernel(%arg0: i32, %arg1: memref<512x64xbf16, #tpu.memory_space<vmem>>, %arg2: memref<64x128xbf16, #tpu.memory_space<vmem>>, %arg3: memref<1x128xf32, #tpu.memory_space<vmem>>, %arg4: memref<1x128xf32, #tpu.memory_space<vmem>>, %arg5: memref<512x128xbf16, #tpu.memory_space<vmem>>, %arg6: memref<512x128xf32, #tpu.memory_space<vmem>>) attributes {dimension_semantics = [#tpu.dimension_semantics<parallel>], iteration_bounds = array<i64: 1>, scalar_prefetch = 0 : i64, scratch_operands = 1 : i64, tpu.core_type = #tpu.core_type<tc>, window_params = [{pipeline_mode = #tpu.pipeline_mode<synchronous>, transform_indices = @transform_0, window_bounds = array<i64: 512, 64>}, {transform_indices = @transform_1, window_bounds = array<i64: 64, 128>}, {transform_indices = @transform_2, window_bounds = array<i64: 1, 128>}, {transform_indices = @transform_3, window_bounds = array<i64: 1, 128>}, {transform_indices = @transform_4, window_bounds = array<i64: 512, 128>}]} {
    %cst = arith.constant 0.000000e+00 : f32
    %0 = vector.broadcast %cst : f32 to vector<1x128xf32>
    %c0_i32 = arith.constant 0 : i32
    %c256_i32 = arith.constant 256 : i32
    %1 = arith.muli %c0_i32, %c256_i32 : i32
    %2 = tpu.assume_multiple %1, 256 : i32
    %3 = arith.index_cast %2 : i32 to index
    %c0 = arith.constant 0 : index
    %4 = vector.load %arg1[%3, %c0] : memref<512x64xbf16, #tpu.memory_space<vmem>>, vector<256x64xbf16>
    %c0_0 = arith.constant 0 : index
    %c0_1 = arith.constant 0 : index
    %5 = vector.load %arg2[%c0_0, %c0_1] : memref<64x128xbf16, #tpu.memory_space<vmem>>, vector<64x128xbf16>
    %cst_2 = arith.constant dense<0.000000e+00> : vector<256x128xf32>
    %6 = tpu.matmul %4, %5, %cst_2 {dimension_numbers = #tpu.dot_dimension_numbers<[1], [0], [0], [1], [0, 0, 1, 1], [], []>} : vector<256x64xbf16>, vector<64x128xbf16>, vector<256x128xf32> -> vector<256x128xf32>
    %7 = arith.index_cast %2 : i32 to index
    %c0_3 = arith.constant 0 : index
    %8 = vector.load %arg6[%7, %c0_3] : memref<512x128xf32, #tpu.memory_space<vmem>>, vector<256x128xf32>
    tpu.vector_store %arg6[%7, %c0_3], %6 {strides = array<i32>} : memref<512x128xf32, #tpu.memory_space<vmem>>, vector<256x128xf32>,
    %cst_4 = arith.constant dense<0.000000e+00> : vector<128xf32>
    %9 = vector.multi_reduction <add>, %6, %cst_4 [0] : vector<256x128xf32> to vector<128xf32>
    %10 = vector.shape_cast %9 : vector<128xf32> to vector<1x128xf32>
    %11 = arith.addf %0, %10 : vector<1x128xf32>
    %c1_i32 = arith.constant 1 : i32
    %c256_i32_5 = arith.constant 256 : i32
    %12 = arith.muli %c1_i32, %c256_i32_5 : i32
    %13 = tpu.assume_multiple %12, 256 : i32
    %14 = arith.index_cast %13 : i32 to index
    %c0_6 = arith.constant 0 : index
    %15 = vector.load %arg1[%14, %c0_6] : memref<512x64xbf16, #tpu.memory_space<vmem>>, vector<256x64xbf16>
    %c0_7 = arith.constant 0 : index
    %c0_8 = arith.constant 0 : index
    %16 = vector.load %arg2[%c0_7, %c0_8] : memref<64x128xbf16, #tpu.memory_space<vmem>>, vector<64x128xbf16>
    %cst_9 = arith.constant dense<0.000000e+00> : vector<256x128xf32>
    %17 = tpu.matmul %15, %16, %cst_9 {dimension_numbers = #tpu.dot_dimension_numbers<[1], [0], [0], [1], [0, 0, 1, 1], [], []>} : vector<256x64xbf16>, vector<64x128xbf16>, vector<256x128xf32> -> vector<256x128xf32>
    %18 = arith.index_cast %13 : i32 to index
    %c0_10 = arith.constant 0 : index
    %19 = vector.load %arg6[%18, %c0_10] : memref<512x128xf32, #tpu.memory_space<vmem>>, vector<256x128xf32>
    tpu.vector_store %arg6[%18, %c0_10], %17 {strides = array<i32>} : memref<512x128xf32, #tpu.memory_space<vmem>>, vector<256x128xf32>,
    %cst_11 = arith.constant dense<0.000000e+00> : vector<128xf32>
    %20 = vector.multi_reduction <add>, %17, %cst_11 [0] : vector<256x128xf32> to vector<128xf32>
    %21 = vector.shape_cast %20 : vector<128xf32> to vector<1x128xf32>
    %22 = arith.addf %11, %21 : vector<1x128xf32>
    %c2_i32 = arith.constant 2 : i32
    %cst_12 = arith.constant 0.001953125 : f32
    %23 = vector.broadcast %cst_12 : f32 to vector<1x128xf32>
    %24 = arith.mulf %22, %23 : vector<1x128xf32>
    %cst_13 = arith.constant 0.000000e+00 : f32
    %25 = vector.broadcast %cst_13 : f32 to vector<1x128xf32>
    %c0_i32_14 = arith.constant 0 : i32
    %c256_i32_15 = arith.constant 256 : i32
    %26 = arith.muli %c0_i32_14, %c256_i32_15 : i32
    %27 = tpu.assume_multiple %26, 256 : i32
    %28 = arith.index_cast %27 : i32 to index
    %c0_16 = arith.constant 0 : index
    %29 = vector.load %arg6[%28, %c0_16] : memref<512x128xf32, #tpu.memory_space<vmem>>, vector<256x128xf32>
    %30 = vector.broadcast %24 : vector<1x128xf32> to vector<256x128xf32>
    %31 = arith.subf %29, %30 : vector<256x128xf32>
    %32 = arith.mulf %31, %31 : vector<256x128xf32>
    %cst_17 = arith.constant dense<0.000000e+00> : vector<128xf32>
    %33 = vector.multi_reduction <add>, %32, %cst_17 [0] : vector<256x128xf32> to vector<128xf32>
    %34 = vector.shape_cast %33 : vector<128xf32> to vector<1x128xf32>
    %35 = arith.addf %25, %34 : vector<1x128xf32>
    %c1_i32_18 = arith.constant 1 : i32
    %c256_i32_19 = arith.constant 256 : i32
    %36 = arith.muli %c1_i32_18, %c256_i32_19 : i32
    %37 = tpu.assume_multiple %36, 256 : i32
    %38 = arith.index_cast %37 : i32 to index
    %c0_20 = arith.constant 0 : index
    %39 = vector.load %arg6[%38, %c0_20] : memref<512x128xf32, #tpu.memory_space<vmem>>, vector<256x128xf32>
    %40 = vector.broadcast %24 : vector<1x128xf32> to vector<256x128xf32>
    %41 = arith.subf %39, %40 : vector<256x128xf32>
    %42 = arith.mulf %41, %41 : vector<256x128xf32>
    %cst_21 = arith.constant dense<0.000000e+00> : vector<128xf32>
    %43 = vector.multi_reduction <add>, %42, %cst_21 [0] : vector<256x128xf32> to vector<128xf32>
    %44 = vector.shape_cast %43 : vector<128xf32> to vector<1x128xf32>
    %45 = arith.addf %35, %44 : vector<1x128xf32>
    %c2_i32_22 = arith.constant 2 : i32
    %cst_23 = arith.constant 0.001953125 : f32
    %46 = vector.broadcast %cst_23 : f32 to vector<1x128xf32>
    %47 = arith.mulf %45, %46 : vector<1x128xf32>
    %cst_24 = arith.constant 0.000000e+00 : f32
    %48 = vector.broadcast %cst_24 : f32 to vector<1x128xf32>
    %49 = arith.maximumf %47, %48 : vector<1x128xf32>
    %cst_25 = arith.constant 9.99999974E-6 : f32
    %50 = vector.broadcast %cst_25 : f32 to vector<1x128xf32>
    %51 = arith.addf %49, %50 : vector<1x128xf32>
    %52 = math.rsqrt %51 : vector<1x128xf32>
    %c0_26 = arith.constant 0 : index
    %c0_27 = arith.constant 0 : index
    %53 = vector.load %arg3[%c0_26, %c0_27] : memref<1x128xf32, #tpu.memory_space<vmem>>, vector<1x128xf32>
    %54 = arith.mulf %52, %53 : vector<1x128xf32>
    %c0_28 = arith.constant 0 : index
    %c0_29 = arith.constant 0 : index
    %55 = vector.load %arg4[%c0_28, %c0_29] : memref<1x128xf32, #tpu.memory_space<vmem>>, vector<1x128xf32>
    %56 = arith.mulf %24, %54 : vector<1x128xf32>
    %57 = arith.subf %55, %56 : vector<1x128xf32>
    %c0_i32_30 = arith.constant 0 : i32
    %c256_i32_31 = arith.constant 256 : i32
    %58 = arith.muli %c0_i32_30, %c256_i32_31 : i32
    %59 = tpu.assume_multiple %58, 256 : i32
    %60 = arith.index_cast %59 : i32 to index
    %c0_32 = arith.constant 0 : index
    %61 = vector.load %arg6[%60, %c0_32] : memref<512x128xf32, #tpu.memory_space<vmem>>, vector<256x128xf32>
    %62 = vector.broadcast %54 : vector<1x128xf32> to vector<256x128xf32>
    %63 = arith.mulf %61, %62 : vector<256x128xf32>
    %64 = vector.broadcast %57 : vector<1x128xf32> to vector<256x128xf32>
    %65 = arith.addf %63, %64 : vector<256x128xf32>
    %cst_33 = arith.constant 0.000000e+00 : f32
    %66 = vector.broadcast %cst_33 : f32 to vector<256x128xf32>
    %67 = arith.cmpf ogt, %65, %66 : vector<256x128xf32>
    %cst_34 = arith.constant 0.00999999977 : f32
    %68 = vector.broadcast %cst_34 : f32 to vector<256x128xf32>
    %69 = arith.mulf %68, %65 : vector<256x128xf32>
    %70 = arith.select %67, %65, %69 : vector<256x128xi1>, vector<256x128xf32>
    %71 = arith.truncf %70 : vector<256x128xf32> to vector<256x128xbf16>
    %72 = arith.index_cast %59 : i32 to index
    %c0_35 = arith.constant 0 : index
    %73 = vector.load %arg5[%72, %c0_35] : memref<512x128xbf16, #tpu.memory_space<vmem>>, vector<256x128xbf16>
    tpu.vector_store %arg5[%72, %c0_35], %71 {strides = array<i32>} : memref<512x128xbf16, #tpu.memory_space<vmem>>, vector<256x128xbf16>,
    %c1_i32_36 = arith.constant 1 : i32
    %c256_i32_37 = arith.constant 256 : i32
    %74 = arith.muli %c1_i32_36, %c256_i32_37 : i32
    %75 = tpu.assume_multiple %74, 256 : i32
    %76 = arith.index_cast %75 : i32 to index
    %c0_38 = arith.constant 0 : index
    %77 = vector.load %arg6[%76, %c0_38] : memref<512x128xf32, #tpu.memory_space<vmem>>, vector<256x128xf32>
    %78 = vector.broadcast %54 : vector<1x128xf32> to vector<256x128xf32>
    %79 = arith.mulf %77, %78 : vector<256x128xf32>
    %80 = vector.broadcast %57 : vector<1x128xf32> to vector<256x128xf32>
    %81 = arith.addf %79, %80 : vector<256x128xf32>
    %cst_39 = arith.constant 0.000000e+00 : f32
    %82 = vector.broadcast %cst_39 : f32 to vector<256x128xf32>
    %83 = arith.cmpf ogt, %81, %82 : vector<256x128xf32>
    %cst_40 = arith.constant 0.00999999977 : f32
    %84 = vector.broadcast %cst_40 : f32 to vector<256x128xf32>
    %85 = arith.mulf %84, %81 : vector<256x128xf32>
    %86 = arith.select %83, %81, %85 : vector<256x128xi1>, vector<256x128xf32>
    %87 = arith.truncf %86 : vector<256x128xf32> to vector<256x128xbf16>
    %88 = arith.index_cast %75 : i32 to index
    %c0_41 = arith.constant 0 : index
    %89 = vector.load %arg5[%88, %c0_41] : memref<512x128xbf16, #tpu.memory_space<vmem>>, vector<256x128xbf16>
    tpu.vector_store %arg5[%88, %c0_41], %87 {strides = array<i32>} : memref<512x128xbf16, #tpu.memory_space<vmem>>, vector<256x128xbf16>,
    %c2_i32_42 = arith.constant 2 : i32
    return
  }
  func.func @transform_0(%arg0: i32) -> (i32, i32) {
    %c0_i32 = arith.constant 0 : i32
    %c0_i32_0 = arith.constant 0 : i32
    %c0_i32_1 = arith.constant 0 : i32
    return %c0_i32, %c0_i32_0 : i32, i32
  }
  func.func @transform_1(%arg0: i32) -> (i32, i32) {
    %c0_i32 = arith.constant 0 : i32
    %c0_i32_0 = arith.constant 0 : i32
    return %c0_i32, %arg0 : i32, i32
  }
  func.func @transform_2(%arg0: i32) -> (i32, i32) {
    %c0_i32 = arith.constant 0 : i32
    %c0_i32_0 = arith.constant 0 : i32
    return %c0_i32, %arg0 : i32, i32
  }
  func.func @transform_3(%arg0: i32) -> (i32, i32) {
    %c0_i32 = arith.constant 0 : i32
    %c0_i32_0 = arith.constant 0 : i32
    return %c0_i32, %arg0 : i32, i32
  }
  func.func @transform_4(%arg0: i32) -> (i32, i32) {
    %c0_i32 = arith.constant 0 : i32
    %c0_i32_0 = arith.constant 0 : i32
    return %c0_i32, %arg0 : i32, i32
  }
}

module attributes {stable_mosaic.version = 11 : i64} {
  func.func @_grouped_conv_bn_kernel(%arg0: i32, %arg1: memref<128x128xbf16, #tpu.memory_space<vmem>>, %arg2: memref<128x128xbf16, #tpu.memory_space<vmem>>, %arg3: memref<128x128xbf16, #tpu.memory_space<vmem>>, %arg4: memref<128x128xbf16, #tpu.memory_space<vmem>>, %arg5: memref<128x128xbf16, #tpu.memory_space<vmem>>, %arg6: memref<128x128xbf16, #tpu.memory_space<vmem>>, %arg7: memref<128x128xbf16, #tpu.memory_space<vmem>>, %arg8: memref<128x128xbf16, #tpu.memory_space<vmem>>, %arg9: memref<128x128xbf16, #tpu.memory_space<vmem>>, %arg10: memref<1x1152x128xbf16, #tpu.memory_space<vmem>>, %arg11: memref<1x128xf32, #tpu.memory_space<vmem>>, %arg12: memref<1x128xf32, #tpu.memory_space<vmem>>, %arg13: memref<128x128xbf16, #tpu.memory_space<vmem>>, %arg14: memref<128x128xf32, #tpu.memory_space<vmem>>) attributes {dimension_semantics = [#tpu.dimension_semantics<parallel>], iteration_bounds = array<i64: 1>, scalar_prefetch = 0 : i64, scratch_operands = 1 : i64, tpu.core_type = #tpu.core_type<tc>, window_params = [{transform_indices = @transform_0, window_bounds = array<i64: 128, 128>}, {transform_indices = @transform_1, window_bounds = array<i64: 128, 128>}, {transform_indices = @transform_2, window_bounds = array<i64: 128, 128>}, {transform_indices = @transform_3, window_bounds = array<i64: 128, 128>}, {transform_indices = @transform_4, window_bounds = array<i64: 128, 128>}, {transform_indices = @transform_5, window_bounds = array<i64: 128, 128>}, {transform_indices = @transform_6, window_bounds = array<i64: 128, 128>}, {transform_indices = @transform_7, window_bounds = array<i64: 128, 128>}, {transform_indices = @transform_8, window_bounds = array<i64: 128, 128>}, {transform_indices = @transform_9, window_bounds = array<i64: 1, 1152, 128>}, {transform_indices = @transform_10, window_bounds = array<i64: 1, 128>}, {transform_indices = @transform_11, window_bounds = array<i64: 1, 128>}, {transform_indices = @transform_12, window_bounds = array<i64: 128, 128>}]} {
    %cst = arith.constant 0.000000e+00 : f32
    %0 = vector.broadcast %cst : f32 to vector<1x128xf32>
    %c0_i32 = arith.constant 0 : i32
    %c128_i32 = arith.constant 128 : i32
    %1 = arith.muli %c0_i32, %c128_i32 : i32
    %2 = tpu.assume_multiple %1, 128 : i32
    %3 = arith.index_cast %2 : i32 to index
    %c0 = arith.constant 0 : index
    %4 = vector.load %arg1[%3, %c0] : memref<128x128xbf16, #tpu.memory_space<vmem>>, vector<128x128xbf16>
    %c0_0 = arith.constant 0 : index
    %c0_1 = arith.constant 0 : index
    %c0_2 = arith.constant 0 : index
    %5 = vector.load %arg10[%c0_0, %c0_1, %c0_2] : memref<1x1152x128xbf16, #tpu.memory_space<vmem>>, vector<1x128x128xbf16>
    %6 = vector.shape_cast %5 : vector<1x128x128xbf16> to vector<128x128xbf16>
    %cst_3 = arith.constant dense<0.000000e+00> : vector<128x128xf32>
    %7 = tpu.matmul %4, %6, %cst_3 {dimension_numbers = #tpu.dot_dimension_numbers<[1], [0], [0], [1], [0, 0, 1, 1], [], []>} : vector<128x128xbf16>, vector<128x128xbf16>, vector<128x128xf32> -> vector<128x128xf32>
    %8 = arith.index_cast %2 : i32 to index
    %c0_4 = arith.constant 0 : index
    %9 = vector.load %arg2[%8, %c0_4] : memref<128x128xbf16, #tpu.memory_space<vmem>>, vector<128x128xbf16>
    %c0_5 = arith.constant 0 : index
    %c128 = arith.constant 128 : index
    %c0_6 = arith.constant 0 : index
    %10 = vector.load %arg10[%c0_5, %c128, %c0_6] : memref<1x1152x128xbf16, #tpu.memory_space<vmem>>, vector<1x128x128xbf16>
    %11 = vector.shape_cast %10 : vector<1x128x128xbf16> to vector<128x128xbf16>
    %cst_7 = arith.constant dense<0.000000e+00> : vector<128x128xf32>
    %12 = tpu.matmul %9, %11, %cst_7 {dimension_numbers = #tpu.dot_dimension_numbers<[1], [0], [0], [1], [0, 0, 1, 1], [], []>} : vector<128x128xbf16>, vector<128x128xbf16>, vector<128x128xf32> -> vector<128x128xf32>
    %13 = arith.addf %7, %12 : vector<128x128xf32>
    %14 = arith.index_cast %2 : i32 to index
    %c0_8 = arith.constant 0 : index
    %15 = vector.load %arg3[%14, %c0_8] : memref<128x128xbf16, #tpu.memory_space<vmem>>, vector<128x128xbf16>
    %c0_9 = arith.constant 0 : index
    %c256 = arith.constant 256 : index
    %c0_10 = arith.constant 0 : index
    %16 = vector.load %arg10[%c0_9, %c256, %c0_10] : memref<1x1152x128xbf16, #tpu.memory_space<vmem>>, vector<1x128x128xbf16>
    %17 = vector.shape_cast %16 : vector<1x128x128xbf16> to vector<128x128xbf16>
    %cst_11 = arith.constant dense<0.000000e+00> : vector<128x128xf32>
    %18 = tpu.matmul %15, %17, %cst_11 {dimension_numbers = #tpu.dot_dimension_numbers<[1], [0], [0], [1], [0, 0, 1, 1], [], []>} : vector<128x128xbf16>, vector<128x128xbf16>, vector<128x128xf32> -> vector<128x128xf32>
    %19 = arith.addf %13, %18 : vector<128x128xf32>
    %20 = arith.index_cast %2 : i32 to index
    %c0_12 = arith.constant 0 : index
    %21 = vector.load %arg4[%20, %c0_12] : memref<128x128xbf16, #tpu.memory_space<vmem>>, vector<128x128xbf16>
    %c0_13 = arith.constant 0 : index
    %c384 = arith.constant 384 : index
    %c0_14 = arith.constant 0 : index
    %22 = vector.load %arg10[%c0_13, %c384, %c0_14] : memref<1x1152x128xbf16, #tpu.memory_space<vmem>>, vector<1x128x128xbf16>
    %23 = vector.shape_cast %22 : vector<1x128x128xbf16> to vector<128x128xbf16>
    %cst_15 = arith.constant dense<0.000000e+00> : vector<128x128xf32>
    %24 = tpu.matmul %21, %23, %cst_15 {dimension_numbers = #tpu.dot_dimension_numbers<[1], [0], [0], [1], [0, 0, 1, 1], [], []>} : vector<128x128xbf16>, vector<128x128xbf16>, vector<128x128xf32> -> vector<128x128xf32>
    %25 = arith.addf %19, %24 : vector<128x128xf32>
    %26 = arith.index_cast %2 : i32 to index
    %c0_16 = arith.constant 0 : index
    %27 = vector.load %arg5[%26, %c0_16] : memref<128x128xbf16, #tpu.memory_space<vmem>>, vector<128x128xbf16>
    %c0_17 = arith.constant 0 : index
    %c512 = arith.constant 512 : index
    %c0_18 = arith.constant 0 : index
    %28 = vector.load %arg10[%c0_17, %c512, %c0_18] : memref<1x1152x128xbf16, #tpu.memory_space<vmem>>, vector<1x128x128xbf16>
    %29 = vector.shape_cast %28 : vector<1x128x128xbf16> to vector<128x128xbf16>
    %cst_19 = arith.constant dense<0.000000e+00> : vector<128x128xf32>
    %30 = tpu.matmul %27, %29, %cst_19 {dimension_numbers = #tpu.dot_dimension_numbers<[1], [0], [0], [1], [0, 0, 1, 1], [], []>} : vector<128x128xbf16>, vector<128x128xbf16>, vector<128x128xf32> -> vector<128x128xf32>
    %31 = arith.addf %25, %30 : vector<128x128xf32>
    %32 = arith.index_cast %2 : i32 to index
    %c0_20 = arith.constant 0 : index
    %33 = vector.load %arg6[%32, %c0_20] : memref<128x128xbf16, #tpu.memory_space<vmem>>, vector<128x128xbf16>
    %c0_21 = arith.constant 0 : index
    %c640 = arith.constant 640 : index
    %c0_22 = arith.constant 0 : index
    %34 = vector.load %arg10[%c0_21, %c640, %c0_22] : memref<1x1152x128xbf16, #tpu.memory_space<vmem>>, vector<1x128x128xbf16>
    %35 = vector.shape_cast %34 : vector<1x128x128xbf16> to vector<128x128xbf16>
    %cst_23 = arith.constant dense<0.000000e+00> : vector<128x128xf32>
    %36 = tpu.matmul %33, %35, %cst_23 {dimension_numbers = #tpu.dot_dimension_numbers<[1], [0], [0], [1], [0, 0, 1, 1], [], []>} : vector<128x128xbf16>, vector<128x128xbf16>, vector<128x128xf32> -> vector<128x128xf32>
    %37 = arith.addf %31, %36 : vector<128x128xf32>
    %38 = arith.index_cast %2 : i32 to index
    %c0_24 = arith.constant 0 : index
    %39 = vector.load %arg7[%38, %c0_24] : memref<128x128xbf16, #tpu.memory_space<vmem>>, vector<128x128xbf16>
    %c0_25 = arith.constant 0 : index
    %c768 = arith.constant 768 : index
    %c0_26 = arith.constant 0 : index
    %40 = vector.load %arg10[%c0_25, %c768, %c0_26] : memref<1x1152x128xbf16, #tpu.memory_space<vmem>>, vector<1x128x128xbf16>
    %41 = vector.shape_cast %40 : vector<1x128x128xbf16> to vector<128x128xbf16>
    %cst_27 = arith.constant dense<0.000000e+00> : vector<128x128xf32>
    %42 = tpu.matmul %39, %41, %cst_27 {dimension_numbers = #tpu.dot_dimension_numbers<[1], [0], [0], [1], [0, 0, 1, 1], [], []>} : vector<128x128xbf16>, vector<128x128xbf16>, vector<128x128xf32> -> vector<128x128xf32>
    %43 = arith.addf %37, %42 : vector<128x128xf32>
    %44 = arith.index_cast %2 : i32 to index
    %c0_28 = arith.constant 0 : index
    %45 = vector.load %arg8[%44, %c0_28] : memref<128x128xbf16, #tpu.memory_space<vmem>>, vector<128x128xbf16>
    %c0_29 = arith.constant 0 : index
    %c896 = arith.constant 896 : index
    %c0_30 = arith.constant 0 : index
    %46 = vector.load %arg10[%c0_29, %c896, %c0_30] : memref<1x1152x128xbf16, #tpu.memory_space<vmem>>, vector<1x128x128xbf16>
    %47 = vector.shape_cast %46 : vector<1x128x128xbf16> to vector<128x128xbf16>
    %cst_31 = arith.constant dense<0.000000e+00> : vector<128x128xf32>
    %48 = tpu.matmul %45, %47, %cst_31 {dimension_numbers = #tpu.dot_dimension_numbers<[1], [0], [0], [1], [0, 0, 1, 1], [], []>} : vector<128x128xbf16>, vector<128x128xbf16>, vector<128x128xf32> -> vector<128x128xf32>
    %49 = arith.addf %43, %48 : vector<128x128xf32>
    %50 = arith.index_cast %2 : i32 to index
    %c0_32 = arith.constant 0 : index
    %51 = vector.load %arg9[%50, %c0_32] : memref<128x128xbf16, #tpu.memory_space<vmem>>, vector<128x128xbf16>
    %c0_33 = arith.constant 0 : index
    %c1024 = arith.constant 1024 : index
    %c0_34 = arith.constant 0 : index
    %52 = vector.load %arg10[%c0_33, %c1024, %c0_34] : memref<1x1152x128xbf16, #tpu.memory_space<vmem>>, vector<1x128x128xbf16>
    %53 = vector.shape_cast %52 : vector<1x128x128xbf16> to vector<128x128xbf16>
    %cst_35 = arith.constant dense<0.000000e+00> : vector<128x128xf32>
    %54 = tpu.matmul %51, %53, %cst_35 {dimension_numbers = #tpu.dot_dimension_numbers<[1], [0], [0], [1], [0, 0, 1, 1], [], []>} : vector<128x128xbf16>, vector<128x128xbf16>, vector<128x128xf32> -> vector<128x128xf32>
    %55 = arith.addf %49, %54 : vector<128x128xf32>
    %56 = arith.index_cast %2 : i32 to index
    %c0_36 = arith.constant 0 : index
    %57 = vector.load %arg14[%56, %c0_36] : memref<128x128xf32, #tpu.memory_space<vmem>>, vector<128x128xf32>
    tpu.vector_store %arg14[%56, %c0_36], %55 {strides = array<i32>} : memref<128x128xf32, #tpu.memory_space<vmem>>, vector<128x128xf32>,
    %cst_37 = arith.constant dense<0.000000e+00> : vector<128xf32>
    %58 = vector.multi_reduction <add>, %55, %cst_37 [0] : vector<128x128xf32> to vector<128xf32>
    %59 = vector.shape_cast %58 : vector<128xf32> to vector<1x128xf32>
    %60 = arith.addf %0, %59 : vector<1x128xf32>
    %c1_i32 = arith.constant 1 : i32
    %cst_38 = arith.constant 7.812500e-03 : f32
    %61 = vector.broadcast %cst_38 : f32 to vector<1x128xf32>
    %62 = arith.mulf %60, %61 : vector<1x128xf32>
    %cst_39 = arith.constant 0.000000e+00 : f32
    %63 = vector.broadcast %cst_39 : f32 to vector<1x128xf32>
    %c0_i32_40 = arith.constant 0 : i32
    %c128_i32_41 = arith.constant 128 : i32
    %64 = arith.muli %c0_i32_40, %c128_i32_41 : i32
    %65 = tpu.assume_multiple %64, 128 : i32
    %66 = arith.index_cast %65 : i32 to index
    %c0_42 = arith.constant 0 : index
    %67 = vector.load %arg14[%66, %c0_42] : memref<128x128xf32, #tpu.memory_space<vmem>>, vector<128x128xf32>
    %68 = vector.broadcast %62 : vector<1x128xf32> to vector<128x128xf32>
    %69 = arith.subf %67, %68 : vector<128x128xf32>
    %70 = arith.mulf %69, %69 : vector<128x128xf32>
    %cst_43 = arith.constant dense<0.000000e+00> : vector<128xf32>
    %71 = vector.multi_reduction <add>, %70, %cst_43 [0] : vector<128x128xf32> to vector<128xf32>
    %72 = vector.shape_cast %71 : vector<128xf32> to vector<1x128xf32>
    %73 = arith.addf %63, %72 : vector<1x128xf32>
    %c1_i32_44 = arith.constant 1 : i32
    %cst_45 = arith.constant 7.812500e-03 : f32
    %74 = vector.broadcast %cst_45 : f32 to vector<1x128xf32>
    %75 = arith.mulf %73, %74 : vector<1x128xf32>
    %cst_46 = arith.constant 0.000000e+00 : f32
    %76 = vector.broadcast %cst_46 : f32 to vector<1x128xf32>
    %77 = arith.maximumf %75, %76 : vector<1x128xf32>
    %cst_47 = arith.constant 9.99999974E-6 : f32
    %78 = vector.broadcast %cst_47 : f32 to vector<1x128xf32>
    %79 = arith.addf %77, %78 : vector<1x128xf32>
    %80 = math.rsqrt %79 : vector<1x128xf32>
    %c0_48 = arith.constant 0 : index
    %c0_49 = arith.constant 0 : index
    %81 = vector.load %arg11[%c0_48, %c0_49] : memref<1x128xf32, #tpu.memory_space<vmem>>, vector<1x128xf32>
    %82 = arith.mulf %80, %81 : vector<1x128xf32>
    %c0_50 = arith.constant 0 : index
    %c0_51 = arith.constant 0 : index
    %83 = vector.load %arg12[%c0_50, %c0_51] : memref<1x128xf32, #tpu.memory_space<vmem>>, vector<1x128xf32>
    %84 = arith.mulf %62, %82 : vector<1x128xf32>
    %85 = arith.subf %83, %84 : vector<1x128xf32>
    %c0_i32_52 = arith.constant 0 : i32
    %c128_i32_53 = arith.constant 128 : i32
    %86 = arith.muli %c0_i32_52, %c128_i32_53 : i32
    %87 = tpu.assume_multiple %86, 128 : i32
    %88 = arith.index_cast %87 : i32 to index
    %c0_54 = arith.constant 0 : index
    %89 = vector.load %arg14[%88, %c0_54] : memref<128x128xf32, #tpu.memory_space<vmem>>, vector<128x128xf32>
    %90 = vector.broadcast %82 : vector<1x128xf32> to vector<128x128xf32>
    %91 = arith.mulf %89, %90 : vector<128x128xf32>
    %92 = vector.broadcast %85 : vector<1x128xf32> to vector<128x128xf32>
    %93 = arith.addf %91, %92 : vector<128x128xf32>
    %cst_55 = arith.constant 0.000000e+00 : f32
    %94 = vector.broadcast %cst_55 : f32 to vector<128x128xf32>
    %95 = arith.cmpf ogt, %93, %94 : vector<128x128xf32>
    %cst_56 = arith.constant 0.00999999977 : f32
    %96 = vector.broadcast %cst_56 : f32 to vector<128x128xf32>
    %97 = arith.mulf %96, %93 : vector<128x128xf32>
    %98 = arith.select %95, %93, %97 : vector<128x128xi1>, vector<128x128xf32>
    %99 = arith.truncf %98 : vector<128x128xf32> to vector<128x128xbf16>
    %100 = arith.index_cast %87 : i32 to index
    %c0_57 = arith.constant 0 : index
    %101 = vector.load %arg13[%100, %c0_57] : memref<128x128xbf16, #tpu.memory_space<vmem>>, vector<128x128xbf16>
    tpu.vector_store %arg13[%100, %c0_57], %99 {strides = array<i32>} : memref<128x128xbf16, #tpu.memory_space<vmem>>, vector<128x128xbf16>,
    %c1_i32_58 = arith.constant 1 : i32
    return
  }
  func.func @transform_0(%arg0: i32) -> (i32, i32) {
    %c0_i32 = arith.constant 0 : i32
    %c0_i32_0 = arith.constant 0 : i32
    return %c0_i32, %arg0 : i32, i32
  }
  func.func @transform_1(%arg0: i32) -> (i32, i32) {
    %c0_i32 = arith.constant 0 : i32
    %c0_i32_0 = arith.constant 0 : i32
    return %c0_i32, %arg0 : i32, i32
  }
  func.func @transform_2(%arg0: i32) -> (i32, i32) {
    %c0_i32 = arith.constant 0 : i32
    %c0_i32_0 = arith.constant 0 : i32
    return %c0_i32, %arg0 : i32, i32
  }
  func.func @transform_3(%arg0: i32) -> (i32, i32) {
    %c0_i32 = arith.constant 0 : i32
    %c0_i32_0 = arith.constant 0 : i32
    return %c0_i32, %arg0 : i32, i32
  }
  func.func @transform_4(%arg0: i32) -> (i32, i32) {
    %c0_i32 = arith.constant 0 : i32
    %c0_i32_0 = arith.constant 0 : i32
    return %c0_i32, %arg0 : i32, i32
  }
  func.func @transform_5(%arg0: i32) -> (i32, i32) {
    %c0_i32 = arith.constant 0 : i32
    %c0_i32_0 = arith.constant 0 : i32
    return %c0_i32, %arg0 : i32, i32
  }
  func.func @transform_6(%arg0: i32) -> (i32, i32) {
    %c0_i32 = arith.constant 0 : i32
    %c0_i32_0 = arith.constant 0 : i32
    return %c0_i32, %arg0 : i32, i32
  }
  func.func @transform_7(%arg0: i32) -> (i32, i32) {
    %c0_i32 = arith.constant 0 : i32
    %c0_i32_0 = arith.constant 0 : i32
    return %c0_i32, %arg0 : i32, i32
  }
  func.func @transform_8(%arg0: i32) -> (i32, i32) {
    %c0_i32 = arith.constant 0 : i32
    %c0_i32_0 = arith.constant 0 : i32
    return %c0_i32, %arg0 : i32, i32
  }
  func.func @transform_9(%arg0: i32) -> (i32, i32, i32) {
    %c0_i32 = arith.constant 0 : i32
    %c0_i32_0 = arith.constant 0 : i32
    %c0_i32_1 = arith.constant 0 : i32
    return %arg0, %c0_i32, %c0_i32_0 : i32, i32, i32
  }
  func.func @transform_10(%arg0: i32) -> (i32, i32) {
    %c0_i32 = arith.constant 0 : i32
    %c0_i32_0 = arith.constant 0 : i32
    return %c0_i32, %arg0 : i32, i32
  }
  func.func @transform_11(%arg0: i32) -> (i32, i32) {
    %c0_i32 = arith.constant 0 : i32
    %c0_i32_0 = arith.constant 0 : i32
    return %c0_i32, %arg0 : i32, i32
  }
  func.func @transform_12(%arg0: i32) -> (i32, i32) {
    %c0_i32 = arith.constant 0 : i32
    %c0_i32_0 = arith.constant 0 : i32
    return %c0_i32, %arg0 : i32, i32
  }
}

module attributes {stable_mosaic.version = 11 : i64} {
  func.func @_matmul_bn_kernel(%arg0: i32, %arg1: memref<128x64xbf16, #tpu.memory_space<vmem>>, %arg2: memref<64x128xbf16, #tpu.memory_space<vmem>>, %arg3: memref<1x128xf32, #tpu.memory_space<vmem>>, %arg4: memref<1x128xf32, #tpu.memory_space<vmem>>, %arg5: memref<128x128xbf16, #tpu.memory_space<vmem>>, %arg6: memref<128x128xf32, #tpu.memory_space<vmem>>) attributes {dimension_semantics = [#tpu.dimension_semantics<parallel>], iteration_bounds = array<i64: 2>, scalar_prefetch = 0 : i64, scratch_operands = 1 : i64, tpu.core_type = #tpu.core_type<tc>, window_params = [{pipeline_mode = #tpu.pipeline_mode<synchronous>, transform_indices = @transform_0, window_bounds = array<i64: 128, 64>}, {transform_indices = @transform_1, window_bounds = array<i64: 64, 128>}, {transform_indices = @transform_2, window_bounds = array<i64: 1, 128>}, {transform_indices = @transform_3, window_bounds = array<i64: 1, 128>}, {transform_indices = @transform_4, window_bounds = array<i64: 128, 128>}]} {
    %cst = arith.constant 0.000000e+00 : f32
    %0 = vector.broadcast %cst : f32 to vector<1x128xf32>
    %c0_i32 = arith.constant 0 : i32
    %c128_i32 = arith.constant 128 : i32
    %1 = arith.muli %c0_i32, %c128_i32 : i32
    %2 = tpu.assume_multiple %1, 128 : i32
    %3 = arith.index_cast %2 : i32 to index
    %c0 = arith.constant 0 : index
    %4 = vector.load %arg1[%3, %c0] : memref<128x64xbf16, #tpu.memory_space<vmem>>, vector<128x64xbf16>
    %c0_0 = arith.constant 0 : index
    %c0_1 = arith.constant 0 : index
    %5 = vector.load %arg2[%c0_0, %c0_1] : memref<64x128xbf16, #tpu.memory_space<vmem>>, vector<64x128xbf16>
    %cst_2 = arith.constant dense<0.000000e+00> : vector<128x128xf32>
    %6 = tpu.matmul %4, %5, %cst_2 {dimension_numbers = #tpu.dot_dimension_numbers<[1], [0], [0], [1], [0, 0, 1, 1], [], []>} : vector<128x64xbf16>, vector<64x128xbf16>, vector<128x128xf32> -> vector<128x128xf32>
    %7 = arith.index_cast %2 : i32 to index
    %c0_3 = arith.constant 0 : index
    %8 = vector.load %arg6[%7, %c0_3] : memref<128x128xf32, #tpu.memory_space<vmem>>, vector<128x128xf32>
    tpu.vector_store %arg6[%7, %c0_3], %6 {strides = array<i32>} : memref<128x128xf32, #tpu.memory_space<vmem>>, vector<128x128xf32>,
    %cst_4 = arith.constant dense<0.000000e+00> : vector<128xf32>
    %9 = vector.multi_reduction <add>, %6, %cst_4 [0] : vector<128x128xf32> to vector<128xf32>
    %10 = vector.shape_cast %9 : vector<128xf32> to vector<1x128xf32>
    %11 = arith.addf %0, %10 : vector<1x128xf32>
    %c1_i32 = arith.constant 1 : i32
    %cst_5 = arith.constant 7.812500e-03 : f32
    %12 = vector.broadcast %cst_5 : f32 to vector<1x128xf32>
    %13 = arith.mulf %11, %12 : vector<1x128xf32>
    %cst_6 = arith.constant 0.000000e+00 : f32
    %14 = vector.broadcast %cst_6 : f32 to vector<1x128xf32>
    %c0_i32_7 = arith.constant 0 : i32
    %c128_i32_8 = arith.constant 128 : i32
    %15 = arith.muli %c0_i32_7, %c128_i32_8 : i32
    %16 = tpu.assume_multiple %15, 128 : i32
    %17 = arith.index_cast %16 : i32 to index
    %c0_9 = arith.constant 0 : index
    %18 = vector.load %arg6[%17, %c0_9] : memref<128x128xf32, #tpu.memory_space<vmem>>, vector<128x128xf32>
    %19 = vector.broadcast %13 : vector<1x128xf32> to vector<128x128xf32>
    %20 = arith.subf %18, %19 : vector<128x128xf32>
    %21 = arith.mulf %20, %20 : vector<128x128xf32>
    %cst_10 = arith.constant dense<0.000000e+00> : vector<128xf32>
    %22 = vector.multi_reduction <add>, %21, %cst_10 [0] : vector<128x128xf32> to vector<128xf32>
    %23 = vector.shape_cast %22 : vector<128xf32> to vector<1x128xf32>
    %24 = arith.addf %14, %23 : vector<1x128xf32>
    %c1_i32_11 = arith.constant 1 : i32
    %cst_12 = arith.constant 7.812500e-03 : f32
    %25 = vector.broadcast %cst_12 : f32 to vector<1x128xf32>
    %26 = arith.mulf %24, %25 : vector<1x128xf32>
    %cst_13 = arith.constant 0.000000e+00 : f32
    %27 = vector.broadcast %cst_13 : f32 to vector<1x128xf32>
    %28 = arith.maximumf %26, %27 : vector<1x128xf32>
    %cst_14 = arith.constant 9.99999974E-6 : f32
    %29 = vector.broadcast %cst_14 : f32 to vector<1x128xf32>
    %30 = arith.addf %28, %29 : vector<1x128xf32>
    %31 = math.rsqrt %30 : vector<1x128xf32>
    %c0_15 = arith.constant 0 : index
    %c0_16 = arith.constant 0 : index
    %32 = vector.load %arg3[%c0_15, %c0_16] : memref<1x128xf32, #tpu.memory_space<vmem>>, vector<1x128xf32>
    %33 = arith.mulf %31, %32 : vector<1x128xf32>
    %c0_17 = arith.constant 0 : index
    %c0_18 = arith.constant 0 : index
    %34 = vector.load %arg4[%c0_17, %c0_18] : memref<1x128xf32, #tpu.memory_space<vmem>>, vector<1x128xf32>
    %35 = arith.mulf %13, %33 : vector<1x128xf32>
    %36 = arith.subf %34, %35 : vector<1x128xf32>
    %c0_i32_19 = arith.constant 0 : i32
    %c128_i32_20 = arith.constant 128 : i32
    %37 = arith.muli %c0_i32_19, %c128_i32_20 : i32
    %38 = tpu.assume_multiple %37, 128 : i32
    %39 = arith.index_cast %38 : i32 to index
    %c0_21 = arith.constant 0 : index
    %40 = vector.load %arg6[%39, %c0_21] : memref<128x128xf32, #tpu.memory_space<vmem>>, vector<128x128xf32>
    %41 = vector.broadcast %33 : vector<1x128xf32> to vector<128x128xf32>
    %42 = arith.mulf %40, %41 : vector<128x128xf32>
    %43 = vector.broadcast %36 : vector<1x128xf32> to vector<128x128xf32>
    %44 = arith.addf %42, %43 : vector<128x128xf32>
    %45 = arith.truncf %44 : vector<128x128xf32> to vector<128x128xbf16>
    %46 = arith.index_cast %38 : i32 to index
    %c0_22 = arith.constant 0 : index
    %47 = vector.load %arg5[%46, %c0_22] : memref<128x128xbf16, #tpu.memory_space<vmem>>, vector<128x128xbf16>
    tpu.vector_store %arg5[%46, %c0_22], %45 {strides = array<i32>} : memref<128x128xbf16, #tpu.memory_space<vmem>>, vector<128x128xbf16>,
    %c1_i32_23 = arith.constant 1 : i32
    return
  }
  func.func @transform_0(%arg0: i32) -> (i32, i32) {
    %c0_i32 = arith.constant 0 : i32
    %c0_i32_0 = arith.constant 0 : i32
    %c0_i32_1 = arith.constant 0 : i32
    return %c0_i32, %c0_i32_0 : i32, i32
  }
  func.func @transform_1(%arg0: i32) -> (i32, i32) {
    %c0_i32 = arith.constant 0 : i32
    %c0_i32_0 = arith.constant 0 : i32
    return %c0_i32, %arg0 : i32, i32
  }
  func.func @transform_2(%arg0: i32) -> (i32, i32) {
    %c0_i32 = arith.constant 0 : i32
    %c0_i32_0 = arith.constant 0 : i32
    return %c0_i32, %arg0 : i32, i32
  }
  func.func @transform_3(%arg0: i32) -> (i32, i32) {
    %c0_i32 = arith.constant 0 : i32
    %c0_i32_0 = arith.constant 0 : i32
    return %c0_i32, %arg0 : i32, i32
  }
  func.func @transform_4(%arg0: i32) -> (i32, i32) {
    %c0_i32 = arith.constant 0 : i32
    %c0_i32_0 = arith.constant 0 : i32
    return %c0_i32, %arg0 : i32, i32
  }
}

module attributes {stable_mosaic.version = 11 : i64} {
  func.func @_matmul_bn_kernel(%arg0: i32, %arg1: memref<128x128xbf16, #tpu.memory_space<vmem>>, %arg2: memref<128x128xbf16, #tpu.memory_space<vmem>>, %arg3: memref<1x128xf32, #tpu.memory_space<vmem>>, %arg4: memref<1x128xf32, #tpu.memory_space<vmem>>, %arg5: memref<128x128xbf16, #tpu.memory_space<vmem>>, %arg6: memref<128x128xf32, #tpu.memory_space<vmem>>, %arg7: memref<128x128xf32, #tpu.memory_space<vmem>>) attributes {dimension_semantics = [#tpu.dimension_semantics<parallel>], iteration_bounds = array<i64: 2>, scalar_prefetch = 0 : i64, scratch_operands = 1 : i64, tpu.core_type = #tpu.core_type<tc>, window_params = [{pipeline_mode = #tpu.pipeline_mode<synchronous>, transform_indices = @transform_0, window_bounds = array<i64: 128, 128>}, {transform_indices = @transform_1, window_bounds = array<i64: 128, 128>}, {transform_indices = @transform_2, window_bounds = array<i64: 1, 128>}, {transform_indices = @transform_3, window_bounds = array<i64: 1, 128>}, {transform_indices = @transform_4, window_bounds = array<i64: 128, 128>}, {transform_indices = @transform_5, window_bounds = array<i64: 128, 128>}]} {
    %cst = arith.constant 0.000000e+00 : f32
    %0 = vector.broadcast %cst : f32 to vector<1x128xf32>
    %c0_i32 = arith.constant 0 : i32
    %c128_i32 = arith.constant 128 : i32
    %1 = arith.muli %c0_i32, %c128_i32 : i32
    %2 = tpu.assume_multiple %1, 128 : i32
    %3 = arith.index_cast %2 : i32 to index
    %c0 = arith.constant 0 : index
    %4 = vector.load %arg1[%3, %c0] : memref<128x128xbf16, #tpu.memory_space<vmem>>, vector<128x128xbf16>
    %c0_0 = arith.constant 0 : index
    %c0_1 = arith.constant 0 : index
    %5 = vector.load %arg2[%c0_0, %c0_1] : memref<128x128xbf16, #tpu.memory_space<vmem>>, vector<128x128xbf16>
    %cst_2 = arith.constant dense<0.000000e+00> : vector<128x128xf32>
    %6 = tpu.matmul %4, %5, %cst_2 {dimension_numbers = #tpu.dot_dimension_numbers<[1], [0], [0], [1], [0, 0, 1, 1], [], []>} : vector<128x128xbf16>, vector<128x128xbf16>, vector<128x128xf32> -> vector<128x128xf32>
    %7 = arith.index_cast %2 : i32 to index
    %c0_3 = arith.constant 0 : index
    %8 = vector.load %arg7[%7, %c0_3] : memref<128x128xf32, #tpu.memory_space<vmem>>, vector<128x128xf32>
    tpu.vector_store %arg7[%7, %c0_3], %6 {strides = array<i32>} : memref<128x128xf32, #tpu.memory_space<vmem>>, vector<128x128xf32>,
    %cst_4 = arith.constant dense<0.000000e+00> : vector<128xf32>
    %9 = vector.multi_reduction <add>, %6, %cst_4 [0] : vector<128x128xf32> to vector<128xf32>
    %10 = vector.shape_cast %9 : vector<128xf32> to vector<1x128xf32>
    %11 = arith.addf %0, %10 : vector<1x128xf32>
    %c1_i32 = arith.constant 1 : i32
    %cst_5 = arith.constant 7.812500e-03 : f32
    %12 = vector.broadcast %cst_5 : f32 to vector<1x128xf32>
    %13 = arith.mulf %11, %12 : vector<1x128xf32>
    %cst_6 = arith.constant 0.000000e+00 : f32
    %14 = vector.broadcast %cst_6 : f32 to vector<1x128xf32>
    %c0_i32_7 = arith.constant 0 : i32
    %c128_i32_8 = arith.constant 128 : i32
    %15 = arith.muli %c0_i32_7, %c128_i32_8 : i32
    %16 = tpu.assume_multiple %15, 128 : i32
    %17 = arith.index_cast %16 : i32 to index
    %c0_9 = arith.constant 0 : index
    %18 = vector.load %arg7[%17, %c0_9] : memref<128x128xf32, #tpu.memory_space<vmem>>, vector<128x128xf32>
    %19 = vector.broadcast %13 : vector<1x128xf32> to vector<128x128xf32>
    %20 = arith.subf %18, %19 : vector<128x128xf32>
    %21 = arith.mulf %20, %20 : vector<128x128xf32>
    %cst_10 = arith.constant dense<0.000000e+00> : vector<128xf32>
    %22 = vector.multi_reduction <add>, %21, %cst_10 [0] : vector<128x128xf32> to vector<128xf32>
    %23 = vector.shape_cast %22 : vector<128xf32> to vector<1x128xf32>
    %24 = arith.addf %14, %23 : vector<1x128xf32>
    %c1_i32_11 = arith.constant 1 : i32
    %cst_12 = arith.constant 7.812500e-03 : f32
    %25 = vector.broadcast %cst_12 : f32 to vector<1x128xf32>
    %26 = arith.mulf %24, %25 : vector<1x128xf32>
    %cst_13 = arith.constant 0.000000e+00 : f32
    %27 = vector.broadcast %cst_13 : f32 to vector<1x128xf32>
    %28 = arith.maximumf %26, %27 : vector<1x128xf32>
    %cst_14 = arith.constant 9.99999974E-6 : f32
    %29 = vector.broadcast %cst_14 : f32 to vector<1x128xf32>
    %30 = arith.addf %28, %29 : vector<1x128xf32>
    %31 = math.rsqrt %30 : vector<1x128xf32>
    %c0_15 = arith.constant 0 : index
    %c0_16 = arith.constant 0 : index
    %32 = vector.load %arg3[%c0_15, %c0_16] : memref<1x128xf32, #tpu.memory_space<vmem>>, vector<1x128xf32>
    %33 = arith.mulf %31, %32 : vector<1x128xf32>
    %c0_17 = arith.constant 0 : index
    %c0_18 = arith.constant 0 : index
    %34 = vector.load %arg4[%c0_17, %c0_18] : memref<1x128xf32, #tpu.memory_space<vmem>>, vector<1x128xf32>
    %35 = arith.mulf %13, %33 : vector<1x128xf32>
    %36 = arith.subf %34, %35 : vector<1x128xf32>
    %c0_i32_19 = arith.constant 0 : i32
    %c128_i32_20 = arith.constant 128 : i32
    %37 = arith.muli %c0_i32_19, %c128_i32_20 : i32
    %38 = tpu.assume_multiple %37, 128 : i32
    %39 = arith.index_cast %38 : i32 to index
    %c0_21 = arith.constant 0 : index
    %40 = vector.load %arg7[%39, %c0_21] : memref<128x128xf32, #tpu.memory_space<vmem>>, vector<128x128xf32>
    %41 = vector.broadcast %33 : vector<1x128xf32> to vector<128x128xf32>
    %42 = arith.mulf %40, %41 : vector<128x128xf32>
    %43 = vector.broadcast %36 : vector<1x128xf32> to vector<128x128xf32>
    %44 = arith.addf %42, %43 : vector<128x128xf32>
    %45 = arith.index_cast %38 : i32 to index
    %c0_22 = arith.constant 0 : index
    %46 = vector.load %arg5[%45, %c0_22] : memref<128x128xbf16, #tpu.memory_space<vmem>>, vector<128x128xbf16>
    %47 = arith.extf %46 : vector<128x128xbf16> to vector<128x128xf32>
    %48 = arith.addf %44, %47 : vector<128x128xf32>
    %cst_23 = arith.constant 0.000000e+00 : f32
    %49 = vector.broadcast %cst_23 : f32 to vector<128x128xf32>
    %50 = arith.cmpf ogt, %48, %49 : vector<128x128xf32>
    %cst_24 = arith.constant 0.00999999977 : f32
    %51 = vector.broadcast %cst_24 : f32 to vector<128x128xf32>
    %52 = arith.mulf %51, %48 : vector<128x128xf32>
    %53 = arith.select %50, %48, %52 : vector<128x128xi1>, vector<128x128xf32>
    %54 = arith.index_cast %38 : i32 to index
    %c0_25 = arith.constant 0 : index
    %55 = vector.load %arg6[%54, %c0_25] : memref<128x128xf32, #tpu.memory_space<vmem>>, vector<128x128xf32>
    tpu.vector_store %arg6[%54, %c0_25], %53 {strides = array<i32>} : memref<128x128xf32, #tpu.memory_space<vmem>>, vector<128x128xf32>,
    %c1_i32_26 = arith.constant 1 : i32
    return
  }
  func.func @transform_0(%arg0: i32) -> (i32, i32) {
    %c0_i32 = arith.constant 0 : i32
    %c0_i32_0 = arith.constant 0 : i32
    %c0_i32_1 = arith.constant 0 : i32
    return %c0_i32, %c0_i32_0 : i32, i32
  }
  func.func @transform_1(%arg0: i32) -> (i32, i32) {
    %c0_i32 = arith.constant 0 : i32
    %c0_i32_0 = arith.constant 0 : i32
    return %c0_i32, %arg0 : i32, i32
  }
  func.func @transform_2(%arg0: i32) -> (i32, i32) {
    %c0_i32 = arith.constant 0 : i32
    %c0_i32_0 = arith.constant 0 : i32
    return %c0_i32, %arg0 : i32, i32
  }
  func.func @transform_3(%arg0: i32) -> (i32, i32) {
    %c0_i32 = arith.constant 0 : i32
    %c0_i32_0 = arith.constant 0 : i32
    return %c0_i32, %arg0 : i32, i32
  }
  func.func @transform_4(%arg0: i32) -> (i32, i32) {
    %c0_i32 = arith.constant 0 : i32
    %c0_i32_0 = arith.constant 0 : i32
    return %c0_i32, %arg0 : i32, i32
  }
  func.func @transform_5(%arg0: i32) -> (i32, i32) {
    %c0_i32 = arith.constant 0 : i32
    %c0_i32_0 = arith.constant 0 : i32
    return %c0_i32, %arg0 : i32, i32
  }
}

</mosaic_0001>

<bundles_post_ra>
// kernel: _lambda_.6
= control target key start
LH: loop header
LB: loop body
LE: loop exit
PB: predicated region body
PF: predicated region fallthrough
CT: control target
= control target key end

     0   :  { %s1048_s15 = smov 0   ;;  %s1050_s16 = smov 0   ;;  %s1277_s0 = inlined_call_operand.vmem [shape: bf16[128,64], index: 0, kind: input, shape index: {}]   ;;  %s1278_s1 = inlined_call_operand.vmem [shape: bf16[64,256], index: 1, kind: input, shape index: {}]   ;;  %s1279_s2 = inlined_call_operand.vmem [shape: f32[1,256], index: 2, kind: input, shape index: {}]   ;;  %s1280_s3 = inlined_call_operand.vmem [shape: f32[1,256], index: 3, kind: input, shape index: {}]   ;;  %s1281_s4 = inlined_call_operand.vmem [shape: bf16[128,256], index: 4, kind: output, shape index: {}]  }
   0x1   :  { %s1052_s17 = smov 0  }
   0x2 LB: > { %s1064_s18 = sadd.s32 4294967295, %s1021_s17   ;;  %s1067_s19 = sadd.s32 1, %s1021_s17   ;;  %s1021_s17 = sphi %s1052_s17, %s1285_s17   ;;  %s1017_s16 = sphi %s1050_s16, %s1284_s16   ;;  %s1013_s15 = sphi %s1048_s15, %s1283_s15  }
   0x3   : > { %s39_s20 = ssub.s32 %s1021_s17, %s1067_s19  ;;  %s42_s21 = sadd.s32 1, %s1017_s16 }
   0x4   : > { %p40_p0 = scmp.eq.s32.totalorder %s39_s20, 0  ;;  %p49_p1 = scmp.ne.s32.totalorder %s1017_s16, %s1013_s15 }
   0x5   : > { %p50_p2 = scmp.eq.s32.totalorder %s1021_s17, 0  ;;  %p131_p3 = scmp.eq.s32.totalorder %s1064_s18, 1 }
   0x6   : > { %s1077_s22 = scalar_select %p40_p0, %s1017_s16, %s42_s21  }
   0x7   : > { %p51_p4 = por %p50_p2, %p49_p1  ;;  %p1079_p5 = por %p131_p3, %p49_p1 }
   0x8   : > { %p836_p6 = scmp.ge.s32.totalorder %s1021_s17, 2 }
   0xa   : > { %156 = sbr.rel (%p836_p6) target bundleno = 27 (0x1b), region = 20 }
   0xf   : > { %159 = sbr.rel (!%p51_p4) target bundleno = 27 (0x1b), region = 24  ;;  %s161_s24 = sand.u32 (%p51_p4), 1, %s1017_s16  }
  0x10   : > { %s838_s25 = sshll.u32 (%p51_p4), %s1021_s17, 2  ;;  %s837_s26 = sshll.u32 (%p51_p4), %s161_s24, 5 }
  0x11   : > { %s165_s29 = scalar_lea.vmem (%p51_p4), %s1278_s1, %s838_s25  ;;  %s163_s30 = scalar_lea.vmem (%p51_p4), [#allocation3], %s837_s26 }
  0x12   : > { %v182_v0 = vld [vmem:[%s165_s29] sm:$0xf] (%p51_p4)  ;;  %v184_v1 = vld [vmem:[%s165_s29 + $0x8] sm:$0xf] (%p51_p4)  ;;  %v186_v2 = vld [vmem:[%s165_s29 + $0x10] sm:$0xf] (%p51_p4) }
  0x13   : > { %183 = vst [vmem:[%s163_s30] sm:$0xf] (%p51_p4), %v182_v0  ;;  %v188_v3 = vld [vmem:[%s165_s29 + $0x18] sm:$0xf] (%p51_p4)  ;;  %v190_v4 = vld [vmem:[%s165_s29 + $0x20] sm:$0xf] (%p51_p4) }
  0x14   : > { %185 = vst [vmem:[%s163_s30 + $0x4] sm:$0xf] %v184_v1  ;;  %v192_v5 = vld [vmem:[%s165_s29 + $0x28] sm:$0xf]  ;;  %v194_v6 = vld [vmem:[%s165_s29 + $0x30] sm:$0xf] }
  0x15   : > { %187 = vst [vmem:[%s163_s30 + $0x8] sm:$0xf] %v186_v2  ;;  %v196_v7 = vld [vmem:[%s165_s29 + $0x38] sm:$0xf] }
  0x16   : > { %189 = vst [vmem:[%s163_s30 + $0xc] sm:$0xf] %v188_v3 }
  0x17   : > { %191 = vst [vmem:[%s163_s30 + $0x10] sm:$0xf] %v190_v4 }
  0x18   : > { %193 = vst [vmem:[%s163_s30 + $0x14] sm:$0xf] %v192_v5 }
  0x19   : > { %195 = vst [vmem:[%s163_s30 + $0x18] sm:$0xf] %v194_v6 }
  0x1a   : > { %197 = vst [vmem:[%s163_s30 + $0x1c] sm:$0xf] %v196_v7 }
  0x1b PF: > { %p839_p7 = scmp.ge.s32.totalorder %s1021_s17, 1  ;;  %p248_p8 = scmp.lt.s32.totalorder %s1021_s17, 3 }
  0x1d   : > { %p249_p9 = pnand %p839_p7, %p248_p8 }
  0x1e   : > { %s255_s5 = sand.u32 (!%p249_p9), 1, %s1013_s15   ;;  %p285_p10 = scmp.lt.s32.totalorder (!%p249_p9), %s1064_s18, 1 }
  0x1f   : > { %252 = sbr.rel (%p249_p9) target bundleno = 350 (0x15e), region = 73  ;;  %s840_s6 = sshll.u32 (!%p249_p9), %s255_s5, 5 }
  0x20   : > { %s257_s7 = scalar_lea.vmem (!%p249_p9), [#allocation3], %s840_s6  ;;  %s841_s12 = sshll.u32 (!%p249_p9), %s255_s5, 6 }
  0x21   : > { %s1235_s15 = scalar_lea.vmem (!%p249_p9), [#allocation4], %s841_s12 }
  0x24   : > { %v913_v8 = vld [vmem:[%s257_s7 + $0x18] sm:$0xff]  ;;  %v912_v9 = vld [vmem:[%s257_s7 + $0x10] sm:$0xff]  ;;  %v911_v10 = vld [vmem:[%s257_s7 + $0x8] sm:$0xff]  ;;  %vm380_vm0 = vcmask 523264   ;;  %s286_s30 = scalar_select %p285_p10, %s1064_s18, 1 }
  0x25   : > { %409 = vmatpush.bf16.msra.mxu0 %v913_v8  ;;  %961 = vmatpush.bf16.msra.mxu1 %v913_v8  ;;  %v910_v11 = vld [vmem:[%s257_s7] sm:$0xff]  ;;  %v904_v13 = vld [vmem:[%s1277_s0 + $0x10] sm:$0xff]  ;;  %v903_v16 = vld [vmem:[%s1277_s0 + $0x8] sm:$0xff]  ;;  %s899_s5 = sshll.u32 (%p1079_p5), %s1064_s18, 2 }
  0x26   : > { %962 = vmatpush.bf16.msra.mxu2 %v913_v8  ;;  %963 = vmatpush.bf16.msra.mxu3 %v913_v8  ;;  %v902_v12 = vld [vmem:[%s1277_s0] sm:$0xff]  ;;  %v908_v15 = vld [vmem:[%s1277_s0 + $0x30] sm:$0xff]  ;;  %v905_v17 = vld [vmem:[%s1277_s0 + $0x18] sm:$0xff]  ;;  %s287_s8 = scalar_lea.vmem %s1279_s2, %s286_s30  ;;  %s290_s11 = scalar_lea.vmem %s1280_s3, %s286_s30 }
  0x27   : > { %v906_v14 = vld [vmem:[%s1277_s0 + $0x20] sm:$0xff]  ;;  %v907_v18 = vld [vmem:[%s1277_s0 + $0x28] sm:$0xff]  ;;  %v909_v19 = vld [vmem:[%s1277_s0 + $0x38] sm:$0xff]  ;;  %s657_s17 = scalar_lea.vmem (%p1079_p5), %s1281_s4, %s899_s5 }
  0x29   : > { %410 = vmatpush.bf16.msra.mxu0 %v912_v9  ;;  %964 = vmatpush.bf16.msra.mxu1 %v912_v9 }
  0x2a   : > { %965 = vmatpush.bf16.msra.mxu2 %v912_v9  ;;  %966 = vmatpush.bf16.msra.mxu3 %v912_v9 }
  0x2d   : > { %411 = vmatpush.bf16.msra.mxu0 %v911_v10  ;;  %967 = vmatpush.bf16.msra.mxu1 %v911_v10 }
  0x2e   : > { %968 = vmatpush.bf16.msra.mxu2 %v911_v10  ;;  %969 = vmatpush.bf16.msra.mxu3 %v911_v10 }
  0x31   : > { %412 = vmatpush.bf16.msra.mxu0 %v910_v11  ;;  %970 = vmatpush.bf16.msra.mxu1 %v910_v11 }
  0x32   : > { %971 = vmatpush.bf16.msra.mxu2 %v910_v11  ;;  %972 = vmatpush.bf16.msra.mxu3 %v910_v11 }
  0x34   : > { %890 = vmatmul.msk.bf16.vlgmr.msra.gmra.mxu0 %vm380_vm0, %v902_v12  ;;  %892 = vmatmul.msk.bf16.vlgmr.msra.gmra.mxu1 %vm380_vm0, %v904_v13 }
  0x35   : > { %894 = vmatmul.msk.bf16.vlgmr.msra.gmra.mxu2 %vm380_vm0, %v906_v14  ;;  %896 = vmatmul.msk.bf16.vlgmr.msra.gmra.mxu3 %vm380_vm0, %v908_v15 }
  0x44   : > { %891 = vmatmul.msk.bf16.gmra.mxu0 %vm380_vm0, %v903_v16  ;;  %893 = vmatmul.msk.bf16.gmra.mxu1 %vm380_vm0, %v905_v17 }
  0x45   : > { %895 = vmatmul.msk.bf16.gmra.mxu2 %vm380_vm0, %v907_v18  ;;  %897 = vmatmul.msk.bf16.gmra.mxu3 %vm380_vm0, %v909_v19 }
  0xb1   : > { %v1126_v20 = vpop.f32.mrf.mxu0  ;;  %v1128_v21 = vpop.f32.mrf.mxu1 }
  0xb8   : > { %v1132_v23 = vpop.f32.mrf.mxu2  ;;  %v1138_v26 = vpop.f32.mrf.mxu3 }
  0xb9   : > { %v1130_v22 = vpop.f32.mrf.mxu0  ;;  %v1134_v24 = vpop.f32.mrf.mxu1 }
  0xba   : > { %v470_v28 = vadd.f32 %v1130_v22, %v1126_v20 }
  0xc0   : > { %v1140_v27 = vpop.f32.mrf.mxu2  ;;  %v1151_v34 = vpop.f32.mrf.mxu3 }
  0xc1   : > { %v1136_v25 = vpop.f32.mrf.mxu0  ;;  %v1144_v29 = vpop.f32.mrf.mxu1 }
  0xc2   : > { %v471_v30 = vadd.f32 %v470_v28, %v1136_v25 }
  0xc8   : > { %v1154_v36 = vpop.f32.mrf.mxu2  ;;  %v1162_v42 = vpop.f32.mrf.mxu3 }
  0xc9   : > { %v1147_v31 = vpop.f32.mrf.mxu0  ;;  %v1157_v38 = vpop.f32.mrf.mxu1 }
  0xca   : > { %v472_v32 = vadd.f32 %v471_v30, %v1147_v31 }
  0xcc   : > { %v473_v33 = vadd.f32 %v472_v32, %v1128_v21 }
  0xce   : > { %v474_v35 = vadd.f32 %v473_v33, %v1134_v24 }
  0xd0   : > { %v475_v37 = vadd.f32 %v474_v35, %v1144_v29  ;;  %v1165_v44 = vpop.f32.mrf.mxu2  ;;  %v1171_v49 = vpop.f32.mrf.mxu3 }
  0xd2   : > { %v476_v39 = vadd.f32 %v475_v37, %v1157_v38 }
  0xd4   : > { %v477_v40 = vadd.f32 %v476_v39, %v1132_v23 }
  0xd6   : > { %v478_v41 = vadd.f32 %v477_v40, %v1140_v27 }
  0xd8   : > { %v479_v43 = vadd.f32 %v478_v41, %v1154_v36 }
  0xda   : > { %v480_v45 = vadd.f32 %v479_v43, %v1165_v44 }
  0xdc   : > { %v481_v46 = vadd.f32 %v480_v45, %v1138_v26 }
  0xde   : > { %v482_v47 = vadd.f32 %v481_v46, %v1151_v34 }
  0xe0   : > { %v483_v48 = vadd.f32 %v482_v47, %v1162_v42 }
  0xe2   : > { %v484_v50 = vadd.f32 %v483_v48, %v1171_v49 }
  0xe4   : > { %v485_v51 = vrot.slane %v484_v50, 4 }
  0xe6   : > { %v486_v52 = vadd.f32 %v485_v51, %v484_v50 }
  0xe8   : > { %v487_v53 = vrot.slane %v486_v52, 2 }
  0xea   : > { %v488_v54 = vadd.f32 %v487_v53, %v486_v52 }
  0xec   : > { %v489_v55 = vrot.slane %v488_v54, 1 }
  0xee   : > { %v490_v56 = vadd.f32 %v489_v55, %v488_v54 }
  0xf0   : > { %v1174_v57 = vmul.f32 0.0078125, %v490_v56 }
  0xf2   : > { %v509_v58 = vsub.f32 %v1126_v20, %v1174_v57  ;;  %v510_v59 = vsub.f32 %v1130_v22, %v1174_v57  ;;  %v511_v60 = vsub.f32 %v1136_v25, %v1174_v57  ;;  %v512_v63 = vsub.f32 %v1147_v31, %v1174_v57 }
  0xf3   : > { %v513_v0 = vsub.f32 %v1128_v21, %v1174_v57  ;;  %v514_v3 = vsub.f32 %v1134_v24, %v1174_v57  ;;  %v515_v6 = vsub.f32 %v1144_v29, %v1174_v57  ;;  %v516_v9 = vsub.f32 %v1157_v38, %v1174_v57 }
  0xf4   : > { %v525_v61 = vmul.f32 %v509_v58, %v509_v58  ;;  %v526_v62 = vmul.f32 %v510_v59, %v510_v59  ;;  %v527_v1 = vmul.f32 %v511_v60, %v511_v60  ;;  %v528_v4 = vmul.f32 %v512_v63, %v512_v63 }
  0xf5   : > { %v529_v7 = vmul.f32 %v513_v0, %v513_v0  ;;  %v530_v10 = vmul.f32 %v514_v3, %v514_v3  ;;  %v517_v12 = vsub.f32 %v1132_v23, %v1174_v57  ;;  %v531_v13 = vmul.f32 %v515_v6, %v515_v6 }
  0xf6   : > { %v541_v2 = vadd.f32 %v526_v62, %v525_v61  ;;  %v518_v15 = vsub.f32 %v1140_v27, %v1174_v57  ;;  %v532_v16 = vmul.f32 %v516_v9, %v516_v9  ;;  %v519_v18 = vsub.f32 %v1154_v36, %v1174_v57  ;;  %v576_v9 = vld [vmem:[%s287_s8] sm:$0x1] }
  0xf7   : > { %v533_v19 = vmul.f32 %v517_v12, %v517_v12  ;;  %v520_v30 = vsub.f32 %v1165_v44, %v1174_v57  ;;  %v521_v35 = vsub.f32 %v1138_v26, %v1174_v57  ;;  %v522_v40 = vsub.f32 %v1151_v34, %v1174_v57  ;;  %v578_v12 = vld [vmem:[%s290_s11] sm:$0x1] }
  0xf8   : > { %v542_v5 = vadd.f32 %v541_v2, %v527_v1  ;;  %v534_v32 = vmul.f32 %v518_v15, %v518_v15  ;;  %v535_v37 = vmul.f32 %v519_v18, %v519_v18  ;;  %v523_v45 = vsub.f32 %v1162_v42, %v1174_v57 }
  0xf9   : > { %v536_v41 = vmul.f32 %v520_v30, %v520_v30  ;;  %v537_v46 = vmul.f32 %v521_v35, %v521_v35  ;;  %v524_v48 = vsub.f32 %v1171_v49, %v1174_v57  ;;  %v538_v50 = vmul.f32 %v522_v40, %v522_v40 }
  0xfa   : > { %v543_v8 = vadd.f32 %v542_v5, %v528_v4  ;;  %v539_v52 = vmul.f32 %v523_v45, %v523_v45 }
  0xfb   : > { %v540_v54 = vmul.f32 %v524_v48, %v524_v48 }
  0xfc   : > { %v544_v11 = vadd.f32 %v543_v8, %v529_v7 }
  0xfe   : > { %v545_v14 = vadd.f32 %v544_v11, %v530_v10 }
 0x100   : > { %v546_v17 = vadd.f32 %v545_v14, %v531_v13 }
 0x102   : > { %v547_v28 = vadd.f32 %v546_v17, %v532_v16 }
 0x104   : > { %v548_v33 = vadd.f32 %v547_v28, %v533_v19 }
 0x106   : > { %v549_v39 = vadd.f32 %v548_v33, %v534_v32 }
 0x108   : > { %v550_v43 = vadd.f32 %v549_v39, %v535_v37 }
 0x10a   : > { %v551_v47 = vadd.f32 %v550_v43, %v536_v41 }
 0x10c   : > { %v552_v51 = vadd.f32 %v551_v47, %v537_v46 }
 0x10e   : > { %v553_v53 = vadd.f32 %v552_v51, %v538_v50 }
 0x110   : > { %v554_v55 = vadd.f32 %v553_v53, %v539_v52 }
 0x112   : > { %v555_v56 = vadd.f32 %v554_v55, %v540_v54 }
 0x114   : > { %v556_v58 = vrot.slane %v555_v56, 4 }
 0x116   : > { %v557_v59 = vadd.f32 %v556_v58, %v555_v56 }
 0x118   : > { %v558_v60 = vrot.slane %v557_v59, 2 }
 0x11a   : > { %v559_v61 = vadd.f32 %v558_v60, %v557_v59 }
 0x11c   : > { %v560_v62 = vrot.slane %v559_v61, 1 }
 0x11e   : > { %v561_v63 = vadd.f32 %v560_v62, %v559_v61 }
 0x120   : > { %v563_v0 = vmul.f32 0.0078125, %v561_v63 }
 0x122   : > { %v564_v1 = vmax.f32 %v563_v0, 0.0 }
 0x124   : > { %v565_v2 = vadd.f32 1e-05, %v564_v1 }
 0x126   : > { %997 = vrsqrt.f32 %v565_v2  ;;  %vm572_vm2 = vweird.f32 %v565_v2 }
 0x12c   : > { %v998_v3 = vpop.eup %997 }
 0x12d   : > { %v567_v4 = vmul.f32 %v998_v3, %v565_v2  ;;  %vm573_vm1 = vweird.f32 %v998_v3 }
 0x12e   : > { %vm574_vm3 = vmor %vm572_vm2, %vm573_vm1 }
 0x12f   : > { %v568_v5 = vmul.f32 %v998_v3, %v567_v4 }
 0x131   : > { %v569_v6 = vmul.f32 0.5, %v568_v5 }
 0x133   : > { %v570_v7 = vsub.f32 1.5, %v569_v6 }
 0x135   : > { %v571_v8 = vmul.f32 %v998_v3, %v570_v7 }
 0x137   : > { %v575_v10 = vsel %vm574_vm3, %v998_v3, %v571_v8 }
 0x138   : > { %v577_v11 = vmul.f32 %v576_v9, %v575_v10 }
 0x13a   : > { %v579_v13 = vmul.f32 %v577_v11, %v1174_v57  ;;  %v581_v14 = vperm.slane %v577_v11, 0 }
 0x13c   : > { %v580_v15 = vsub.f32 %v578_v12, %v579_v13  ;;  %v582_v16 = vmul.f32 %v581_v14, %v1126_v20  ;;  %v583_v17 = vmul.f32 %v581_v14, %v1130_v22  ;;  %v584_v18 = vmul.f32 %v581_v14, %v1136_v25 }
 0x13d   : > { %v585_v19 = vmul.f32 %v581_v14, %v1147_v31  ;;  %v586_v28 = vmul.f32 %v581_v14, %v1128_v21  ;;  %v587_v30 = vmul.f32 %v581_v14, %v1134_v24  ;;  %v588_v32 = vmul.f32 %v581_v14, %v1144_v29 }
 0x13e   : > { %v589_v33 = vmul.f32 %v581_v14, %v1157_v38  ;;  %v590_v57 = vmul.f32 %v581_v14, %v1132_v23  ;;  %v599_v35 = vperm.slane %v580_v15, 0  ;;  %v591_v37 = vmul.f32 %v581_v14, %v1140_v27 }
 0x13f   : > { %v592_v20 = vmul.f32 %v581_v14, %v1154_v36  ;;  %v593_v22 = vmul.f32 %v581_v14, %v1165_v44  ;;  %v594_v25 = vmul.f32 %v581_v14, %v1138_v26  ;;  %v595_v23 = vmul.f32 %v581_v14, %v1151_v34 }
 0x140   : > { %v601_v21 = vadd.f32 %v599_v35, %v582_v16  ;;  %v602_v31 = vadd.f32 %v599_v35, %v583_v17  ;;  %v603_v24 = vadd.f32 %v599_v35, %v584_v18  ;;  %v604_v39 = vadd.f32 %v599_v35, %v585_v19 }
 0x141   : > { %v605_v29 = vadd.f32 %v599_v35, %v586_v28  ;;  %v606_v40 = vadd.f32 %v599_v35, %v587_v30  ;;  %v607_v38 = vadd.f32 %v599_v35, %v588_v32  ;;  %v608_v41 = vadd.f32 %v599_v35, %v589_v33 }
 0x142   : > { %v596_v27 = vmul.f32 %v581_v14, %v1162_v42  ;;  %v609_v43 = vadd.f32 %v599_v35, %v590_v57  ;;  %v610_v36 = vadd.f32 %v599_v35, %v591_v37  ;;  %v597_v44 = vmul.f32 %v581_v14, %v1171_v49 }
 0x143   : > { %v611_v45 = vadd.f32 %v599_v35, %v592_v20  ;;  %v612_v26 = vadd.f32 %v599_v35, %v593_v22  ;;  %v613_v46 = vadd.f32 %v599_v35, %v594_v25  ;;  %v614_v47 = vadd.f32 %v599_v35, %v595_v23 }
 0x144   : > { %v917_v48 = vpack.c.bf16 %v602_v31, %v601_v21  ;;  %v922_v50 = vpack.c.bf16 %v604_v39, %v603_v24  ;;  %v927_v51 = vpack.c.bf16 %v606_v40, %v605_v29  ;;  %v615_v52 = vadd.f32 %v599_v35, %v596_v27 }
 0x145   : > { %v616_v53 = vadd.f32 %v599_v35, %v597_v44  ;;  %v932_v54 = vpack.c.bf16 %v608_v41, %v607_v38  ;;  %v937_v34 = vpack.c.bf16 %v610_v36, %v609_v43  ;;  %v942_v42 = vpack.c.bf16 %v612_v26, %v611_v45 }
 0x146   : > { %918 = vst [vmem:[%s1235_s15] sm:$0xff] %v917_v48   ;;  %v947_v49 = vpack.c.bf16 %v614_v47, %v613_v46 }
 0x147   : > { %954 = vst [vmem:[%s1235_s15 + $0x8] sm:$0xff] %v922_v50   ;;  %v952_v55 = vpack.c.bf16 %v616_v53, %v615_v52 }
 0x148   : > { %955 = vst [vmem:[%s1235_s15 + $0x10] sm:$0xff] %v927_v51  }
 0x149   : > { %956 = vst [vmem:[%s1235_s15 + $0x18] sm:$0xff] %v932_v54   ;;  %655 = sbr.rel (!%p1079_p5) target bundleno = 350 (0x15e), region = 81 }
 0x14a   : > { %957 = vst [vmem:[%s1235_s15 + $0x20] sm:$0xff] %v937_v34  }
 0x14b   : > { %958 = vst [vmem:[%s1235_s15 + $0x28] sm:$0xff] %v942_v42  }
 0x14c   : > { %959 = vst [vmem:[%s1235_s15 + $0x30] sm:$0xff] %v947_v49  }
 0x14d   : > { %960 = vst [vmem:[%s1235_s15 + $0x38] sm:$0xff] %v952_v55   ;;  %v674_v56 = vld [vmem:[%s1235_s15] sm:$0xf] (%p1079_p5)  ;;  %v676_v58 = vld [vmem:[%s1235_s15 + $0x4] sm:$0xf] (%p1079_p5) }
 0x14e   : > { %v678_v59 = vld [vmem:[%s1235_s15 + $0x8] sm:$0xf]  ;;  %675 = vst [vmem:[%s657_s17] sm:$0xf] %v674_v56  ;;  %v680_v60 = vld [vmem:[%s1235_s15 + $0xc] sm:$0xf] }
 0x14f   : > { %677 = vst [vmem:[%s657_s17 + $0x8] sm:$0xf] %v676_v58  ;;  %v682_v61 = vld [vmem:[%s1235_s15 + $0x10] sm:$0xf]  ;;  %v684_v62 = vld [vmem:[%s1235_s15 + $0x14] sm:$0xf] }
 0x150   : > { %679 = vst [vmem:[%s657_s17 + $0x10] sm:$0xf] %v678_v59  ;;  %v686_v63 = vld [vmem:[%s1235_s15 + $0x18] sm:$0xf]  ;;  %v688_v0 = vld [vmem:[%s1235_s15 + $0x1c] sm:$0xf] }
 0x151   : > { %681 = vst [vmem:[%s657_s17 + $0x18] sm:$0xf] %v680_v60  ;;  %v690_v1 = vld [vmem:[%s1235_s15 + $0x20] sm:$0xf]  ;;  %v692_v2 = vld [vmem:[%s1235_s15 + $0x24] sm:$0xf] }
 0x152   : > { %683 = vst [vmem:[%s657_s17 + $0x20] sm:$0xf] %v682_v61  ;;  %v694_v3 = vld [vmem:[%s1235_s15 + $0x28] sm:$0xf]  ;;  %v696_v4 = vld [vmem:[%s1235_s15 + $0x2c] sm:$0xf] }
 0x153   : > { %685 = vst [vmem:[%s657_s17 + $0x28] sm:$0xf] %v684_v62  ;;  %v698_v5 = vld [vmem:[%s1235_s15 + $0x30] sm:$0xf]  ;;  %v700_v6 = vld [vmem:[%s1235_s15 + $0x34] sm:$0xf] }
 0x154   : > { %687 = vst [vmem:[%s657_s17 + $0x30] sm:$0xf] %v686_v63  ;;  %v702_v7 = vld [vmem:[%s1235_s15 + $0x38] sm:$0xf]  ;;  %v704_v8 = vld [vmem:[%s1235_s15 + $0x3c] sm:$0xf] }
 0x155   : > { %689 = vst [vmem:[%s657_s17 + $0x38] sm:$0xf] %v688_v0 }
 0x156   : > { %691 = vst [vmem:[%s657_s17 + $0x40] sm:$0xf] %v690_v1 }
 0x157   : > { %693 = vst [vmem:[%s657_s17 + $0x48] sm:$0xf] %v692_v2 }
 0x158   : > { %695 = vst [vmem:[%s657_s17 + $0x50] sm:$0xf] %v694_v3 }
 0x159   : > { %697 = vst [vmem:[%s657_s17 + $0x58] sm:$0xf] %v696_v4 }
 0x15a   : > { %699 = vst [vmem:[%s657_s17 + $0x60] sm:$0xf] %v698_v5 }
 0x15b   : > { %701 = vst [vmem:[%s657_s17 + $0x68] sm:$0xf] %v700_v6 }
 0x15c   : > { %703 = vst [vmem:[%s657_s17 + $0x70] sm:$0xf] %v702_v7 }
 0x15d   : > { %705 = vst [vmem:[%s657_s17 + $0x78] sm:$0xf] %v704_v8 }
 0x15e PF: > { %p11_p11 = scmp.ge.s32.totalorder %s1067_s19, 4   ;;  %s1283_s15 = smov %s1017_s16 }
 0x15f   : > { %s1284_s16 = smov %s1077_s22  ;;  %s1285_s17 = smov %s1067_s19 }
 0x160   :  { %13 = sbr.rel (!%p11_p11) target bundleno = 2 (0x2), region = 159 }

// kernel: _lambda_.7
= control target key start
LH: loop header
LB: loop body
LE: loop exit
PB: predicated region body
PF: predicated region fallthrough
CT: control target
= control target key end

     0   :  { %10 = vsyncpa [#allocation6], 0  ;;  %s1698_s0 = inlined_call_operand.vmem [shape: bf16[128,128], index: 0, kind: input, shape index: {}]   ;;  %s1699_s1 = inlined_call_operand.vmem [shape: bf16[128,256], index: 1, kind: input, shape index: {}]   ;;  %s1700_s2 = inlined_call_operand.vmem [shape: f32[1,256], index: 2, kind: input, shape index: {}]   ;;  %s1701_s3 = inlined_call_operand.vmem [shape: f32[1,256], index: 3, kind: input, shape index: {}]   ;;  %s1702_s4 = inlined_call_operand.vmem [shape: bf16[128,256], index: 4, kind: input, shape index: {}]   ;;  %s1703_s5 = inlined_call_operand.hbm [shape: f32[128,256], index: 5, kind: output, shape index: {}]  }
   0x1   :  { %12 = vsyncpa [#allocation6 + $0x1], 0  ;;  %s1347_s18 = smov 0   ;;  %s1349_s19 = smov 0  }
   0x2   :  { %s1351_s20 = smov 0   ;;  %s1353_s21 = smov 0  }
   0x3 LB: > { %s1368_s22 = sadd.s32 4294967295, %s1312_s21   ;;  %s1048_s23 = sadd.s32 4294967294, %s1312_s21   ;;  %s1312_s21 = sphi %s1353_s21, %s1710_s21   ;;  %s1308_s20 = sphi %s1351_s20, %s1709_s20   ;;  %s1304_s19 = sphi %s1349_s19, %s1708_s19   ;;  %s1300_s18 = sphi %s1347_s18, %s1707_s18  }
   0x4   : > { %s1372_s24 = sadd.s32 1, %s1312_s21   ;;  %s46_s25 = sadd.s32 1, %s1308_s20 }
   0x5   : > { %s43_s26 = ssub.s32 %s1312_s21, %s1372_s24  ;;  %p53_p0 = scmp.ne.s32.totalorder %s1308_s20, %s1304_s19 }
   0x6   : > { %p44_p1 = scmp.eq.s32.totalorder %s43_s26, 0  ;;  %p54_p2 = scmp.eq.s32.totalorder %s1312_s21, 0 }
   0x7   : > { %p161_p3 = scmp.eq.s32.totalorder %s1368_s22, 1  ;;  %p166_p4 = scmp.ne.s32.totalorder %s1304_s19, %s1300_s18 }
   0x8   : > { %s1384_s27 = scalar_select %p44_p1, %s1308_s20, %s46_s25  }
   0x9   : > { %p1386_p5 = por %p54_p2, %p53_p0  ;;  %p1390_p6 = por %p161_p3, %p53_p0 }
   0xa   : > { %p167_p7 = scmp.eq.s32.totalorder %s1048_s23, 1  ;;  %p1050_p9 = scmp.ge.s32.totalorder %s1312_s21, 2 }
   0xc   : > { %p1394_p8 = por %p167_p7, %p166_p4  ;;  %186 = sbr.rel (%p1050_p9) target bundleno = 57 (0x39), region = 20 }
  0x11   : > { %189 = sbr.rel (!%p1386_p5) target bundleno = 37 (0x25), region = 24  ;;  %s191_s6 = sand.u32 (%p1386_p5), 1, %s1308_s20  }
  0x12   : > { %s1052_s7 = sshll.u32 (%p1386_p5), %s1312_s21, 2  ;;  %s1051_s8 = sshll.u32 (%p1386_p5), %s191_s6, 6 }
  0x13   : > { %s1408_s11 = scalar_lea.vmem (%p1386_p5), %s1699_s1, %s1052_s7  ;;  %s193_s12 = scalar_lea.vmem (%p1386_p5), [#allocation3], %s1051_s8 }
  0x14   : > { %v212_v0 = vld [vmem:[%s1408_s11] sm:$0xf] (%p1386_p5)  ;;  %v214_v1 = vld [vmem:[%s1408_s11 + $0x8] sm:$0xf] (%p1386_p5)  ;;  %v216_v2 = vld [vmem:[%s1408_s11 + $0x10] sm:$0xf] (%p1386_p5) }
  0x15   : > { %213 = vst [vmem:[%s193_s12] sm:$0xf] (%p1386_p5), %v212_v0  ;;  %v218_v3 = vld [vmem:[%s1408_s11 + $0x18] sm:$0xf] (%p1386_p5)  ;;  %v220_v4 = vld [vmem:[%s1408_s11 + $0x20] sm:$0xf] (%p1386_p5) }
  0x16   : > { %215 = vst [vmem:[%s193_s12 + $0x4] sm:$0xf] %v214_v1  ;;  %v222_v5 = vld [vmem:[%s1408_s11 + $0x28] sm:$0xf]  ;;  %v224_v6 = vld [vmem:[%s1408_s11 + $0x30] sm:$0xf] }
  0x17   : > { %217 = vst [vmem:[%s193_s12 + $0x8] sm:$0xf] %v216_v2  ;;  %v226_v7 = vld [vmem:[%s1408_s11 + $0x38] sm:$0xf]  ;;  %v228_v8 = vld [vmem:[%s1408_s11 + $0x40] sm:$0xf] }
  0x18   : > { %219 = vst [vmem:[%s193_s12 + $0xc] sm:$0xf] %v218_v3  ;;  %v230_v9 = vld [vmem:[%s1408_s11 + $0x48] sm:$0xf]  ;;  %v232_v10 = vld [vmem:[%s1408_s11 + $0x50] sm:$0xf] }
  0x19   : > { %221 = vst [vmem:[%s193_s12 + $0x10] sm:$0xf] %v220_v4  ;;  %v234_v11 = vld [vmem:[%s1408_s11 + $0x58] sm:$0xf]  ;;  %v236_v12 = vld [vmem:[%s1408_s11 + $0x60] sm:$0xf] }
  0x1a   : > { %223 = vst [vmem:[%s193_s12 + $0x14] sm:$0xf] %v222_v5  ;;  %v238_v13 = vld [vmem:[%s1408_s11 + $0x68] sm:$0xf]  ;;  %v240_v14 = vld [vmem:[%s1408_s11 + $0x70] sm:$0xf] }
  0x1b   : > { %225 = vst [vmem:[%s193_s12 + $0x18] sm:$0xf] %v224_v6  ;;  %v242_v15 = vld [vmem:[%s1408_s11 + $0x78] sm:$0xf] }
  0x1c   : > { %227 = vst [vmem:[%s193_s12 + $0x1c] sm:$0xf] %v226_v7 }
  0x1d   : > { %229 = vst [vmem:[%s193_s12 + $0x20] sm:$0xf] %v228_v8 }
  0x1e   : > { %231 = vst [vmem:[%s193_s12 + $0x24] sm:$0xf] %v230_v9 }
  0x1f   : > { %233 = vst [vmem:[%s193_s12 + $0x28] sm:$0xf] %v232_v10 }
  0x20   : > { %235 = vst [vmem:[%s193_s12 + $0x2c] sm:$0xf] %v234_v11 }
  0x21   : > { %237 = vst [vmem:[%s193_s12 + $0x30] sm:$0xf] %v236_v12 }
  0x22   : > { %239 = vst [vmem:[%s193_s12 + $0x34] sm:$0xf] %v238_v13 }
  0x23   : > { %241 = vst [vmem:[%s193_s12 + $0x38] sm:$0xf] %v240_v14 }
  0x24   : > { %243 = vst [vmem:[%s193_s12 + $0x3c] sm:$0xf] %v242_v15 }
  0x25 PF: > { %311 = sbr.rel (!%p1386_p5) target bundleno = 57 (0x39), region = 73  ;;  %s313_s13 = sand.u32 (%p1386_p5), 1, %s1308_s20  }
  0x26   : > { %s1054_s14 = sshll.u32 (%p1386_p5), %s1312_s21, 2  ;;  %s1053_s15 = sshll.u32 (%p1386_p5), %s313_s13, 6 }
  0x27   : > { %s1433_s23 = scalar_lea.vmem (%p1386_p5), %s1702_s4, %s1054_s14  ;;  %s315_s25 = scalar_lea.vmem (%p1386_p5), [#allocation4], %s1053_s15 }
  0x28   : > { %v334_v16 = vld [vmem:[%s1433_s23] sm:$0xf] (%p1386_p5)  ;;  %v336_v17 = vld [vmem:[%s1433_s23 + $0x8] sm:$0xf] (%p1386_p5)  ;;  %v338_v18 = vld [vmem:[%s1433_s23 + $0x10] sm:$0xf] (%p1386_p5) }
  0x29   : > { %335 = vst [vmem:[%s315_s25] sm:$0xf] (%p1386_p5), %v334_v16  ;;  %v340_v19 = vld [vmem:[%s1433_s23 + $0x18] sm:$0xf] (%p1386_p5)  ;;  %v342_v20 = vld [vmem:[%s1433_s23 + $0x20] sm:$0xf] (%p1386_p5) }
  0x2a   : > { %337 = vst [vmem:[%s315_s25 + $0x4] sm:$0xf] %v336_v17  ;;  %v344_v21 = vld [vmem:[%s1433_s23 + $0x28] sm:$0xf]  ;;  %v346_v22 = vld [vmem:[%s1433_s23 + $0x30] sm:$0xf] }
  0x2b   : > { %339 = vst [vmem:[%s315_s25 + $0x8] sm:$0xf] %v338_v18  ;;  %v348_v23 = vld [vmem:[%s1433_s23 + $0x38] sm:$0xf]  ;;  %v350_v24 = vld [vmem:[%s1433_s23 + $0x40] sm:$0xf] }
  0x2c   : > { %341 = vst [vmem:[%s315_s25 + $0xc] sm:$0xf] %v340_v19  ;;  %v352_v25 = vld [vmem:[%s1433_s23 + $0x48] sm:$0xf]  ;;  %v354_v26 = vld [vmem:[%s1433_s23 + $0x50] sm:$0xf] }
  0x2d   : > { %343 = vst [vmem:[%s315_s25 + $0x10] sm:$0xf] %v342_v20  ;;  %v356_v27 = vld [vmem:[%s1433_s23 + $0x58] sm:$0xf]  ;;  %v358_v28 = vld [vmem:[%s1433_s23 + $0x60] sm:$0xf] }
  0x2e   : > { %345 = vst [vmem:[%s315_s25 + $0x14] sm:$0xf] %v344_v21  ;;  %v360_v29 = vld [vmem:[%s1433_s23 + $0x68] sm:$0xf]  ;;  %v362_v30 = vld [vmem:[%s1433_s23 + $0x70] sm:$0xf] }
  0x2f   : > { %347 = vst [vmem:[%s315_s25 + $0x18] sm:$0xf] %v346_v22  ;;  %v364_v31 = vld [vmem:[%s1433_s23 + $0x78] sm:$0xf] }
  0x30   : > { %349 = vst [vmem:[%s315_s25 + $0x1c] sm:$0xf] %v348_v23 }
  0x31   : > { %351 = vst [vmem:[%s315_s25 + $0x20] sm:$0xf] %v350_v24 }
  0x32   : > { %353 = vst [vmem:[%s315_s25 + $0x24] sm:$0xf] %v352_v25 }
  0x33   : > { %355 = vst [vmem:[%s315_s25 + $0x28] sm:$0xf] %v354_v26 }
  0x34   : > { %357 = vst [vmem:[%s315_s25 + $0x2c] sm:$0xf] %v356_v27 }
  0x35   : > { %359 = vst [vmem:[%s315_s25 + $0x30] sm:$0xf] %v358_v28 }
  0x36   : > { %361 = vst [vmem:[%s315_s25 + $0x34] sm:$0xf] %v360_v29 }
  0x37   : > { %363 = vst [vmem:[%s315_s25 + $0x38] sm:$0xf] %v362_v30 }
  0x38   : > { %365 = vst [vmem:[%s315_s25 + $0x3c] sm:$0xf] %v364_v31 }
  0x39 PF: > { %p1055_p10 = scmp.ge.s32.totalorder %s1312_s21, 1  ;;  %p420_p11 = scmp.lt.s32.totalorder %s1312_s21, 3 }
  0x3b   : > { %p421_p12 = pnand %p1055_p10, %p420_p11 }
  0x3c   : > { %s1454_s26 = sand.u32 (!%p421_p12), 1, %s1304_s19   ;;  %p471_p13 = scmp.lt.s32.totalorder (!%p421_p12), %s1368_s22, 1 }
  0x3d   : > { %424 = sbr.rel (%p421_p12) target bundleno = 397 (0x18d), region = 114  ;;  %s1056_s28 = sshll.u32 (!%p421_p12), %s1454_s26, 6 }
  0x3e   : > { %s1459_s6 = scalar_lea.vmem (!%p421_p12), [#allocation3], %s1056_s28  ;;  %s436_s16 = scalar_lea.vmem (!%p421_p12), [#allocation4], %s1056_s28 }
  0x3f   : > { %s1058_s28 = sshll.u32 (!%p421_p12), %s1454_s26, 7  ;;  %s1124_s23 = sshll.u32 (!%p421_p12), %s1368_s22, 3 }
  0x40   : > { %s1630_s17 = scalar_lea.vmem (!%p421_p12), [#allocation5], %s1058_s28  ;;  %s1270_s14 = scalar_lea.hbm (!%p421_p12), %s1703_s5, 256 }
  0x41   : > { %s941_s7 = sshll.u32 (!%p421_p12), %s1630_s17, 4  ;;  %s942_s7 = int_to_ptr.vmem [resolvable:$true] %s941_s7 }
  0x42   : > { %v1142_v32 = vld [vmem:[%s1459_s6 + $0x38] sm:$0xff]  ;;  %v1141_v33 = vld [vmem:[%s1459_s6 + $0x30] sm:$0xff]  ;;  %v1140_v34 = vld [vmem:[%s1459_s6 + $0x28] sm:$0xff]  ;;  %s472_s9 = scalar_select %p471_p13, %s1368_s22, 1 }
  0x43   : > { %605 = vmatpush.bf16.msra.mxu0 %v1142_v32  ;;  %1182 = vmatpush.bf16.msra.mxu1 %v1142_v32  ;;  %v1139_v35 = vld [vmem:[%s1459_s6 + $0x20] sm:$0xff]  ;;  %v1138_v36 = vld [vmem:[%s1459_s6 + $0x18] sm:$0xff]  ;;  %v1137_v37 = vld [vmem:[%s1459_s6 + $0x10] sm:$0xff] }
  0x44   : > { %1183 = vmatpush.bf16.msra.mxu2 %v1142_v32  ;;  %1184 = vmatpush.bf16.msra.mxu3 %v1142_v32  ;;  %v1136_v38 = vld [vmem:[%s1459_s6 + $0x8] sm:$0xff]  ;;  %v1135_v39 = vld [vmem:[%s1459_s6] sm:$0xff]  ;;  %v1129_v41 = vld [vmem:[%s1698_s0 + $0x10] sm:$0xff]  ;;  %s473_s12 = scalar_lea.vmem %s1700_s2, %s472_s9  ;;  %s476_s15 = scalar_lea.vmem %s1701_s3, %s472_s9 }
  0x45   : > { %v1127_v40 = vld [vmem:[%s1698_s0] sm:$0xff]  ;;  %v1133_v43 = vld [vmem:[%s1698_s0 + $0x30] sm:$0xff]  ;;  %v1128_v44 = vld [vmem:[%s1698_s0 + $0x8] sm:$0xff]  ;;  %s940_s6 = scalar_lea.hbm %s1703_s5, %s1124_s23  ;;  %s930_s9 = scalar_lea.sflag [#allocation6], %s1454_s26 }
  0x46   : > { %v1131_v42 = vld [vmem:[%s1698_s0 + $0x20] sm:$0xff]  ;;  %v1130_v45 = vld [vmem:[%s1698_s0 + $0x18] sm:$0xff]  ;;  %v1132_v46 = vld [vmem:[%s1698_s0 + $0x28] sm:$0xff]  ;;  %s943_s8 = sshll.u32 %s940_s6, 4  ;;  %s944_s8 = int_to_ptr.hbm [resolvable:$true] %s943_s8 }
  0x47   : > { %606 = vmatpush.bf16.msra.mxu0 %v1141_v33  ;;  %1185 = vmatpush.bf16.msra.mxu1 %v1141_v33  ;;  %v1134_v47 = vld [vmem:[%s1698_s0 + $0x38] sm:$0xff]  ;;  %s1264_s10 = sshra.s32 %s944_s8, 4  ;;  %s1265_s10 = int_to_ptr.hbm [resolvable:$true] %s1264_s10 }
  0x48   : > { %1186 = vmatpush.bf16.msra.mxu2 %v1141_v33  ;;  %1187 = vmatpush.bf16.msra.mxu3 %v1141_v33  ;;  %s1266_s11 = scalar_lea.hbm %s1265_s10, 128  ;;  %p1271_p3 = scmp.lt.s32.totalorder %s1265_s10, %s1703_s5 }
  0x49   : > { %p1267_p0 = scmp.ne.s32.totalorder %s1265_s10, %s1266_s11  ;;  %p1272_p4 = scmp.lt.s32.totalorder %s1270_s14, %s1266_s11 }
  0x4b   : > { %607 = vmatpush.bf16.msra.mxu0 %v1140_v34  ;;  %1188 = vmatpush.bf16.msra.mxu1 %v1140_v34  ;;  %p1268_p1 = pnand %p1267_p0, %p1390_p6  ;;  %p1273_p5 = por %p1272_p4, %p1271_p3 }
  0x4c   : > { %1189 = vmatpush.bf16.msra.mxu2 %v1140_v34  ;;  %1190 = vmatpush.bf16.msra.mxu3 %v1140_v34 }
  0x4d   : > { %p1269_p2 = pneg %p1268_p1 }
  0x4f   : > { %608 = vmatpush.bf16.msra.mxu0 %v1139_v35  ;;  %1191 = vmatpush.bf16.msra.mxu1 %v1139_v35  ;;  %p1274_p7 = pnand %p1273_p5, %p1269_p2 }
  0x50   : > { %1192 = vmatpush.bf16.msra.mxu2 %v1139_v35  ;;  %1193 = vmatpush.bf16.msra.mxu3 %v1139_v35 }
  0x53   : > { %609 = vmatpush.bf16.msra.mxu0 %v1138_v36  ;;  %1194 = vmatpush.bf16.msra.mxu1 %v1138_v36 }
  0x54   : > { %1195 = vmatpush.bf16.msra.mxu2 %v1138_v36  ;;  %1196 = vmatpush.bf16.msra.mxu3 %v1138_v36 }
  0x57   : > { %610 = vmatpush.bf16.msra.mxu0 %v1137_v37  ;;  %1197 = vmatpush.bf16.msra.mxu1 %v1137_v37 }
  0x58   : > { %1198 = vmatpush.bf16.msra.mxu2 %v1137_v37  ;;  %1199 = vmatpush.bf16.msra.mxu3 %v1137_v37 }
  0x5b   : > { %611 = vmatpush.bf16.msra.mxu0 %v1136_v38  ;;  %1200 = vmatpush.bf16.msra.mxu1 %v1136_v38 }
  0x5c   : > { %1201 = vmatpush.bf16.msra.mxu2 %v1136_v38  ;;  %1202 = vmatpush.bf16.msra.mxu3 %v1136_v38 }
  0x5f   : > { %612 = vmatpush.bf16.msra.mxu0 %v1135_v39  ;;  %1203 = vmatpush.bf16.msra.mxu1 %v1135_v39 }
  0x60   : > { %1204 = vmatpush.bf16.msra.mxu2 %v1135_v39  ;;  %1205 = vmatpush.bf16.msra.mxu3 %v1135_v39 }
  0x62   : > { %613 = vmatmul.bf16.vlgmr.msra.gmra.mxu0 %v1127_v40  ;;  %623 = vmatmul.bf16.vlgmr.msra.gmra.mxu1 %v1129_v41 }
  0x63   : > { %633 = vmatmul.bf16.vlgmr.msra.gmra.mxu2 %v1131_v42  ;;  %643 = vmatmul.bf16.vlgmr.msra.gmra.mxu3 %v1133_v43 }
  0x72   : > { %618 = vmatmul.bf16.gmra.mxu0 %v1128_v44  ;;  %628 = vmatmul.bf16.gmra.mxu1 %v1130_v45 }
  0x73   : > { %638 = vmatmul.bf16.gmra.mxu2 %v1132_v46  ;;  %648 = vmatmul.bf16.gmra.mxu3 %v1134_v47 }
  0xdf   : > { %v1493_v48 = vpop.f32.mrf.mxu0  ;;  %v1495_v49 = vpop.f32.mrf.mxu1 }
  0xe6   : > { %v1499_v51 = vpop.f32.mrf.mxu2  ;;  %v1505_v54 = vpop.f32.mrf.mxu3 }
  0xe7   : > { %v1497_v50 = vpop.f32.mrf.mxu0  ;;  %v1501_v52 = vpop.f32.mrf.mxu1 }
  0xe8   : > { %v670_v56 = vadd.f32 %v1497_v50, %v1493_v48 }
  0xee   : > { %v1507_v55 = vpop.f32.mrf.mxu2  ;;  %v1518_v62 = vpop.f32.mrf.mxu3 }
  0xef   : > { %v1503_v53 = vpop.f32.mrf.mxu0  ;;  %v1511_v57 = vpop.f32.mrf.mxu1 }
  0xf0   : > { %v671_v58 = vadd.f32 %v670_v56, %v1503_v53 }
  0xf6   : > { %v1521_v0 = vpop.f32.mrf.mxu2  ;;  %v1529_v6 = vpop.f32.mrf.mxu3 }
  0xf7   : > { %v1514_v59 = vpop.f32.mrf.mxu0  ;;  %v1524_v2 = vpop.f32.mrf.mxu1 }
  0xf8   : > { %v672_v60 = vadd.f32 %v671_v58, %v1514_v59 }
  0xfa   : > { %v673_v61 = vadd.f32 %v672_v60, %v1495_v49 }
  0xfc   : > { %v674_v63 = vadd.f32 %v673_v61, %v1501_v52 }
  0xfe   : > { %v675_v1 = vadd.f32 %v674_v63, %v1511_v57  ;;  %v1532_v8 = vpop.f32.mrf.mxu2  ;;  %v1538_v13 = vpop.f32.mrf.mxu3 }
 0x100   : > { %v676_v3 = vadd.f32 %v675_v1, %v1524_v2 }
 0x102   : > { %v677_v4 = vadd.f32 %v676_v3, %v1499_v51 }
 0x104   : > { %v678_v5 = vadd.f32 %v677_v4, %v1507_v55 }
 0x106   : > { %v679_v7 = vadd.f32 %v678_v5, %v1521_v0 }
 0x108   : > { %v680_v9 = vadd.f32 %v679_v7, %v1532_v8 }
 0x10a   : > { %v681_v10 = vadd.f32 %v680_v9, %v1505_v54 }
 0x10c   : > { %v682_v11 = vadd.f32 %v681_v10, %v1518_v62 }
 0x10e   : > { %v683_v12 = vadd.f32 %v682_v11, %v1529_v6 }
 0x110   : > { %v684_v14 = vadd.f32 %v683_v12, %v1538_v13 }
 0x112   : > { %v685_v15 = vrot.slane %v684_v14, 4 }
 0x114   : > { %v686_v16 = vadd.f32 %v685_v15, %v684_v14 }
 0x116   : > { %v687_v17 = vrot.slane %v686_v16, 2 }
 0x118   : > { %v688_v18 = vadd.f32 %v687_v17, %v686_v16 }
 0x11a   : > { %v689_v19 = vrot.slane %v688_v18, 1 }
 0x11c   : > { %v690_v20 = vadd.f32 %v689_v19, %v688_v18 }
 0x11e   : > { %v1541_v21 = vmul.f32 0.0078125, %v690_v20 }
 0x120   : > { %v709_v22 = vsub.f32 %v1493_v48, %v1541_v21  ;;  %v710_v23 = vsub.f32 %v1497_v50, %v1541_v21  ;;  %v711_v24 = vsub.f32 %v1503_v53, %v1541_v21  ;;  %v712_v27 = vsub.f32 %v1514_v59, %v1541_v21 }
 0x121   : > { %v713_v28 = vsub.f32 %v1495_v49, %v1541_v21  ;;  %v714_v31 = vsub.f32 %v1501_v52, %v1541_v21  ;;  %v715_v34 = vsub.f32 %v1511_v57, %v1541_v21  ;;  %v716_v37 = vsub.f32 %v1524_v2, %v1541_v21 }
 0x122   : > { %v725_v25 = vmul.f32 %v709_v22, %v709_v22  ;;  %v726_v26 = vmul.f32 %v710_v23, %v710_v23  ;;  %v727_v29 = vmul.f32 %v711_v24, %v711_v24  ;;  %v728_v32 = vmul.f32 %v712_v27, %v712_v27 }
 0x123   : > { %v729_v35 = vmul.f32 %v713_v28, %v713_v28  ;;  %v730_v38 = vmul.f32 %v714_v31, %v714_v31  ;;  %v717_v40 = vsub.f32 %v1499_v51, %v1541_v21  ;;  %v731_v41 = vmul.f32 %v715_v34, %v715_v34 }
 0x124   : > { %v741_v30 = vadd.f32 %v726_v26, %v725_v25  ;;  %v718_v43 = vsub.f32 %v1507_v55, %v1541_v21  ;;  %v732_v44 = vmul.f32 %v716_v37, %v716_v37  ;;  %v719_v46 = vsub.f32 %v1521_v0, %v1541_v21  ;;  %v776_v37 = vld [vmem:[%s473_s12] sm:$0x1] }
 0x125   : > { %v733_v47 = vmul.f32 %v717_v40, %v717_v40  ;;  %v720_v58 = vsub.f32 %v1532_v8, %v1541_v21  ;;  %v721_v63 = vsub.f32 %v1505_v54, %v1541_v21  ;;  %v722_v4 = vsub.f32 %v1518_v62, %v1541_v21  ;;  %v778_v40 = vld [vmem:[%s476_s15] sm:$0x1] }
 0x126   : > { %v742_v33 = vadd.f32 %v741_v30, %v727_v29  ;;  %v734_v60 = vmul.f32 %v718_v43, %v718_v43  ;;  %v735_v1 = vmul.f32 %v719_v46, %v719_v46  ;;  %v723_v9 = vsub.f32 %v1529_v6, %v1541_v21  ;;  %v1175_v43 = vld [vmem:[%s436_s16 + $0x8] sm:$0xff]   ;;  %v1588_v46 = vld [vmem:[%s436_s16 + $0x18] sm:$0xff]  }
 0x127   : > { %v736_v5 = vmul.f32 %v720_v58, %v720_v58  ;;  %v737_v10 = vmul.f32 %v721_v63, %v721_v63  ;;  %v724_v12 = vsub.f32 %v1538_v13, %v1541_v21  ;;  %v738_v14 = vmul.f32 %v722_v4, %v722_v4  ;;  %v1592_v58 = vld [vmem:[%s436_s16 + $0x28] sm:$0xff]  }
 0x128   : > { %v743_v36 = vadd.f32 %v742_v33, %v728_v32  ;;  %v739_v16 = vmul.f32 %v723_v9, %v723_v9  ;;  %v1149_v63 = vunpack.c.l.bf16 %v1175_v43  ;;  %v1158_v9 = vunpack.c.h.bf16 %v1588_v46 }
 0x129   : > { %v740_v18 = vmul.f32 %v724_v12, %v724_v12 }
 0x12a   : > { %v744_v39 = vadd.f32 %v743_v36, %v729_v35 }
 0x12c   : > { %v745_v42 = vadd.f32 %v744_v39, %v730_v38 }
 0x12e   : > { %v746_v45 = vadd.f32 %v745_v42, %v731_v41  ;;  %v1144_v42 = vld [vmem:[%s436_s16] sm:$0xff]  }
 0x130   : > { %v747_v56 = vadd.f32 %v746_v45, %v732_v44  ;;  %v1586_v45 = vld [vmem:[%s436_s16 + $0x10] sm:$0xff]  }
 0x131   : > { %v1153_v4 = vunpack.c.l.bf16 %v1586_v45 }
 0x132   : > { %v748_v61 = vadd.f32 %v747_v56, %v733_v47  ;;  %v1145_v47 = vunpack.c.l.bf16 %v1144_v42  ;;  %v1590_v56 = vld [vmem:[%s436_s16 + $0x20] sm:$0xff]  }
 0x133   : > { %v1162_v12 = vunpack.c.h.bf16 %v1590_v56 }
 0x134   : > { %v749_v3 = vadd.f32 %v748_v61, %v734_v60  ;;  %v1146_v61 = vunpack.c.h.bf16 %v1144_v42 }
 0x136   : > { %v750_v7 = vadd.f32 %v749_v3, %v735_v1  ;;  %v1150_v1 = vunpack.c.h.bf16 %v1175_v43  ;;  %v1594_v3 = vld [vmem:[%s436_s16 + $0x30] sm:$0xff]  }
 0x138   : > { %v751_v11 = vadd.f32 %v750_v7, %v736_v5  ;;  %v1154_v5 = vunpack.c.h.bf16 %v1586_v45  ;;  %v1157_v7 = vunpack.c.l.bf16 %v1588_v46 }
 0x13a   : > { %v752_v15 = vadd.f32 %v751_v11, %v737_v10  ;;  %v1161_v11 = vunpack.c.l.bf16 %v1590_v56 }
 0x13c   : > { %v753_v17 = vadd.f32 %v752_v15, %v738_v14  ;;  %v1165_v14 = vunpack.c.l.bf16 %v1592_v58  ;;  %v1166_v15 = vunpack.c.h.bf16 %v1592_v58 }
 0x13e   : > { %v754_v19 = vadd.f32 %v753_v17, %v739_v16  ;;  %v1169_v16 = vunpack.c.l.bf16 %v1594_v3  ;;  %v1170_v17 = vunpack.c.h.bf16 %v1594_v3 }
 0x140   : > { %v755_v20 = vadd.f32 %v754_v19, %v740_v18 }
 0x142   : > { %v756_v22 = vrot.slane %v755_v20, 4 }
 0x144   : > { %v757_v23 = vadd.f32 %v756_v22, %v755_v20 }
 0x146   : > { %v758_v24 = vrot.slane %v757_v23, 2 }
 0x148   : > { %v759_v25 = vadd.f32 %v758_v24, %v757_v23 }
 0x14a   : > { %v760_v26 = vrot.slane %v759_v25, 1 }
 0x14c   : > { %v761_v27 = vadd.f32 %v760_v26, %v759_v25 }
 0x14e   : > { %v763_v28 = vmul.f32 0.0078125, %v761_v27 }
 0x150   : > { %v764_v29 = vmax.f32 %v763_v28, 0.0 }
 0x152   : > { %v765_v30 = vadd.f32 1e-05, %v764_v29 }
 0x154   : > { %1248 = vrsqrt.f32 %v765_v30  ;;  %vm772_vm1 = vweird.f32 %v765_v30 }
 0x15a   : > { %v1249_v31 = vpop.eup %1248 }
 0x15b   : > { %v767_v32 = vmul.f32 %v1249_v31, %v765_v30  ;;  %vm773_vm0 = vweird.f32 %v1249_v31 }
 0x15c   : > { %vm774_vm2 = vmor %vm772_vm1, %vm773_vm0 }
 0x15d   : > { %v768_v33 = vmul.f32 %v1249_v31, %v767_v32 }
 0x15f   : > { %v769_v34 = vmul.f32 0.5, %v768_v33 }
 0x161   : > { %v770_v35 = vsub.f32 1.5, %v769_v34 }
 0x163   : > { %v771_v36 = vmul.f32 %v1249_v31, %v770_v35 }
 0x165   : > { %v775_v38 = vsel %vm774_vm2, %v1249_v31, %v771_v36 }
 0x166   : > { %v777_v39 = vmul.f32 %v776_v37, %v775_v38 }
 0x168   : > { %v779_v41 = vmul.f32 %v777_v39, %v1541_v21  ;;  %v781_v60 = vperm.slane %v777_v39, 0  ;;  %v1596_v21 = vld [vmem:[%s436_s16 + $0x38] sm:$0xff]  }
 0x169   : > { %v1173_v18 = vunpack.c.l.bf16 %v1596_v21  ;;  %v1174_v23 = vunpack.c.h.bf16 %v1596_v21 }
 0x16a   : > { %v780_v44 = vsub.f32 %v778_v40, %v779_v41  ;;  %v782_v19 = vmul.f32 %v781_v60, %v1493_v48  ;;  %v783_v20 = vmul.f32 %v781_v60, %v1497_v50  ;;  %v784_v22 = vmul.f32 %v781_v60, %v1503_v53 }
 0x16b   : > { %v785_v24 = vmul.f32 %v781_v60, %v1514_v59  ;;  %v786_v25 = vmul.f32 %v781_v60, %v1495_v49  ;;  %v787_v26 = vmul.f32 %v781_v60, %v1501_v52  ;;  %v788_v27 = vmul.f32 %v781_v60, %v1511_v57 }
 0x16c   : > { %v799_v10 = vperm.slane %v780_v44, 0  ;;  %v789_v28 = vmul.f32 %v781_v60, %v1524_v2  ;;  %v790_v29 = vmul.f32 %v781_v60, %v1499_v51  ;;  %v791_v50 = vmul.f32 %v781_v60, %v1507_v55 }
 0x16d   : > { %v792_v53 = vmul.f32 %v781_v60, %v1521_v0  ;;  %v793_v31 = vmul.f32 %v781_v60, %v1532_v8  ;;  %v794_v49 = vmul.f32 %v781_v60, %v1505_v54  ;;  %v795_v52 = vmul.f32 %v781_v60, %v1518_v62 }
 0x16e   : > { %v801_v30 = vadd.f32 %v799_v10, %v782_v19  ;;  %v802_v48 = vadd.f32 %v799_v10, %v783_v20  ;;  %v803_v59 = vadd.f32 %v799_v10, %v784_v22  ;;  %v804_v32 = vadd.f32 %v799_v10, %v785_v24 }
 0x16f   : > { %v805_v57 = vadd.f32 %v799_v10, %v786_v25  ;;  %v796_v2 = vmul.f32 %v781_v60, %v1529_v6  ;;  %v797_v51 = vmul.f32 %v781_v60, %v1538_v13  ;;  %v806_v33 = vadd.f32 %v799_v10, %v787_v26 }
 0x170   : > { %v807_v34 = vadd.f32 %v799_v10, %v788_v27  ;;  %v808_v35 = vadd.f32 %v799_v10, %v789_v28  ;;  %v809_v55 = vadd.f32 %v799_v10, %v790_v29  ;;  %v849_v36 = vadd.f32 %v1145_v47, %v801_v30 }
 0x171   : > { %v850_v37 = vadd.f32 %v1146_v61, %v802_v48  ;;  %v810_v0 = vadd.f32 %v799_v10, %v791_v50  ;;  %v811_v8 = vadd.f32 %v799_v10, %v792_v53  ;;  %v812_v38 = vadd.f32 %v799_v10, %v793_v31 }
 0x172   : > { %v851_v39 = vadd.f32 %v1149_v63, %v803_v59  ;;  %v813_v54 = vadd.f32 %v799_v10, %v794_v49  ;;  %v814_v40 = vadd.f32 %v799_v10, %v795_v52  ;;  %v852_v62 = vadd.f32 %v1150_v1, %v804_v32 }
 0x173   : > { %v853_v41 = vadd.f32 %v1153_v4, %v805_v57  ;;  %v815_v42 = vadd.f32 %v799_v10, %v796_v2  ;;  %v816_v43 = vadd.f32 %v799_v10, %v797_v51  ;;  %v854_v6 = vadd.f32 %v1154_v5, %v806_v33 }
 0x174   : > { %v855_v44 = vadd.f32 %v1157_v7, %v807_v34  ;;  %v856_v13 = vadd.f32 %v1158_v9, %v808_v35  ;;  %v857_v45 = vadd.f32 %v1161_v11, %v809_v55  ;;  %vm865_vm3 = vcmp.gt.f32.partialorder %v849_v36, 0.0 }
 0x175   : > { %vm866_vm4 = vcmp.gt.f32.partialorder %v850_v37, 0.0  ;;  %v858_v46 = vadd.f32 %v1162_v12, %v810_v0  ;;  %v881_v47 = vmul.f32 0.01, %v849_v36  ;;  %v882_v56 = vmul.f32 0.01, %v850_v37 }
 0x176   : > { %v883_v58 = vmul.f32 0.01, %v851_v39  ;;  %v859_v60 = vadd.f32 %v1165_v14, %v811_v8  ;;  %vm867_vm5 = vcmp.gt.f32.partialorder %v851_v39, 0.0  ;;  %v884_v61 = vmul.f32 0.01, %v852_v62 }
 0x177   : > { %v885_v63 = vmul.f32 0.01, %v853_v41  ;;  %vm868_vm6 = vcmp.gt.f32.partialorder %v852_v62, 0.0  ;;  %vm869_vm7 = vcmp.gt.f32.partialorder %v853_v41, 0.0  ;;  %v886_v1 = vmul.f32 0.01, %v854_v6 }
 0x178   : > { %v897_v4 = vsel %vm865_vm3, %v849_v36, %v881_v47  ;;  %v860_v10 = vadd.f32 %v1166_v15, %v812_v38  ;;  %vm870_vm8 = vcmp.gt.f32.partialorder %v854_v6, 0.0  ;;  %v887_v5 = vmul.f32 0.01, %v855_v44 }
 0x179   : > { %v898_v7 = vsel %vm866_vm4, %v850_v37, %v882_v56  ;;  %913 = vst [vmem:[%s1630_s17] sm:$0xff] %v897_v4  ;;  %v861_v9 = vadd.f32 %v1169_v16, %v813_v54  ;;  %vm871_vm9 = vcmp.gt.f32.partialorder %v855_v44, 0.0  ;;  %v888_v11 = vmul.f32 0.01, %v856_v13 }
 0x17a   : > { %v899_v12 = vsel %vm867_vm5, %v851_v39, %v883_v58  ;;  %vm872_vm10 = vcmp.gt.f32.partialorder %v856_v13, 0.0  ;;  %v889_v14 = vmul.f32 0.01, %v857_v45  ;;  %v900_v15 = vsel %vm868_vm6, %v852_v62, %v884_v61  ;;  %914 = vst [vmem:[%s1630_s17 + $0x8] sm:$0xff] %v898_v7 }
 0x17b   : > { %v901_v19 = vsel %vm869_vm7, %v853_v41, %v885_v63  ;;  %v862_v20 = vadd.f32 %v1170_v17, %v814_v40  ;;  %vm873_vm11 = vcmp.gt.f32.partialorder %v857_v45, 0.0  ;;  %v890_v22 = vmul.f32 0.01, %v858_v46  ;;  %915 = vst [vmem:[%s1630_s17 + $0x10] sm:$0xff] %v899_v12 }
 0x17c   : > { %v902_v16 = vsel %vm870_vm8, %v854_v6, %v886_v1  ;;  %v863_v24 = vadd.f32 %v1173_v18, %v815_v42  ;;  %vm874_vm12 = vcmp.gt.f32.partialorder %v858_v46, 0.0  ;;  %v891_v25 = vmul.f32 0.01, %v859_v60  ;;  %916 = vst [vmem:[%s1630_s17 + $0x18] sm:$0xff] %v900_v15 }
 0x17d   : > { %v903_v26 = vsel %vm871_vm9, %v855_v44, %v887_v5  ;;  %v864_v3 = vadd.f32 %v1174_v23, %v816_v43  ;;  %vm875_vm13 = vcmp.gt.f32.partialorder %v859_v60, 0.0  ;;  %v892_v17 = vmul.f32 0.01, %v860_v10  ;;  %917 = vst [vmem:[%s1630_s17 + $0x20] sm:$0xff] %v901_v19 }
 0x17e   : > { %v904_v27 = vsel %vm872_vm10, %v856_v13, %v888_v11  ;;  %vm876_vm14 = vcmp.gt.f32.partialorder %v860_v10, 0.0  ;;  %v893_v28 = vmul.f32 0.01, %v861_v9  ;;  %v905_v18 = vsel %vm873_vm11, %v857_v45, %v889_v14  ;;  %918 = vst [vmem:[%s1630_s17 + $0x28] sm:$0xff] %v902_v16 }
 0x17f   : > { %vm877_vm15 = vcmp.gt.f32.partialorder %v861_v9, 0.0  ;;  %v894_v29 = vmul.f32 0.01, %v862_v20  ;;  %v906_v30 = vsel %vm874_vm12, %v858_v46, %v890_v22  ;;  %919 = vst [vmem:[%s1630_s17 + $0x30] sm:$0xff] %v903_v26  ;;  %vm878_vm0 = vcmp.gt.f32.partialorder %v862_v20, 0.0 }
 0x180   : > { %v895_v21 = vmul.f32 0.01, %v863_v24  ;;  %v907_v23 = vsel %vm875_vm13, %v859_v60, %v891_v25  ;;  %920 = vst [vmem:[%s1630_s17 + $0x38] sm:$0xff] %v904_v27  ;;  %vm879_vm1 = vcmp.gt.f32.partialorder %v863_v24, 0.0  ;;  %v896_v48 = vmul.f32 0.01, %v864_v3 }
 0x181   : > { %v908_v50 = vsel %vm876_vm14, %v860_v10, %v892_v17  ;;  %921 = vst [vmem:[%s1630_s17 + $0x40] sm:$0xff] %v905_v18  ;;  %vm880_vm2 = vcmp.gt.f32.partialorder %v864_v3, 0.0  ;;  %v909_v53 = vsel %vm877_vm15, %v861_v9, %v893_v28  ;;  %v910_v31 = vsel %vm878_vm0, %v862_v20, %v894_v29 }
 0x182   : > { %922 = vst [vmem:[%s1630_s17 + $0x48] sm:$0xff] %v906_v30  ;;  %v911_v59 = vsel %vm879_vm1, %v863_v24, %v895_v21  ;;  %v912_v49 = vsel %vm880_vm2, %v864_v3, %v896_v48 }
 0x183   : > { %923 = vst [vmem:[%s1630_s17 + $0x50] sm:$0xff] %v907_v23 }
 0x184   : > { %924 = vst [vmem:[%s1630_s17 + $0x58] sm:$0xff] %v908_v50 }
 0x185   : > { %925 = vst [vmem:[%s1630_s17 + $0x60] sm:$0xff] %v909_v53 }
 0x186   : > { %926 = vst [vmem:[%s1630_s17 + $0x68] sm:$0xff] %v910_v31 }
 0x187   : > { %927 = vst [vmem:[%s1630_s17 + $0x70] sm:$0xff] %v911_v59 }
 0x188   : > { %928 = vst [vmem:[%s1630_s17 + $0x78] sm:$0xff] %v912_v49 }
 0x189   : > { %1277 = shalt.err (!%p1274_p7)
}
 0x18a   : > { %s1314_s26 = smov 128   ;;  %s1315_s28 = smov 256  }
 0x18b   : > { %s1316_s17 = smov 8  }
 0x18c   : > { %1206 = dma.vmem_to_hbm [thread:$0]  (%p1390_p6), %s942_s7, 2048, %s944_s8, %s930_s9, %s1314_s26, %s1315_s28, %s1316_s17  }
 0x18d PF: > { %s958_s23 = sand.u32 1, %s1300_s18   ;;  %p1209_p10 = pnand %p1050_p9, %p1394_p8 }
 0x18e   : > { %s959_s22 = scalar_lea.sflag [#allocation6], %s958_s23 }
 0x18f   : > { %p1210_p11 = pneg %p1209_p10 }
 0x191   : > { %1295 = dma.done.wait (%p1210_p11), %s959_s22, 2048  }
 0x192   : > { %1297 = vsyncadd (%p1210_p11), %s959_s22, 4294965248  ;;  %p15_p12 = scmp.ge.s32.totalorder %s1372_s24, 4   ;;  %s1707_s18 = smov %s1304_s19 }
 0x193   : > { %s1708_s19 = smov %s1308_s20  ;;  %s1709_s20 = smov %s1384_s27 }
 0x194   : > { %s1710_s21 = smov %s1372_s24  ;;  %17 = sbr.rel (!%p15_p12) target bundleno = 3 (0x3), region = 176 }
 0x199   :  { %965 = vsyncpa [#allocation6], 1 }
 0x19a   :  { %967 = vsyncpa [#allocation6 + $0x1], 1 }

// kernel: _lambda_.4
= control target key start
LH: loop header
LB: loop body
LE: loop exit
PB: predicated region body
PF: predicated region fallthrough
CT: control target
= control target key end

     0   :  { %vm162_vm0 = vcmask 523264   ;;  %s3238_s1 = inlined_call_operand.vmem [shape: bf16[64,128], index: 1, kind: input, shape index: {}]   ;;  %s3239_s0 = inlined_call_operand.vmem [shape: bf16[512,64], index: 0, kind: input, shape index: {}]   ;;  %s3240_s2 = inlined_call_operand.vmem [shape: f32[1,128], index: 2, kind: input, shape index: {}]   ;;  %s3241_s3 = inlined_call_operand.vmem [shape: f32[1,128], index: 3, kind: input, shape index: {}]   ;;  %s3242_s4 = inlined_call_operand.vmem [shape: bf16[512,128], index: 4, kind: output, shape index: {}]  }
   0x1   :  { %v1774_v0 = vld [vmem:[%s3238_s1 + $0x18] sm:$0xff]  ;;  %v1773_v2 = vld [vmem:[%s3238_s1 + $0x10] sm:$0xff]  ;;  %v1772_v4 = vld [vmem:[%s3238_s1 + $0x8] sm:$0xff] }
   0x2   :  { %v1794_v1 = vld [vmem:[%s3238_s1 + $0x18] sm:$0xff]  ;;  %215 = vmatpush.bf16.msra.mxu0 %v1774_v0  ;;  %v1793_v3 = vld [vmem:[%s3238_s1 + $0x10] sm:$0xff]  ;;  %1986 = vmatpush.bf16.msra.mxu2 %v1774_v0  ;;  %v1792_v5 = vld [vmem:[%s3238_s1 + $0x8] sm:$0xff] }
   0x3   :  { %567 = vmatpush.bf16.msra.mxu1 %v1794_v1  ;;  %1990 = vmatpush.bf16.msra.mxu3 %v1794_v1  ;;  %v1771_v6 = vld [vmem:[%s3238_s1] sm:$0xff]  ;;  %v1756_v12 = vld [vmem:[%s3239_s0 + $0x8] sm:$0xff]  ;;  %v1757_v16 = vld [vmem:[%s3239_s0 + $0x10] sm:$0xff] }
   0x4   :  { %v1791_v7 = vld [vmem:[%s3238_s1] sm:$0xff]  ;;  %v1776_v13 = vld [vmem:[%s3239_s0 + $0x88] sm:$0xff]  ;;  %v1777_v17 = vld [vmem:[%s3239_s0 + $0x90] sm:$0xff] }
   0x5   :  { %v1755_v8 = vld [vmem:[%s3239_s0] sm:$0xff]  ;;  %v1764_v14 = vld [vmem:[%s3239_s0 + $0x48] sm:$0xff]  ;;  %v1765_v18 = vld [vmem:[%s3239_s0 + $0x50] sm:$0xff] }
   0x6   :  { %216 = vmatpush.bf16.msra.mxu0 %v1773_v2  ;;  %1987 = vmatpush.bf16.msra.mxu2 %v1773_v2  ;;  %v1775_v9 = vld [vmem:[%s3239_s0 + $0x80] sm:$0xff]  ;;  %v1784_v15 = vld [vmem:[%s3239_s0 + $0xc8] sm:$0xff]  ;;  %v1785_v19 = vld [vmem:[%s3239_s0 + $0xd0] sm:$0xff] }
   0x7   :  { %568 = vmatpush.bf16.msra.mxu1 %v1793_v3  ;;  %1991 = vmatpush.bf16.msra.mxu3 %v1793_v3  ;;  %v1763_v10 = vld [vmem:[%s3239_s0 + $0x40] sm:$0xff]  ;;  %v1758_v20 = vld [vmem:[%s3239_s0 + $0x18] sm:$0xff]  ;;  %v1760_v28 = vld [vmem:[%s3239_s0 + $0x28] sm:$0xff] }
   0x8   :  { %v1783_v11 = vld [vmem:[%s3239_s0 + $0xc0] sm:$0xff]  ;;  %v1778_v21 = vld [vmem:[%s3239_s0 + $0x98] sm:$0xff]  ;;  %v1780_v29 = vld [vmem:[%s3239_s0 + $0xa8] sm:$0xff] }
   0x9   :  { %v1766_v22 = vld [vmem:[%s3239_s0 + $0x58] sm:$0xff]  ;;  %v1759_v24 = vld [vmem:[%s3239_s0 + $0x20] sm:$0xff]  ;;  %v1768_v30 = vld [vmem:[%s3239_s0 + $0x68] sm:$0xff] }
   0xa   :  { %217 = vmatpush.bf16.msra.mxu0 %v1772_v4  ;;  %1988 = vmatpush.bf16.msra.mxu2 %v1772_v4  ;;  %v1786_v23 = vld [vmem:[%s3239_s0 + $0xd8] sm:$0xff]  ;;  %v1779_v25 = vld [vmem:[%s3239_s0 + $0xa0] sm:$0xff]  ;;  %v1788_v31 = vld [vmem:[%s3239_s0 + $0xe8] sm:$0xff] }
   0xb   :  { %569 = vmatpush.bf16.msra.mxu1 %v1792_v5  ;;  %1992 = vmatpush.bf16.msra.mxu3 %v1792_v5  ;;  %v1767_v26 = vld [vmem:[%s3239_s0 + $0x60] sm:$0xff]  ;;  %v1761_v32 = vld [vmem:[%s3239_s0 + $0x30] sm:$0xff]  ;;  %v1762_v36 = vld [vmem:[%s3239_s0 + $0x38] sm:$0xff] }
   0xc   :  { %v1787_v27 = vld [vmem:[%s3239_s0 + $0xe0] sm:$0xff]  ;;  %v1781_v33 = vld [vmem:[%s3239_s0 + $0xb0] sm:$0xff]  ;;  %v1782_v37 = vld [vmem:[%s3239_s0 + $0xb8] sm:$0xff] }
   0xd   :  { %v1769_v34 = vld [vmem:[%s3239_s0 + $0x70] sm:$0xff]  ;;  %v1770_v38 = vld [vmem:[%s3239_s0 + $0x78] sm:$0xff] }
   0xe   :  { %218 = vmatpush.bf16.msra.mxu0 %v1771_v6  ;;  %1989 = vmatpush.bf16.msra.mxu2 %v1771_v6  ;;  %v1789_v35 = vld [vmem:[%s3239_s0 + $0xf0] sm:$0xff]  ;;  %v1790_v39 = vld [vmem:[%s3239_s0 + $0xf8] sm:$0xff] }
   0xf   :  { %570 = vmatpush.bf16.msra.mxu1 %v1791_v7  ;;  %1993 = vmatpush.bf16.msra.mxu3 %v1791_v7 }
  0x11   :  { %1579 = vmatmul.msk.bf16.vlgmr.msra.gmra.mxu0 %vm162_vm0, %v1755_v8  ;;  %1587 = vmatmul.msk.bf16.vlgmr.msra.gmra.mxu2 %vm162_vm0, %v1763_v10 }
  0x12   :  { %1707 = vmatmul.msk.bf16.vlgmr.msra.gmra.mxu1 %vm162_vm0, %v1775_v9  ;;  %1715 = vmatmul.msk.bf16.vlgmr.msra.gmra.mxu3 %vm162_vm0, %v1783_v11 }
  0x21   :  { %1580 = vmatmul.msk.bf16.gmra.mxu0 %vm162_vm0, %v1756_v12  ;;  %1588 = vmatmul.msk.bf16.gmra.mxu2 %vm162_vm0, %v1764_v14 }
  0x22   :  { %1708 = vmatmul.msk.bf16.gmra.mxu1 %vm162_vm0, %v1776_v13  ;;  %1716 = vmatmul.msk.bf16.gmra.mxu3 %vm162_vm0, %v1784_v15 }
  0x31   :  { %1581 = vmatmul.msk.bf16.gmra.mxu0 %vm162_vm0, %v1757_v16  ;;  %1589 = vmatmul.msk.bf16.gmra.mxu2 %vm162_vm0, %v1765_v18 }
  0x32   :  { %1709 = vmatmul.msk.bf16.gmra.mxu1 %vm162_vm0, %v1777_v17  ;;  %1717 = vmatmul.msk.bf16.gmra.mxu3 %vm162_vm0, %v1785_v19 }
  0x41   :  { %1582 = vmatmul.msk.bf16.gmra.mxu0 %vm162_vm0, %v1758_v20  ;;  %1590 = vmatmul.msk.bf16.gmra.mxu2 %vm162_vm0, %v1766_v22 }
  0x42   :  { %1710 = vmatmul.msk.bf16.gmra.mxu1 %vm162_vm0, %v1778_v21  ;;  %1718 = vmatmul.msk.bf16.gmra.mxu3 %vm162_vm0, %v1786_v23 }
  0x51   :  { %1583 = vmatmul.msk.bf16.gmra.mxu0 %vm162_vm0, %v1759_v24  ;;  %1591 = vmatmul.msk.bf16.gmra.mxu2 %vm162_vm0, %v1767_v26 }
  0x52   :  { %1711 = vmatmul.msk.bf16.gmra.mxu1 %vm162_vm0, %v1779_v25  ;;  %1719 = vmatmul.msk.bf16.gmra.mxu3 %vm162_vm0, %v1787_v27 }
  0x61   :  { %1584 = vmatmul.msk.bf16.gmra.mxu0 %vm162_vm0, %v1760_v28  ;;  %1592 = vmatmul.msk.bf16.gmra.mxu2 %vm162_vm0, %v1768_v30 }
  0x62   :  { %1712 = vmatmul.msk.bf16.gmra.mxu1 %vm162_vm0, %v1780_v29  ;;  %1720 = vmatmul.msk.bf16.gmra.mxu3 %vm162_vm0, %v1788_v31 }
  0x71   :  { %1585 = vmatmul.msk.bf16.gmra.mxu0 %vm162_vm0, %v1761_v32  ;;  %1593 = vmatmul.msk.bf16.gmra.mxu2 %vm162_vm0, %v1769_v34 }
  0x72   :  { %1713 = vmatmul.msk.bf16.gmra.mxu1 %vm162_vm0, %v1781_v33  ;;  %1721 = vmatmul.msk.bf16.gmra.mxu3 %vm162_vm0, %v1789_v35 }
  0x81   :  { %1586 = vmatmul.msk.bf16.gmra.mxu0 %vm162_vm0, %v1762_v36  ;;  %1594 = vmatmul.msk.bf16.gmra.mxu2 %vm162_vm0, %v1770_v38 }
  0x82   :  { %1714 = vmatmul.msk.bf16.gmra.mxu1 %vm162_vm0, %v1782_v37  ;;  %1722 = vmatmul.msk.bf16.gmra.mxu3 %vm162_vm0, %v1790_v39 }
  0x8e   :  { %v2173_v40 = vpop.f32.mrf.mxu0 }
  0x8f   :  { %v2175_v41 = vpop.f32.mrf.mxu1 }
  0x90   :  { %3292 = vst [vmem:[#allocation3_spill] sm:$0xff] %v2175_v41 }
  0x94   :  { %v2177_v42 = vpop.f32.mrf.mxu2 }
  0x95   :  { %v2179_v43 = vpop.f32.mrf.mxu3 }
  0x96   :  { %3293 = vst [vmem:[#allocation4_spill] sm:$0xff] %v2179_v43  ;;  %v2181_v44 = vpop.f32.mrf.mxu0 }
  0x97   :  { %v2183_v45 = vpop.f32.mrf.mxu1  ;;  %v332_v20 = vadd.f32 %v2181_v44, %v2173_v40 }
  0x98   :  { %3294 = vst [vmem:[#allocation5_spill] sm:$0xff] %v2183_v45  ;;  %v685_v21 = vadd.f32 %v2183_v45, %v2175_v41 }
  0x9c   :  { %v2185_v46 = vpop.f32.mrf.mxu2 }
  0x9d   :  { %v2187_v47 = vpop.f32.mrf.mxu3 }
  0x9e   :  { %3295 = vst [vmem:[#allocation6_spill] sm:$0xff] %v2187_v47  ;;  %v2189_v48 = vpop.f32.mrf.mxu0 }
  0x9f   :  { %v2191_v49 = vpop.f32.mrf.mxu1  ;;  %v333_v22 = vadd.f32 %v332_v20, %v2189_v48 }
  0xa0   :  { %3296 = vst [vmem:[#allocation7_spill] sm:$0xff] %v2191_v49  ;;  %v686_v23 = vadd.f32 %v685_v21, %v2191_v49 }
  0xa4   :  { %v2193_v50 = vpop.f32.mrf.mxu2 }
  0xa5   :  { %v2195_v51 = vpop.f32.mrf.mxu3 }
  0xa6   :  { %3297 = vst [vmem:[#allocation8_spill] sm:$0xff] %v2195_v51  ;;  %v2197_v52 = vpop.f32.mrf.mxu0 }
  0xa7   :  { %v2199_v53 = vpop.f32.mrf.mxu1  ;;  %v334_v26 = vadd.f32 %v333_v22, %v2197_v52 }
  0xa8   :  { %3298 = vst [vmem:[#allocation9_spill] sm:$0xff] %v2199_v53  ;;  %v687_v27 = vadd.f32 %v686_v23, %v2199_v53 }
  0xac   :  { %v2201_v54 = vpop.f32.mrf.mxu2 }
  0xad   :  { %v2203_v55 = vpop.f32.mrf.mxu3 }
  0xae   :  { %3299 = vst [vmem:[#allocation10_spill] sm:$0xff] %v2203_v55  ;;  %v2205_v56 = vpop.f32.mrf.mxu0 }
  0xaf   :  { %v2207_v57 = vpop.f32.mrf.mxu1  ;;  %v335_v28 = vadd.f32 %v334_v26, %v2205_v56 }
  0xb0   :  { %v688_v29 = vadd.f32 %v687_v27, %v2207_v57 }
  0xb4   :  { %v2213_v60 = vpop.f32.mrf.mxu2 }
  0xb5   :  { %v2215_v61 = vpop.f32.mrf.mxu3 }
  0xb6   :  { %v2209_v58 = vpop.f32.mrf.mxu0  ;;  %3300 = vst [vmem:[#allocation11_spill] sm:$0xff] %v2215_v61 }
  0xb7   :  { %v2211_v59 = vpop.f32.mrf.mxu1  ;;  %v336_v30 = vadd.f32 %v335_v28, %v2209_v58 }
  0xb8   :  { %v689_v31 = vadd.f32 %v688_v29, %v2211_v59 }
  0xbc   :  { %v2221_v0 = vpop.f32.mrf.mxu2 }
  0xbd   :  { %v2223_v1 = vpop.f32.mrf.mxu3 }
  0xbe   :  { %v2217_v62 = vpop.f32.mrf.mxu0  ;;  %3301 = vst [vmem:[#allocation12_spill] sm:$0xff] %v2223_v1 }
  0xbf   :  { %v2219_v63 = vpop.f32.mrf.mxu1  ;;  %v337_v34 = vadd.f32 %v336_v30, %v2217_v62 }
  0xc0   :  { %v690_v35 = vadd.f32 %v689_v31, %v2219_v63 }
  0xc4   :  { %v2229_v4 = vpop.f32.mrf.mxu2 }
  0xc5   :  { %v2231_v5 = vpop.f32.mrf.mxu3 }
  0xc6   :  { %v2225_v2 = vpop.f32.mrf.mxu0  ;;  %3303 = vst [vmem:[#allocation14_spill] sm:$0xff] %v2231_v5 }
  0xc7   :  { %v2227_v3 = vpop.f32.mrf.mxu1  ;;  %v338_v38 = vadd.f32 %v337_v34, %v2225_v2 }
  0xc8   :  { %3302 = vst [vmem:[#allocation13_spill] sm:$0xff] %v2227_v3  ;;  %v691_v39 = vadd.f32 %v690_v35, %v2227_v3 }
  0xcc   :  { %v2237_v8 = vpop.f32.mrf.mxu2 }
  0xcd   :  { %v2239_v9 = vpop.f32.mrf.mxu3 }
  0xce   :  { %v2233_v6 = vpop.f32.mrf.mxu0  ;;  %3305 = vst [vmem:[#allocation16_spill] sm:$0xff] %v2239_v9 }
  0xcf   :  { %v2235_v7 = vpop.f32.mrf.mxu1  ;;  %v339_v20 = vadd.f32 %v338_v38, %v2233_v6 }
  0xd0   :  { %3304 = vst [vmem:[#allocation15_spill] sm:$0xff] %v2235_v7  ;;  %v692_v21 = vadd.f32 %v691_v39, %v2235_v7 }
  0xd4   :  { %v2249_v14 = vpop.f32.mrf.mxu2 }
  0xd5   :  { %v2251_v15 = vpop.f32.mrf.mxu3 }
  0xd6   :  { %v2241_v10 = vpop.f32.mrf.mxu0  ;;  %3308 = vst [vmem:[#allocation19_spill] sm:$0xff] %v2251_v15 }
  0xd7   :  { %v2243_v11 = vpop.f32.mrf.mxu1  ;;  %v340_v22 = vadd.f32 %v339_v20, %v2241_v10 }
  0xd8   :  { %3306 = vst [vmem:[#allocation17_spill] sm:$0xff] %v2243_v11  ;;  %v693_v23 = vadd.f32 %v692_v21, %v2243_v11 }
  0xdc   :  { %v2257_v18 = vpop.f32.mrf.mxu2 }
  0xdd   :  { %v2259_v19 = vpop.f32.mrf.mxu3 }
  0xde   :  { %v2245_v12 = vpop.f32.mrf.mxu0  ;;  %3310 = vst [vmem:[#allocation21_spill] sm:$0xff] %v2259_v19 }
  0xdf   :  { %v2247_v13 = vpop.f32.mrf.mxu1  ;;  %v341_v26 = vadd.f32 %v340_v22, %v2245_v12 }
  0xe0   :  { %3307 = vst [vmem:[#allocation18_spill] sm:$0xff] %v2247_v13  ;;  %v694_v27 = vadd.f32 %v693_v23, %v2247_v13 }
  0xe4   :  { %v2277_v32 = vpop.f32.mrf.mxu2 }
  0xe5   :  { %v2279_v33 = vpop.f32.mrf.mxu3 }
  0xe6   :  { %v2253_v16 = vpop.f32.mrf.mxu0  ;;  %3312 = vst [vmem:[#allocation23_spill] sm:$0xff] %v2279_v33 }
  0xe7   :  { %v2255_v17 = vpop.f32.mrf.mxu1  ;;  %v342_v34 = vadd.f32 %v341_v26, %v2253_v16 }
  0xe8   :  { %3309 = vst [vmem:[#allocation20_spill] sm:$0xff] %v2255_v17  ;;  %v695_v35 = vadd.f32 %v694_v27, %v2255_v17 }
  0xec   :  { %v2295_v28 = vpop.f32.mrf.mxu2 }
  0xed   :  { %v2297_v29 = vpop.f32.mrf.mxu3 }
  0xee   :  { %v2267_v24 = vpop.f32.mrf.mxu0  ;;  %3314 = vst [vmem:[#allocation25_spill] sm:$0xff] %v2297_v29 }
  0xef   :  { %v2269_v25 = vpop.f32.mrf.mxu1  ;;  %v343_v38 = vadd.f32 %v342_v34, %v2267_v24 }
  0xf0   :  { %3311 = vst [vmem:[#allocation22_spill] sm:$0xff] %v2269_v25  ;;  %v696_v39 = vadd.f32 %v695_v35, %v2269_v25 }
  0xf4   :  { %v2317_v17 = vpop.f32.mrf.mxu2 }
  0xf5   :  { %v2319_v34 = vpop.f32.mrf.mxu3 }
  0xf6   :  { %v2283_v36 = vpop.f32.mrf.mxu0  ;;  %3317 = vst [vmem:[#allocation28_spill] sm:$0xff] %v2319_v34 }
  0xf7   :  { %v2285_v37 = vpop.f32.mrf.mxu1  ;;  %v344_v20 = vadd.f32 %v343_v38, %v2283_v36 }
  0xf8   :  { %3313 = vst [vmem:[#allocation24_spill] sm:$0xff] %v2285_v37  ;;  %v697_v21 = vadd.f32 %v696_v39, %v2285_v37 }
  0xfc   :  { %v2331_v25 = vpop.f32.mrf.mxu2 }
  0xfe   :  { %v2299_v30 = vpop.f32.mrf.mxu0 }
  0xff   :  { %v2301_v31 = vpop.f32.mrf.mxu1  ;;  %v345_v22 = vadd.f32 %v344_v20, %v2299_v30 }
 0x100   :  { %3315 = vst [vmem:[#allocation26_spill] sm:$0xff] %v2301_v31  ;;  %v698_v23 = vadd.f32 %v697_v21, %v2301_v31 }
 0x106   :  { %v2311_v13 = vpop.f32.mrf.mxu0 }
 0x107   :  { %v2313_v11 = vpop.f32.mrf.mxu1  ;;  %v346_v26 = vadd.f32 %v345_v22, %v2311_v13 }
 0x108   :  { %3316 = vst [vmem:[#allocation27_spill] sm:$0xff] %v2313_v11  ;;  %v699_v27 = vadd.f32 %v698_v23, %v2313_v11 }
 0x109   :  { %v347_v35 = vadd.f32 %v346_v26, %v2177_v42  ;;  %v2333_v26 = vpop.f32.mrf.mxu3 }
 0x10a   :  { %v700_v38 = vadd.f32 %v699_v27, %v2179_v43  ;;  %3318 = vst [vmem:[#allocation29_spill] sm:$0xff] %v2333_v26 }
 0x10b   :  { %v348_v39 = vadd.f32 %v347_v35, %v2185_v46 }
 0x10c   :  { %v701_v20 = vadd.f32 %v700_v38, %v2187_v47 }
 0x10d   :  { %v349_v21 = vadd.f32 %v348_v39, %v2193_v50 }
 0x10e   :  { %v702_v31 = vadd.f32 %v701_v20, %v2195_v51 }
 0x10f   :  { %v350_v22 = vadd.f32 %v349_v21, %v2201_v54 }
 0x110   :  { %v703_v23 = vadd.f32 %v702_v31, %v2203_v55  ;;  %v2345_v55 = vpop.f32.mrf.mxu2 }
 0x111   :  { %v351_v11 = vadd.f32 %v350_v22, %v2213_v60 }
 0x112   :  { %v704_v37 = vadd.f32 %v703_v23, %v2215_v61 }
 0x113   :  { %v352_v27 = vadd.f32 %v351_v11, %v2221_v0  ;;  %v2347_v11 = vpop.f32.mrf.mxu3 }
 0x114   :  { %v705_v35 = vadd.f32 %v704_v37, %v2223_v1  ;;  %3319 = vst [vmem:[#allocation30_spill] sm:$0xff] %v2347_v11 }
 0x115   :  { %v353_v38 = vadd.f32 %v352_v27, %v2229_v4 }
 0x116   :  { %v706_v39 = vadd.f32 %v705_v35, %v2231_v5 }
 0x117   :  { %v354_v20 = vadd.f32 %v353_v38, %v2237_v8 }
 0x118   :  { %v707_v31 = vadd.f32 %v706_v39, %v2239_v9 }
 0x119   :  { %v355_v21 = vadd.f32 %v354_v20, %v2249_v14 }
 0x11a   :  { %v708_v22 = vadd.f32 %v707_v31, %v2251_v15  ;;  %v2359_v15 = vpop.f32.mrf.mxu2 }
 0x11b   :  { %v356_v23 = vadd.f32 %v355_v21, %v2257_v18 }
 0x11c   :  { %v709_v61 = vadd.f32 %v708_v22, %v2259_v19 }
 0x11d   :  { %v357_v37 = vadd.f32 %v356_v23, %v2277_v32  ;;  %v2361_v23 = vpop.f32.mrf.mxu3 }
 0x11e   :  { %v710_v27 = vadd.f32 %v709_v61, %v2279_v33  ;;  %3320 = vst [vmem:[#allocation31_spill] sm:$0xff] %v2361_v23 }
 0x11f   :  { %v358_v35 = vadd.f32 %v357_v37, %v2295_v28 }
 0x120   :  { %v711_v38 = vadd.f32 %v710_v27, %v2297_v29 }
 0x121   :  { %v359_v39 = vadd.f32 %v358_v35, %v2317_v17 }
 0x122   :  { %v712_v20 = vadd.f32 %v711_v38, %v2319_v34 }
 0x123   :  { %v360_v31 = vadd.f32 %v359_v39, %v2331_v25 }
 0x124   :  { %v713_v21 = vadd.f32 %v712_v20, %v2333_v26 }
 0x125   :  { %v361_v22 = vadd.f32 %v360_v31, %v2345_v55 }
 0x126   :  { %v714_v19 = vadd.f32 %v713_v21, %v2347_v11 }
 0x127   :  { %v362_v61 = vadd.f32 %v361_v22, %v2359_v15 }
 0x128   :  { %v715_v37 = vadd.f32 %v714_v19, %v2361_v23 }
 0x129   :  { %v363_v27 = vrot.slane %v362_v61, 4 }
 0x12a   :  { %v716_v35 = vrot.slane %v715_v37, 4 }
 0x12b   :  { %v364_v29 = vadd.f32 %v363_v27, %v362_v61 }
 0x12c   :  { %v717_v38 = vadd.f32 %v716_v35, %v715_v37 }
 0x12d   :  { %v365_v34 = vrot.slane %v364_v29, 2 }
 0x12e   :  { %v718_v39 = vrot.slane %v717_v38, 2 }
 0x12f   :  { %v366_v33 = vadd.f32 %v365_v34, %v364_v29 }
 0x130   :  { %v719_v20 = vadd.f32 %v718_v39, %v717_v38 }
 0x131   :  { %v367_v26 = vrot.slane %v366_v33, 1 }
 0x132   :  { %v720_v31 = vrot.slane %v719_v20, 1 }
 0x133   :  { %v368_v9 = vadd.f32 %v367_v26, %v366_v33 }
 0x134   :  { %v721_v21 = vadd.f32 %v720_v31, %v719_v20 }
 0x136   :  { %v722_v11 = vadd.f32 %v721_v21, %v368_v9 }
 0x138   :  { %v2365_v5 = vmul.f32 0.001953125, %v722_v11 }
 0x13a   :  { %v756_v22 = vsub.f32 %v2173_v40, %v2365_v5  ;;  %v757_v19 = vsub.f32 %v2181_v44, %v2365_v5  ;;  %v758_v61 = vsub.f32 %v2189_v48, %v2365_v5  ;;  %v759_v29 = vsub.f32 %v2197_v52, %v2365_v5 }
 0x13b   :  { %v760_v33 = vsub.f32 %v2205_v56, %v2365_v5  ;;  %v761_v26 = vsub.f32 %v2209_v58, %v2365_v5  ;;  %v762_v38 = vsub.f32 %v2217_v62, %v2365_v5  ;;  %v763_v31 = vsub.f32 %v2225_v2, %v2365_v5 }
 0x13c   :  { %v788_v37 = vmul.f32 %v756_v22, %v756_v22  ;;  %v789_v27 = vmul.f32 %v757_v19, %v757_v19  ;;  %v790_v9 = vmul.f32 %v758_v61, %v758_v61  ;;  %v791_v11 = vmul.f32 %v759_v29, %v759_v29 }
 0x13d   :  { %v792_v39 = vmul.f32 %v760_v33, %v760_v33  ;;  %v793_v21 = vmul.f32 %v761_v26, %v761_v26  ;;  %v764_v19 = vsub.f32 %v2233_v6, %v2365_v5  ;;  %v794_v61 = vmul.f32 %v762_v38, %v762_v38 }
 0x13e   :  { %v820_v34 = vadd.f32 %v789_v27, %v788_v37  ;;  %v765_v27 = vsub.f32 %v2241_v10, %v2365_v5  ;;  %v795_v29 = vmul.f32 %v763_v31, %v763_v31  ;;  %v891_v33 = vsub.f32 %v2183_v45, %v2365_v5 }
 0x13f   :  { %v766_v26 = vsub.f32 %v2245_v12, %v2365_v5  ;;  %v767_v38 = vsub.f32 %v2253_v16, %v2365_v5  ;;  %v892_v31 = vsub.f32 %v2191_v49, %v2365_v5 }
 0x140   :  { %v821_v35 = vadd.f32 %v820_v34, %v790_v9  ;;  %v890_v34 = vsub.f32 %v2175_v41, %v2365_v5  ;;  %v893_v41 = vsub.f32 %v2199_v53, %v2365_v5  ;;  %v771_v53 = vsub.f32 %v2311_v13, %v2365_v5 }
 0x142   :  { %v822_v20 = vadd.f32 %v821_v35, %v791_v11  ;;  %v796_v11 = vmul.f32 %v764_v19, %v764_v19  ;;  %v769_v19 = vsub.f32 %v2283_v36, %v2365_v5 }
 0x144   :  { %v823_v22 = vadd.f32 %v822_v20, %v792_v39  ;;  %v797_v39 = vmul.f32 %v765_v27, %v765_v27  ;;  %v894_v27 = vsub.f32 %v2207_v57, %v2365_v5 }
 0x146   :  { %v824_v37 = vadd.f32 %v823_v22, %v793_v21  ;;  %v922_v21 = vmul.f32 %v890_v34, %v890_v34  ;;  %v923_v22 = vmul.f32 %v891_v33, %v891_v33  ;;  %v770_v34 = vsub.f32 %v2299_v30, %v2365_v5 }
 0x148   :  { %v825_v9 = vadd.f32 %v824_v37, %v794_v61  ;;  %v768_v61 = vsub.f32 %v2267_v24, %v2365_v5  ;;  %v798_v37 = vmul.f32 %v766_v26, %v766_v26  ;;  %v895_v26 = vsub.f32 %v2211_v59, %v2365_v5 }
 0x14a   :  { %v826_v35 = vadd.f32 %v825_v9, %v795_v29  ;;  %v799_v29 = vmul.f32 %v767_v38, %v767_v38  ;;  %v800_v33 = vmul.f32 %v768_v61, %v768_v61  ;;  %v801_v38 = vmul.f32 %v769_v19, %v769_v19 }
 0x14b   :  { %v802_v61 = vmul.f32 %v770_v34, %v770_v34  ;;  %v803_v19 = vmul.f32 %v771_v53, %v771_v53 }
 0x14c   :  { %v827_v20 = vadd.f32 %v826_v35, %v796_v11  ;;  %v924_v11 = vmul.f32 %v892_v31, %v892_v31  ;;  %v954_v35 = vadd.f32 %v923_v22, %v922_v21  ;;  %v926_v31 = vmul.f32 %v894_v27, %v894_v27 }
 0x14d   :  { %v772_v22 = vsub.f32 %v2177_v42, %v2365_v5 }
 0x14e   :  { %v828_v45 = vadd.f32 %v827_v20, %v797_v39  ;;  %v925_v39 = vmul.f32 %v893_v41, %v893_v41  ;;  %v955_v20 = vadd.f32 %v954_v35, %v924_v11  ;;  %v927_v41 = vmul.f32 %v895_v26, %v895_v26 }
 0x14f   :  { %v773_v35 = vsub.f32 %v2185_v46, %v2365_v5  ;;  %v804_v34 = vmul.f32 %v772_v22, %v772_v22 }
 0x150   :  { %v829_v9 = vadd.f32 %v828_v45, %v798_v37  ;;  %v896_v37 = vsub.f32 %v2219_v63, %v2365_v5  ;;  %v956_v21 = vadd.f32 %v955_v20, %v925_v39  ;;  %v774_v20 = vsub.f32 %v2193_v50, %v2365_v5 }
 0x151   :  { %v805_v53 = vmul.f32 %v773_v35, %v773_v35 }
 0x152   :  { %v830_v49 = vadd.f32 %v829_v9, %v799_v29  ;;  %v897_v9 = vsub.f32 %v2227_v3, %v2365_v5  ;;  %v957_v11 = vadd.f32 %v956_v21, %v926_v31  ;;  %v928_v27 = vmul.f32 %v896_v37, %v896_v37 }
 0x153   :  { %v775_v21 = vsub.f32 %v2201_v54, %v2365_v5  ;;  %v806_v22 = vmul.f32 %v774_v20, %v774_v20 }
 0x154   :  { %v831_v45 = vadd.f32 %v830_v49, %v800_v33  ;;  %v898_v33 = vsub.f32 %v2235_v7, %v2365_v5  ;;  %v958_v39 = vadd.f32 %v957_v11, %v927_v41  ;;  %v929_v26 = vmul.f32 %v897_v9, %v897_v9 }
 0x155   :  { %v776_v11 = vsub.f32 %v2213_v60, %v2365_v5  ;;  %v807_v35 = vmul.f32 %v775_v21, %v775_v21 }
 0x156   :  { %v832_v29 = vadd.f32 %v831_v45, %v801_v38  ;;  %v3321_v45 = vld [vmem:[#allocation17_spill] sm:$0xff]  ;;  %v959_v31 = vadd.f32 %v958_v39, %v928_v27  ;;  %v930_v37 = vmul.f32 %v898_v33, %v898_v33  ;;  %v777_v39 = vsub.f32 %v2221_v0, %v2365_v5 }
 0x157   :  { %v899_v3 = vsub.f32 %v3321_v45, %v2365_v5  ;;  %v808_v20 = vmul.f32 %v776_v11, %v776_v11 }
 0x158   :  { %v833_v49 = vadd.f32 %v832_v29, %v802_v61  ;;  %v3322_v29 = vld [vmem:[#allocation18_spill] sm:$0xff]  ;;  %v960_v41 = vadd.f32 %v959_v31, %v929_v26  ;;  %v778_v31 = vsub.f32 %v2229_v4, %v2365_v5  ;;  %v809_v21 = vmul.f32 %v777_v39, %v777_v39 }
 0x159   :  { %v900_v7 = vsub.f32 %v3322_v29, %v2365_v5  ;;  %v931_v9 = vmul.f32 %v899_v3, %v899_v3 }
 0x15a   :  { %v834_v38 = vadd.f32 %v833_v49, %v803_v19  ;;  %v3323_v49 = vld [vmem:[#allocation20_spill] sm:$0xff]  ;;  %v961_v27 = vadd.f32 %v960_v41, %v930_v37  ;;  %v779_v41 = vsub.f32 %v2237_v8, %v2365_v5  ;;  %v810_v11 = vmul.f32 %v778_v31, %v778_v31 }
 0x15b   :  { %v901_v45 = vsub.f32 %v3323_v49, %v2365_v5  ;;  %v932_v33 = vmul.f32 %v900_v7, %v900_v7 }
 0x15c   :  { %v835_v61 = vadd.f32 %v834_v38, %v804_v34  ;;  %v3324_v38 = vld [vmem:[#allocation22_spill] sm:$0xff]  ;;  %v962_v26 = vadd.f32 %v961_v27, %v931_v9  ;;  %v780_v27 = vsub.f32 %v2249_v14, %v2365_v5  ;;  %v811_v39 = vmul.f32 %v779_v41, %v779_v41 }
 0x15d   :  { %v902_v29 = vsub.f32 %v3324_v38, %v2365_v5  ;;  %v933_v3 = vmul.f32 %v901_v45, %v901_v45 }
 0x15e   :  { %v836_v19 = vadd.f32 %v835_v61, %v805_v53  ;;  %v3325_v61 = vld [vmem:[#allocation24_spill] sm:$0xff]  ;;  %v963_v37 = vadd.f32 %v962_v26, %v932_v33  ;;  %v781_v26 = vsub.f32 %v2257_v18, %v2365_v5  ;;  %v812_v31 = vmul.f32 %v780_v27, %v780_v27 }
 0x15f   :  { %v903_v49 = vsub.f32 %v3325_v61, %v2365_v5  ;;  %v934_v7 = vmul.f32 %v902_v29, %v902_v29 }
 0x160   :  { %v837_v34 = vadd.f32 %v836_v19, %v806_v22  ;;  %v3326_v19 = vld [vmem:[#allocation26_spill] sm:$0xff]  ;;  %v964_v9 = vadd.f32 %v963_v37, %v933_v3  ;;  %v782_v37 = vsub.f32 %v2277_v32, %v2365_v5  ;;  %v813_v41 = vmul.f32 %v781_v26, %v781_v26 }
 0x161   :  { %v904_v38 = vsub.f32 %v3326_v19, %v2365_v5  ;;  %v935_v45 = vmul.f32 %v903_v49, %v903_v49 }
 0x162   :  { %v838_v53 = vadd.f32 %v837_v34, %v807_v35  ;;  %v3327_v34 = vld [vmem:[#allocation27_spill] sm:$0xff]  ;;  %v965_v33 = vadd.f32 %v964_v9, %v934_v7  ;;  %v783_v9 = vsub.f32 %v2295_v28, %v2365_v5  ;;  %v814_v27 = vmul.f32 %v782_v37, %v782_v37 }
 0x163   :  { %v905_v61 = vsub.f32 %v3327_v34, %v2365_v5  ;;  %v936_v29 = vmul.f32 %v904_v38, %v904_v38  ;;  %v911_v37 = vsub.f32 %v2223_v1, %v2365_v5 }
 0x164   :  { %v839_v22 = vadd.f32 %v838_v53, %v808_v20  ;;  %v906_v53 = vsub.f32 %v2179_v43, %v2365_v5  ;;  %v966_v3 = vadd.f32 %v965_v33, %v935_v45  ;;  %v784_v33 = vsub.f32 %v2317_v17, %v2365_v5 }
 0x165   :  { %v937_v49 = vmul.f32 %v905_v61, %v905_v61  ;;  %v815_v26 = vmul.f32 %v783_v9, %v783_v9  ;;  %v3330_v9 = vld [vmem:[#allocation14_spill] sm:$0xff] }
 0x166   :  { %v840_v35 = vadd.f32 %v839_v22, %v809_v21  ;;  %v907_v22 = vsub.f32 %v2187_v47, %v2365_v5  ;;  %v967_v7 = vadd.f32 %v966_v3, %v936_v29  ;;  %v938_v38 = vmul.f32 %v906_v53, %v906_v53 }
 0x167   :  { %v785_v3 = vsub.f32 %v2331_v25, %v2365_v5 }
 0x168   :  { %v841_v20 = vadd.f32 %v840_v35, %v810_v11  ;;  %v908_v35 = vsub.f32 %v2195_v51, %v2365_v5  ;;  %v968_v45 = vadd.f32 %v967_v7, %v937_v49  ;;  %v939_v61 = vmul.f32 %v907_v22, %v907_v22 }
 0x169   :  { %v816_v7 = vmul.f32 %v784_v33, %v784_v33  ;;  %v786_v22 = vsub.f32 %v2345_v55, %v2365_v5 }
 0x16a   :  { %v842_v21 = vadd.f32 %v841_v20, %v811_v39  ;;  %v3328_v20 = vld [vmem:[#allocation10_spill] sm:$0xff]  ;;  %v969_v29 = vadd.f32 %v968_v45, %v938_v38  ;;  %v940_v53 = vmul.f32 %v908_v35, %v908_v35  ;;  %v817_v38 = vmul.f32 %v785_v3, %v785_v3  ;;  %v3331_v35 = vld [vmem:[#allocation16_spill] sm:$0xff] }
 0x16b   :  { %v909_v47 = vsub.f32 %v3328_v20, %v2365_v5  ;;  %v913_v33 = vsub.f32 %v3331_v35, %v2365_v5 }
 0x16c   :  { %v843_v11 = vadd.f32 %v842_v21, %v812_v31  ;;  %v3329_v21 = vld [vmem:[#allocation11_spill] sm:$0xff]  ;;  %v970_v49 = vadd.f32 %v969_v29, %v939_v61  ;;  %v943_v61 = vmul.f32 %v911_v37, %v911_v37 }
 0x16d   :  { %v910_v51 = vsub.f32 %v3329_v21, %v2365_v5 }
 0x16e   :  { %v844_v39 = vadd.f32 %v843_v11, %v813_v41  ;;  %v941_v41 = vmul.f32 %v909_v47, %v909_v47  ;;  %v971_v11 = vadd.f32 %v970_v49, %v940_v53  ;;  %v787_v47 = vsub.f32 %v2359_v15, %v2365_v5 }
 0x170   :  { %v845_v31 = vadd.f32 %v844_v39, %v814_v27  ;;  %v912_v27 = vsub.f32 %v3330_v9, %v2365_v5  ;;  %v942_v39 = vmul.f32 %v910_v51, %v910_v51  ;;  %v972_v20 = vadd.f32 %v971_v11, %v941_v41 }
 0x171   :  { %v945_v41 = vmul.f32 %v913_v33, %v913_v33  ;;  %v3337_v33 = vld [vmem:[#allocation29_spill] sm:$0xff] }
 0x172   :  { %v846_v43 = vadd.f32 %v845_v31, %v815_v26  ;;  %v973_v29 = vadd.f32 %v972_v20, %v942_v39  ;;  %v818_v26 = vmul.f32 %v786_v22, %v786_v22  ;;  %v3332_v31 = vld [vmem:[#allocation19_spill] sm:$0xff]  ;;  %v944_v3 = vmul.f32 %v912_v27, %v912_v27  ;;  %v3335_v22 = vld [vmem:[#allocation25_spill] sm:$0xff]  ;;  %v3336_v27 = vld [vmem:[#allocation28_spill] sm:$0xff] }
 0x173   :  { %v914_v53 = vsub.f32 %v3332_v31, %v2365_v5  ;;  %v917_v9 = vsub.f32 %v3335_v22, %v2365_v5 }
 0x174   :  { %v847_v45 = vadd.f32 %v846_v43, %v816_v7  ;;  %v974_v43 = vadd.f32 %v973_v29, %v943_v61  ;;  %v3333_v7 = vld [vmem:[#allocation21_spill] sm:$0xff] }
 0x175   :  { %v915_v51 = vsub.f32 %v3333_v7, %v2365_v5  ;;  %v946_v20 = vmul.f32 %v914_v53, %v914_v53  ;;  %v3338_v53 = vld [vmem:[#allocation30_spill] sm:$0xff] }
 0x176   :  { %v848_v21 = vadd.f32 %v847_v45, %v817_v38  ;;  %v975_v11 = vadd.f32 %v974_v43, %v944_v3  ;;  %v819_v38 = vmul.f32 %v787_v47, %v787_v47  ;;  %v3334_v45 = vld [vmem:[#allocation23_spill] sm:$0xff]  ;;  %v919_v47 = vsub.f32 %v3337_v33, %v2365_v5 }
 0x177   :  { %v916_v37 = vsub.f32 %v3334_v45, %v2365_v5  ;;  %v947_v1 = vmul.f32 %v915_v51, %v915_v51  ;;  %v949_v3 = vmul.f32 %v917_v9, %v917_v9  ;;  %v921_v51 = vsub.f32 %v2361_v23, %v2365_v5 }
 0x178   :  { %v849_v49 = vadd.f32 %v848_v21, %v818_v26  ;;  %v976_v39 = vadd.f32 %v975_v11, %v945_v41  ;;  %v918_v21 = vsub.f32 %v3336_v27, %v2365_v5  ;;  %v920_v41 = vsub.f32 %v3338_v53, %v2365_v5 }
 0x179   :  { %v948_v61 = vmul.f32 %v916_v37, %v916_v37 }
 0x17a   :  { %v850_v35 = vadd.f32 %v849_v49, %v819_v38  ;;  %v977_v31 = vadd.f32 %v976_v39, %v946_v20  ;;  %v950_v49 = vmul.f32 %v918_v21, %v918_v21  ;;  %v951_v20 = vmul.f32 %v919_v47, %v919_v47 }
 0x17b   :  { %v952_v27 = vmul.f32 %v920_v41, %v920_v41 }
 0x17c   :  { %v978_v29 = vadd.f32 %v977_v31, %v947_v1  ;;  %v851_v26 = vrot.slane %v850_v35, 4  ;;  %v953_v31 = vmul.f32 %v921_v51, %v921_v51 }
 0x17e   :  { %v979_v43 = vadd.f32 %v978_v29, %v948_v61  ;;  %v852_v38 = vadd.f32 %v851_v26, %v850_v35 }
 0x180   :  { %v980_v11 = vadd.f32 %v979_v43, %v949_v3  ;;  %v853_v1 = vrot.slane %v852_v38, 2 }
 0x182   :  { %v981_v39 = vadd.f32 %v980_v11, %v950_v49  ;;  %v854_v33 = vadd.f32 %v853_v1, %v852_v38 }
 0x184   :  { %v982_v37 = vadd.f32 %v981_v39, %v951_v20  ;;  %v855_v29 = vrot.slane %v854_v33, 1 }
 0x186   :  { %v983_v22 = vadd.f32 %v982_v37, %v952_v27  ;;  %v856_v21 = vadd.f32 %v855_v29, %v854_v33 }
 0x188   :  { %v984_v45 = vadd.f32 %v983_v22, %v953_v31 }
 0x18a   :  { %v985_v9 = vrot.slane %v984_v45, 4 }
 0x18c   :  { %v986_v61 = vadd.f32 %v985_v9, %v984_v45 }
 0x18e   :  { %v987_v7 = vrot.slane %v986_v61, 2 }
 0x190   :  { %v988_v53 = vadd.f32 %v987_v7, %v986_v61  ;;  %v1005_v7 = vld [vmem:[%s3240_s2] sm:$0x1] }
 0x192   :  { %v989_v3 = vrot.slane %v988_v53, 1 }
 0x194   :  { %v990_v35 = vadd.f32 %v989_v3, %v988_v53 }
 0x196   :  { %v991_v26 = vadd.f32 %v990_v35, %v856_v21 }
 0x198   :  { %v992_v43 = vmul.f32 0.001953125, %v991_v26 }
 0x19a   :  { %v993_v23 = vmax.f32 %v992_v43, 0.0 }
 0x19c   :  { %v994_v47 = vadd.f32 1e-05, %v993_v23  ;;  %v1007_v23 = vld [vmem:[%s3241_s3] sm:$0x1] }
 0x19e   :  { %1994 = vrsqrt.f32 %v994_v47  ;;  %vm1001_vm2 = vweird.f32 %v994_v47 }
 0x1a4   :  { %v1995_v41 = vpop.eup %1994 }
 0x1a5   :  { %v996_v49 = vmul.f32 %v1995_v41, %v994_v47  ;;  %vm1002_vm1 = vweird.f32 %v1995_v41 }
 0x1a6   :  { %vm1003_vm3 = vmor %vm1001_vm2, %vm1002_vm1 }
 0x1a7   :  { %v997_v11 = vmul.f32 %v1995_v41, %v996_v49 }
 0x1a9   :  { %v998_v51 = vmul.f32 0.5, %v997_v11 }
 0x1ab   :  { %v999_v27 = vsub.f32 1.5, %v998_v51 }
 0x1ad   :  { %v1000_v22 = vmul.f32 %v1995_v41, %v999_v27 }
 0x1af   :  { %v1004_v45 = vsel %vm1003_vm3, %v1995_v41, %v1000_v22 }
 0x1b0   :  { %v1006_v33 = vmul.f32 %v1005_v7, %v1004_v45 }
 0x1b2   :  { %v1008_v53 = vmul.f32 %v1006_v33, %v2365_v5  ;;  %v2502_v38 = vperm.slane %v1006_v33, 0 }
 0x1b4   :  { %v1009_v20 = vsub.f32 %v1007_v23, %v1008_v53  ;;  %v1011_v39 = vmul.f32 %v2502_v38, %v2173_v40  ;;  %v1012_v37 = vmul.f32 %v2502_v38, %v2181_v44  ;;  %v1013_v1 = vmul.f32 %v2502_v38, %v2189_v48 }
 0x1b5   :  { %v1014_v31 = vmul.f32 %v2502_v38, %v2197_v52  ;;  %v1015_v5 = vmul.f32 %v2502_v38, %v2205_v56  ;;  %v1016_v9 = vmul.f32 %v2502_v38, %v2209_v58  ;;  %v1017_v61 = vmul.f32 %v2502_v38, %v2217_v62 }
 0x1b6   :  { %v1018_v40 = vmul.f32 %v2502_v38, %v2225_v2  ;;  %v1019_v44 = vmul.f32 %v2502_v38, %v2233_v6  ;;  %v1020_v48 = vmul.f32 %v2502_v38, %v2241_v10  ;;  %v1021_v52 = vmul.f32 %v2502_v38, %v2245_v12 }
 0x1b7   :  { %v1022_v56 = vmul.f32 %v2502_v38, %v2253_v16  ;;  %v1023_v58 = vmul.f32 %v2502_v38, %v2267_v24  ;;  %v1024_v62 = vmul.f32 %v2502_v38, %v2283_v36  ;;  %v1025_v2 = vmul.f32 %v2502_v38, %v2299_v30 }
 0x1b8   :  { %v1026_v6 = vmul.f32 %v2502_v38, %v2311_v13  ;;  %v1027_v10 = vmul.f32 %v2502_v38, %v2177_v42  ;;  %v1028_v12 = vmul.f32 %v2502_v38, %v2185_v46  ;;  %v1029_v16 = vmul.f32 %v2502_v38, %v2193_v50 }
 0x1b9   :  { %v2542_v29 = vperm.slane %v1009_v20, 0  ;;  %v1030_v24 = vmul.f32 %v2502_v38, %v2201_v54  ;;  %v1031_v36 = vmul.f32 %v2502_v38, %v2213_v60  ;;  %v1032_v13 = vmul.f32 %v2502_v38, %v2221_v0 }
 0x1ba   :  { %v1033_v42 = vmul.f32 %v2502_v38, %v2229_v4  ;;  %v1034_v46 = vmul.f32 %v2502_v38, %v2237_v8  ;;  %v1035_v50 = vmul.f32 %v2502_v38, %v2249_v14  ;;  %v1036_v30 = vmul.f32 %v2502_v38, %v2257_v18 }
 0x1bb   :  { %3339 = vst [vmem:[#allocation26_spill] sm:$0xff] %v2542_v29  ;;  %v1037_v54 = vmul.f32 %v2502_v38, %v2277_v32  ;;  %v1038_v60 = vmul.f32 %v2502_v38, %v2295_v28  ;;  %v1039_v0 = vmul.f32 %v2502_v38, %v2317_v17  ;;  %v1040_v4 = vmul.f32 %v2502_v38, %v2331_v25 }
 0x1bc   :  { %v1041_v8 = vmul.f32 %v2502_v38, %v2345_v55  ;;  %v1042_v14 = vmul.f32 %v2502_v38, %v2359_v15  ;;  %v2571_v18 = vadd.f32 %v2542_v29, %v1011_v39  ;;  %v2574_v32 = vadd.f32 %v2542_v29, %v1012_v37 }
 0x1bd   :  { %v2577_v28 = vadd.f32 %v2542_v29, %v1013_v1  ;;  %v2580_v17 = vadd.f32 %v2542_v29, %v1014_v31  ;;  %v2583_v25 = vadd.f32 %v2542_v29, %v1015_v5  ;;  %v2586_v55 = vadd.f32 %v2542_v29, %v1016_v9 }
 0x1be   :  { %v2589_v15 = vadd.f32 %v2542_v29, %v1017_v61  ;;  %v2592_v21 = vadd.f32 %v2542_v29, %v1018_v40  ;;  %v2595_v3 = vadd.f32 %v2542_v29, %v1019_v44  ;;  %v2598_v35 = vadd.f32 %v2542_v29, %v1020_v48 }
 0x1bf   :  { %v2601_v26 = vadd.f32 %v2542_v29, %v1021_v52  ;;  %v2604_v43 = vadd.f32 %v2542_v29, %v1022_v56  ;;  %v2607_v47 = vadd.f32 %v2542_v29, %v1023_v58  ;;  %v2610_v41 = vadd.f32 %v2542_v29, %v1024_v62 }
 0x1c0   :  { %v2613_v49 = vadd.f32 %v2542_v29, %v1025_v2  ;;  %v2616_v11 = vadd.f32 %v2542_v29, %v1026_v6  ;;  %v2619_v51 = vadd.f32 %v2542_v29, %v1027_v10  ;;  %v2622_v27 = vadd.f32 %v2542_v29, %v1028_v12 }
 0x1c1   :  { %v2625_v22 = vadd.f32 %v2542_v29, %v1029_v16  ;;  %v2628_v45 = vadd.f32 %v2542_v29, %v1030_v24  ;;  %v2631_v7 = vadd.f32 %v2542_v29, %v1031_v36  ;;  %v2634_v33 = vadd.f32 %v2542_v29, %v1032_v13 }
 0x1c2   :  { %v2637_v53 = vadd.f32 %v2542_v29, %v1033_v42  ;;  %v2640_v23 = vadd.f32 %v2542_v29, %v1034_v46  ;;  %v2643_v20 = vadd.f32 %v2542_v29, %v1035_v50  ;;  %v2646_v39 = vadd.f32 %v2542_v29, %v1036_v30 }
 0x1c3   :  { %v2649_v37 = vadd.f32 %v2542_v29, %v1037_v54  ;;  %v2652_v1 = vadd.f32 %v2542_v29, %v1038_v60  ;;  %v2655_v31 = vadd.f32 %v2542_v29, %v1039_v0  ;;  %v2658_v5 = vadd.f32 %v2542_v29, %v1040_v4 }
 0x1c4   :  { %vm1078_vm4 = vcmp.gt.f32.partialorder %v2571_v18, 0.0  ;;  %vm1079_vm5 = vcmp.gt.f32.partialorder %v2574_v32, 0.0  ;;  %vm1080_vm6 = vcmp.gt.f32.partialorder %v2577_v28, 0.0  ;;  %vm1081_vm7 = vcmp.gt.f32.partialorder %v2580_v17, 0.0 }
 0x1c5   :  { %vm1082_vm8 = vcmp.gt.f32.partialorder %v2583_v25, 0.0  ;;  %vm1083_vm9 = vcmp.gt.f32.partialorder %v2586_v55, 0.0  ;;  %vm1084_vm10 = vcmp.gt.f32.partialorder %v2589_v15, 0.0  ;;  %vm1085_vm11 = vcmp.gt.f32.partialorder %v2592_v21, 0.0 }
 0x1c6   :  { %vm1086_vm12 = vcmp.gt.f32.partialorder %v2595_v3, 0.0  ;;  %vm1087_vm13 = vcmp.gt.f32.partialorder %v2598_v35, 0.0  ;;  %vm1088_vm14 = vcmp.gt.f32.partialorder %v2601_v26, 0.0  ;;  %vm1089_vm15 = vcmp.gt.f32.partialorder %v2604_v43, 0.0 }
 0x1c7   :  { %v1110_v9 = vmul.f32 0.01, %v2571_v18  ;;  %v1111_v61 = vmul.f32 0.01, %v2574_v32  ;;  %v1112_v40 = vmul.f32 0.01, %v2577_v28  ;;  %v2678_v44 = vadd.f32 %v2542_v29, %v1041_v8 }
 0x1c8   :  { %v1113_v48 = vmul.f32 0.01, %v2580_v17  ;;  %v1114_v52 = vmul.f32 0.01, %v2583_v25  ;;  %v1115_v56 = vmul.f32 0.01, %v2586_v55  ;;  %v2686_v58 = vadd.f32 %v2542_v29, %v1042_v14 }
 0x1c9   :  { %v1116_v62 = vmul.f32 0.01, %v2589_v15  ;;  %v1117_v2 = vmul.f32 0.01, %v2592_v21  ;;  %v1118_v6 = vmul.f32 0.01, %v2595_v3  ;;  %v1142_v24 = vsel %vm1078_vm4, %v2571_v18, %v1110_v9 }
 0x1ca   :  { %v1119_v10 = vmul.f32 0.01, %v2598_v35  ;;  %v1120_v12 = vmul.f32 0.01, %v2601_v26  ;;  %v1121_v16 = vmul.f32 0.01, %v2604_v43  ;;  %v1143_v46 = vsel %vm1079_vm5, %v2574_v32, %v1111_v61 }
 0x1cb   :  { %vm1098_vm0 = vcmp.gt.f32.partialorder %v2631_v7, 0.0  ;;  %v1122_v36 = vmul.f32 0.01, %v2607_v47  ;;  %v1123_v13 = vmul.f32 0.01, %v2610_v41  ;;  %vm1100_vm2 = vcmp.gt.f32.partialorder %v2637_v53, 0.0 }
 0x1cc   :  { %v1124_v42 = vmul.f32 0.01, %v2613_v49  ;;  %v1125_v50 = vmul.f32 0.01, %v2616_v11  ;;  %v1126_v30 = vmul.f32 0.01, %v2619_v51  ;;  %v1144_v60 = vsel %vm1080_vm6, %v2577_v28, %v1112_v40 }
 0x1cd   :  { %v1127_v54 = vmul.f32 0.01, %v2622_v27  ;;  %vm1102_vm4 = vcmp.gt.f32.partialorder %v2643_v20, 0.0  ;;  %v1128_v0 = vmul.f32 0.01, %v2625_v22  ;;  %v1145_v14 = vsel %vm1081_vm7, %v2580_v17, %v1113_v48 }
 0x1ce   :  { %v1129_v4 = vmul.f32 0.01, %v2628_v45  ;;  %v1130_v8 = vmul.f32 0.01, %v2631_v7  ;;  %vm1104_vm5 = vcmp.gt.f32.partialorder %v2649_v37, 0.0  ;;  %vm1105_vm3 = vcmp.gt.f32.partialorder %v2652_v1, 0.0 }
 0x1cf   :  { %v1131_v18 = vmul.f32 0.01, %v2634_v33  ;;  %v1132_v32 = vmul.f32 0.01, %v2637_v53  ;;  %v1133_v28 = vmul.f32 0.01, %v2640_v23  ;;  %v1146_v9 = vsel %vm1082_vm8, %v2583_v25, %v1114_v52 }
 0x1d0   :  { %vm1106_vm6 = vcmp.gt.f32.partialorder %v2655_v31, 0.0  ;;  %vm1107_vm1 = vcmp.gt.f32.partialorder %v2658_v5, 0.0  ;;  %v1134_v17 = vmul.f32 0.01, %v2643_v20  ;;  %v1147_v61 = vsel %vm1083_vm9, %v2586_v55, %v1115_v56 }
 0x1d1   :  { %v1148_v40 = vsel %vm1084_vm10, %v2589_v15, %v1116_v62  ;;  %v1149_v48 = vsel %vm1085_vm11, %v2592_v21, %v1117_v2  ;;  %vm1108_vm7 = vcmp.gt.f32.partialorder %v2678_v44, 0.0  ;;  %v1135_v25 = vmul.f32 0.01, %v2646_v39 }
 0x1d2   :  { %v1136_v52 = vmul.f32 0.01, %v2649_v37  ;;  %v1150_v29 = vsel %vm1086_vm12, %v2595_v3, %v1118_v6  ;;  %v1151_v55 = vsel %vm1087_vm13, %v2598_v35, %v1119_v10  ;;  %v1152_v15 = vsel %vm1088_vm14, %v2601_v26, %v1120_v12 }
 0x1d3   :  { %v1153_v21 = vsel %vm1089_vm15, %v2604_v43, %v1121_v16  ;;  %v1798_v56 = vpack.c.bf16 %v1143_v46, %v1142_v24  ;;  %v1803_v62 = vpack.c.bf16 %v1145_v14, %v1144_v60  ;;  %vm3340_vm8 = vcmp.gt.f32.partialorder %v2607_v47, 0.0 }
 0x1d4   :  { %v1154_v2 = vsel %vm3340_vm8, %v2607_v47, %v1122_v36  ;;  %vm3341_vm9 = vcmp.gt.f32.partialorder %v2610_v41, 0.0  ;;  %v1808_v6 = vpack.c.bf16 %v1147_v61, %v1146_v9  ;;  %v1813_v35 = vpack.c.bf16 %v1149_v48, %v1148_v40  ;;  %v3355_v48 = vld [vmem:[#allocation13_spill] sm:$0xff] }
 0x1d5   :  { %v1155_v3 = vsel %vm3341_vm9, %v2610_v41, %v1123_v13  ;;  %v1137_v10 = vmul.f32 0.01, %v2652_v1  ;;  %vm3342_vm10 = vcmp.gt.f32.partialorder %v2613_v49, 0.0  ;;  %vm3343_vm11 = vcmp.gt.f32.partialorder %v2616_v11, 0.0  ;;  %1799 = vst [vmem:[%s3242_s4] sm:$0xff] %v1798_v56  }
 0x1d6   :  { %v1156_v26 = vsel %vm3342_vm10, %v2613_v49, %v1124_v42  ;;  %v1157_v43 = vsel %vm3343_vm11, %v2616_v11, %v1125_v50  ;;  %v1818_v47 = vpack.c.bf16 %v1151_v55, %v1150_v29  ;;  %v1138_v12 = vmul.f32 0.01, %v2655_v31  ;;  %1955 = vst [vmem:[%s3242_s4 + $0x8] sm:$0xff] %v1803_v62  }
 0x1d7   :  { %vm3344_vm12 = vcmp.gt.f32.partialorder %v2619_v51, 0.0  ;;  %vm3345_vm13 = vcmp.gt.f32.partialorder %v2622_v27, 0.0  ;;  %v1823_v49 = vpack.c.bf16 %v1153_v21, %v1152_v15  ;;  %v1139_v11 = vmul.f32 0.01, %v2658_v5  ;;  %1956 = vst [vmem:[%s3242_s4 + $0x10] sm:$0xff] %v1808_v6   ;;  %v3357_v15 = vld [vmem:[#allocation17_spill] sm:$0xff] }
 0x1d8   :  { %v1158_v41 = vsel %vm3344_vm12, %v2619_v51, %v1126_v30  ;;  %v1159_v16 = vsel %vm3345_vm13, %v2622_v27, %v1127_v54  ;;  %vm3346_vm14 = vcmp.gt.f32.partialorder %v2625_v22, 0.0  ;;  %vm3347_vm15 = vcmp.gt.f32.partialorder %v2628_v45, 0.0  ;;  %1957 = vst [vmem:[%s3242_s4 + $0x18] sm:$0xff] %v1813_v35  }
 0x1d9   :  { %v1160_v29 = vsel %vm3346_vm14, %v2625_v22, %v1128_v0  ;;  %v1161_v24 = vsel %vm3347_vm15, %v2628_v45, %v1129_v4  ;;  %v1828_v51 = vpack.c.bf16 %v1155_v3, %v1154_v2  ;;  %v1140_v27 = vmul.f32 0.01, %v2678_v44  ;;  %1958 = vst [vmem:[%s3242_s4 + $0x20] sm:$0xff] %v1818_v47   ;;  %v3361_v3 = vld [vmem:[#allocation24_spill] sm:$0xff]  ;;  %v3363_v47 = vld [vmem:[#allocation6_spill] sm:$0xff] }
 0x1da   :  { %v1162_v36 = vsel %vm1098_vm0, %v2631_v7, %v1130_v8  ;;  %vm3348_vm8 = vcmp.gt.f32.partialorder %v2634_v33, 0.0  ;;  %v1833_v22 = vpack.c.bf16 %v1157_v43, %v1156_v26  ;;  %v1141_v45 = vmul.f32 0.01, %v2686_v58  ;;  %1959 = vst [vmem:[%s3242_s4 + $0x28] sm:$0xff] %v1823_v49   ;;  %v3352_v8 = vld [vmem:[#allocation5_spill] sm:$0xff]  ;;  %v3362_v26 = vld [vmem:[#allocation4_spill] sm:$0xff] }
 0x1db   :  { %v1163_v13 = vsel %vm3348_vm8, %v2634_v33, %v1131_v18  ;;  %v1164_v42 = vsel %vm1100_vm2, %v2637_v53, %v1132_v32  ;;  %vm3349_vm9 = vcmp.gt.f32.partialorder %v2640_v23, 0.0  ;;  %v1838_v7 = vpack.c.bf16 %v1159_v16, %v1158_v41  ;;  %1960 = vst [vmem:[%s3242_s4 + $0x30] sm:$0xff] %v1828_v51   ;;  %v3353_v18 = vld [vmem:[#allocation7_spill] sm:$0xff]  ;;  %v3364_v41 = vld [vmem:[#allocation8_spill] sm:$0xff]  ;;  %v3365_v49 = vld [vmem:[#allocation10_spill] sm:$0xff] }
 0x1dc   :  { %v1165_v46 = vsel %vm3349_vm9, %v2640_v23, %v1133_v28  ;;  %vm1109_vm0 = vcmp.gt.f32.partialorder %v2686_v58, 0.0  ;;  %v1166_v33 = vsel %vm1102_vm4, %v2643_v20, %v1134_v17  ;;  %vm3350_vm10 = vcmp.gt.f32.partialorder %v2646_v39, 0.0  ;;  %1961 = vst [vmem:[%s3242_s4 + $0x38] sm:$0xff] %v1833_v22   ;;  %v3354_v28 = vld [vmem:[#allocation9_spill] sm:$0xff]  ;;  %v3367_v51 = vld [vmem:[#allocation12_spill] sm:$0xff]  ;;  %v3370_v22 = vld [vmem:[#allocation19_spill] sm:$0xff] }
 0x1dd   :  { %v1167_v50 = vsel %vm3350_vm10, %v2646_v39, %v1135_v25  ;;  %v1843_v53 = vpack.c.bf16 %v1161_v24, %v1160_v29  ;;  %v1168_v23 = vsel %vm1104_vm5, %v2649_v37, %v1136_v52  ;;  %v1169_v30 = vsel %vm1105_vm3, %v2652_v1, %v1137_v10  ;;  %1962 = vst [vmem:[%s3242_s4 + $0x40] sm:$0xff] %v1838_v7   ;;  %v3356_v52 = vld [vmem:[#allocation15_spill] sm:$0xff] }
 0x1de   :  { %v1848_v20 = vpack.c.bf16 %v1163_v13, %v1162_v36  ;;  %v1170_v39 = vsel %vm1106_vm6, %v2655_v31, %v1138_v12  ;;  %v1171_v54 = vsel %vm1107_vm1, %v2658_v5, %v1139_v11  ;;  %v1853_v37 = vpack.c.bf16 %v1165_v46, %v1164_v42  ;;  %v3366_v29 = vld [vmem:[#allocation11_spill] sm:$0xff]  ;;  %v3369_v36 = vld [vmem:[#allocation16_spill] sm:$0xff]  ;;  %v3371_v42 = vld [vmem:[#allocation21_spill] sm:$0xff] }
 0x1df   :  { %v1172_v1 = vsel %vm1108_vm7, %v2678_v44, %v1140_v27  ;;  %v1173_v60 = vsel %vm1109_vm0, %v2686_v58, %v1141_v45  ;;  %v1858_v31 = vpack.c.bf16 %v1167_v50, %v1166_v33  ;;  %1963 = vst [vmem:[%s3242_s4 + $0x48] sm:$0xff] %v1843_v53   ;;  %v1863_v5 = vpack.c.bf16 %v1169_v30, %v1168_v23  ;;  %v3351_v58 = vld [vmem:[#allocation3_spill] sm:$0xff]  ;;  %v3368_v27 = vld [vmem:[#allocation14_spill] sm:$0xff]  ;;  %v3373_v50 = vld [vmem:[#allocation25_spill] sm:$0xff] }
 0x1e0   :  { %1964 = vst [vmem:[%s3242_s4 + $0x50] sm:$0xff] %v1848_v20   ;;  %v1868_v0 = vpack.c.bf16 %v1171_v54, %v1170_v39  ;;  %v1873_v44 = vpack.c.bf16 %v1173_v60, %v1172_v1  ;;  %v1270_v4 = vmul.f32 %v2502_v38, %v3351_v58  ;;  %v1271_v14 = vmul.f32 %v2502_v38, %v3352_v8  ;;  %v3372_v7 = vld [vmem:[#allocation23_spill] sm:$0xff]  ;;  %v3374_v23 = vld [vmem:[#allocation28_spill] sm:$0xff]  ;;  %v3375_v20 = vld [vmem:[#allocation29_spill] sm:$0xff] }
 0x1e1   :  { %1965 = vst [vmem:[%s3242_s4 + $0x58] sm:$0xff] %v1853_v37   ;;  %v1272_v32 = vmul.f32 %v2502_v38, %v3353_v18  ;;  %v1273_v9 = vmul.f32 %v2502_v38, %v3354_v28  ;;  %v1274_v17 = vmul.f32 %v2502_v38, %v2207_v57  ;;  %v1275_v61 = vmul.f32 %v2502_v38, %v2211_v59  ;;  %v3358_v57 = vld [vmem:[#allocation18_spill] sm:$0xff]  ;;  %v3359_v59 = vld [vmem:[#allocation20_spill] sm:$0xff]  ;;  %v3377_v1 = vld [vmem:[#allocation31_spill] sm:$0xff] }
 0x1e2   :  { %1966 = vst [vmem:[%s3242_s4 + $0x60] sm:$0xff] %v1858_v31   ;;  %v1276_v40 = vmul.f32 %v2502_v38, %v2219_v63  ;;  %v1277_v25 = vmul.f32 %v2502_v38, %v3355_v48  ;;  %v1278_v55 = vmul.f32 %v2502_v38, %v3356_v52  ;;  %v1279_v21 = vmul.f32 %v2502_v38, %v3357_v15  ;;  %v3360_v63 = vld [vmem:[#allocation22_spill] sm:$0xff] }
 0x1e3   :  { %1967 = vst [vmem:[%s3242_s4 + $0x68] sm:$0xff] %v1863_v5   ;;  %v1280_v56 = vmul.f32 %v2502_v38, %v3358_v57  ;;  %v1281_v62 = vmul.f32 %v2502_v38, %v3359_v59  ;;  %v1282_v2 = vmul.f32 %v2502_v38, %v3360_v63  ;;  %v1283_v6 = vmul.f32 %v2502_v38, %v3361_v3  ;;  %v3376_v54 = vld [vmem:[#allocation30_spill] sm:$0xff] }
 0x1e4   :  { %1968 = vst [vmem:[%s3242_s4 + $0x70] sm:$0xff] %v1868_v0   ;;  %v1284_v35 = vmul.f32 %v2502_v38, %v3326_v19  ;;  %v1285_v10 = vmul.f32 %v2502_v38, %v3327_v34  ;;  %v1286_v43 = vmul.f32 %v2502_v38, %v3362_v26  ;;  %v1287_v12 = vmul.f32 %v2502_v38, %v3363_v47  ;;  %v3378_v31 = vld [vmem:[#allocation26_spill] sm:$0xff] }
 0x1e5   :  { %1969 = vst [vmem:[%s3242_s4 + $0x78] sm:$0xff] %v1873_v44   ;;  %v1288_v16 = vmul.f32 %v2502_v38, %v3364_v41  ;;  %v1289_v11 = vmul.f32 %v2502_v38, %v3365_v49  ;;  %v1290_v24 = vmul.f32 %v2502_v38, %v3366_v29  ;;  %v1291_v19 = vmul.f32 %v2502_v38, %v3367_v51 }
 0x1e6   :  { %v1292_v34 = vmul.f32 %v2502_v38, %v3368_v27  ;;  %v1293_v13 = vmul.f32 %v2502_v38, %v3369_v36  ;;  %v1294_v45 = vmul.f32 %v2502_v38, %v3370_v22  ;;  %v1295_v46 = vmul.f32 %v2502_v38, %v3371_v42 }
 0x1e7   :  { %v1296_v33 = vmul.f32 %v2502_v38, %v3372_v7  ;;  %v1297_v53 = vmul.f32 %v2502_v38, %v3373_v50  ;;  %v1298_v30 = vmul.f32 %v2502_v38, %v3374_v23  ;;  %v1299_v39 = vmul.f32 %v2502_v38, %v3375_v20 }
 0x1e8   :  { %v1300_v37 = vmul.f32 %v2502_v38, %v3376_v54  ;;  %v1301_v60 = vmul.f32 %v2502_v38, %v3377_v1  ;;  %v2937_v5 = vadd.f32 %v1270_v4, %v3378_v31  ;;  %v2940_v0 = vadd.f32 %v1271_v14, %v3378_v31 }
 0x1e9   :  { %v2943_v44 = vadd.f32 %v1272_v32, %v3378_v31  ;;  %v2946_v58 = vadd.f32 %v1273_v9, %v3378_v31  ;;  %v2949_v8 = vadd.f32 %v1274_v17, %v3378_v31  ;;  %v2952_v18 = vadd.f32 %v1275_v61, %v3378_v31 }
 0x1ea   :  { %v2955_v38 = vadd.f32 %v1276_v40, %v3378_v31  ;;  %v2958_v4 = vadd.f32 %v1277_v25, %v3378_v31  ;;  %v2961_v14 = vadd.f32 %v1278_v55, %v3378_v31  ;;  %v2964_v32 = vadd.f32 %v1279_v21, %v3378_v31 }
 0x1eb   :  { %v2967_v28 = vadd.f32 %v1280_v56, %v3378_v31  ;;  %v2970_v9 = vadd.f32 %v1281_v62, %v3378_v31  ;;  %v2973_v17 = vadd.f32 %v1282_v2, %v3378_v31  ;;  %v2976_v61 = vadd.f32 %v1283_v6, %v3378_v31 }
 0x1ec   :  { %v2979_v40 = vadd.f32 %v1284_v35, %v3378_v31  ;;  %v2982_v48 = vadd.f32 %v1285_v10, %v3378_v31  ;;  %v2985_v25 = vadd.f32 %v1286_v43, %v3378_v31  ;;  %v2988_v52 = vadd.f32 %v1287_v12, %v3378_v31 }
 0x1ed   :  { %v2991_v55 = vadd.f32 %v1288_v16, %v3378_v31  ;;  %v2994_v15 = vadd.f32 %v1289_v11, %v3378_v31  ;;  %v2997_v21 = vadd.f32 %v1290_v24, %v3378_v31  ;;  %v3000_v57 = vadd.f32 %v1291_v19, %v3378_v31 }
 0x1ee   :  { %v3003_v56 = vadd.f32 %v1292_v34, %v3378_v31  ;;  %v3006_v59 = vadd.f32 %v1293_v13, %v3378_v31  ;;  %v3009_v62 = vadd.f32 %v1294_v45, %v3378_v31  ;;  %v3012_v63 = vadd.f32 %v1295_v46, %v3378_v31 }
 0x1ef   :  { %v3015_v2 = vadd.f32 %v1296_v33, %v3378_v31  ;;  %v3018_v3 = vadd.f32 %v1297_v53, %v3378_v31  ;;  %v3021_v6 = vadd.f32 %v1298_v30, %v3378_v31  ;;  %v3024_v35 = vadd.f32 %v1299_v39, %v3378_v31 }
 0x1f0   :  { %vm1334_vm1 = vcmp.gt.f32.partialorder %v2937_v5, 0.0  ;;  %vm1335_vm2 = vcmp.gt.f32.partialorder %v2940_v0, 0.0  ;;  %vm1336_vm3 = vcmp.gt.f32.partialorder %v2943_v44, 0.0  ;;  %vm1337_vm4 = vcmp.gt.f32.partialorder %v2946_v58, 0.0 }
 0x1f1   :  { %vm1338_vm5 = vcmp.gt.f32.partialorder %v2949_v8, 0.0  ;;  %vm1339_vm6 = vcmp.gt.f32.partialorder %v2952_v18, 0.0  ;;  %vm1340_vm7 = vcmp.gt.f32.partialorder %v2955_v38, 0.0  ;;  %vm1341_vm11 = vcmp.gt.f32.partialorder %v2958_v4, 0.0 }
 0x1f2   :  { %vm1342_vm12 = vcmp.gt.f32.partialorder %v2961_v14, 0.0  ;;  %vm1343_vm13 = vcmp.gt.f32.partialorder %v2964_v32, 0.0  ;;  %vm1344_vm14 = vcmp.gt.f32.partialorder %v2967_v28, 0.0  ;;  %vm1345_vm15 = vcmp.gt.f32.partialorder %v2970_v9, 0.0 }
 0x1f3   :  { %v1366_v10 = vmul.f32 0.01, %v2937_v5  ;;  %v1367_v26 = vmul.f32 0.01, %v2940_v0  ;;  %v1368_v43 = vmul.f32 0.01, %v2943_v44  ;;  %v3044_v47 = vadd.f32 %v1300_v37, %v3378_v31 }
 0x1f4   :  { %v1369_v12 = vmul.f32 0.01, %v2946_v58  ;;  %v1370_v41 = vmul.f32 0.01, %v2949_v8  ;;  %v1371_v16 = vmul.f32 0.01, %v2952_v18  ;;  %v3052_v49 = vadd.f32 %v1301_v60, %v3378_v31 }
 0x1f5   :  { %v1372_v11 = vmul.f32 0.01, %v2955_v38  ;;  %v1373_v29 = vmul.f32 0.01, %v2958_v4  ;;  %v1374_v24 = vmul.f32 0.01, %v2961_v14  ;;  %v1398_v34 = vsel %vm1334_vm1, %v2937_v5, %v1366_v10 }
 0x1f6   :  { %v1375_v51 = vmul.f32 0.01, %v2964_v32  ;;  %v1376_v19 = vmul.f32 0.01, %v2967_v28  ;;  %v1377_v27 = vmul.f32 0.01, %v2970_v9  ;;  %v1399_v45 = vsel %vm1335_vm2, %v2940_v0, %v1367_v26 }
 0x1f7   :  { %vm1354_vm8 = vcmp.gt.f32.partialorder %v2997_v21, 0.0  ;;  %v1378_v36 = vmul.f32 0.01, %v2973_v17  ;;  %v1379_v13 = vmul.f32 0.01, %v2976_v61  ;;  %vm1356_vm0 = vcmp.gt.f32.partialorder %v3003_v56, 0.0 }
 0x1f8   :  { %v1380_v22 = vmul.f32 0.01, %v2979_v40  ;;  %v1381_v42 = vmul.f32 0.01, %v2982_v48  ;;  %v1382_v46 = vmul.f32 0.01, %v2985_v25  ;;  %v1400_v33 = vsel %vm1336_vm3, %v2943_v44, %v1368_v43 }
 0x1f9   :  { %v1383_v7 = vmul.f32 0.01, %v2988_v52  ;;  %vm1358_vm1 = vcmp.gt.f32.partialorder %v3009_v62, 0.0  ;;  %v1384_v50 = vmul.f32 0.01, %v2991_v55  ;;  %v1401_v30 = vsel %vm1337_vm4, %v2946_v58, %v1369_v12 }
 0x1fa   :  { %v1385_v53 = vmul.f32 0.01, %v2994_v15  ;;  %v1386_v23 = vmul.f32 0.01, %v2997_v21  ;;  %vm1360_vm2 = vcmp.gt.f32.partialorder %v3015_v2, 0.0  ;;  %vm1361_vm10 = vcmp.gt.f32.partialorder %v3018_v3, 0.0 }
 0x1fb   :  { %v1387_v20 = vmul.f32 0.01, %v3000_v57  ;;  %v1388_v39 = vmul.f32 0.01, %v3003_v56  ;;  %v1389_v54 = vmul.f32 0.01, %v3006_v59  ;;  %v1402_v37 = vsel %vm1338_vm5, %v2949_v8, %v1370_v41 }
 0x1fc   :  { %vm1362_vm3 = vcmp.gt.f32.partialorder %v3021_v6, 0.0  ;;  %vm1363_vm9 = vcmp.gt.f32.partialorder %v3024_v35, 0.0  ;;  %v1390_v1 = vmul.f32 0.01, %v3009_v62  ;;  %v1403_v60 = vsel %vm1339_vm6, %v2952_v18, %v1371_v16 }
 0x1fd   :  { %v1404_v31 = vsel %vm1340_vm7, %v2955_v38, %v1372_v11  ;;  %v1405_v5 = vsel %vm1341_vm11, %v2958_v4, %v1373_v29  ;;  %vm1364_vm4 = vcmp.gt.f32.partialorder %v3044_v47, 0.0  ;;  %v1391_v0 = vmul.f32 0.01, %v3012_v63 }
 0x1fe   :  { %v1392_v44 = vmul.f32 0.01, %v3015_v2  ;;  %v1406_v58 = vsel %vm1342_vm12, %v2961_v14, %v1374_v24  ;;  %v1407_v8 = vsel %vm1343_vm13, %v2964_v32, %v1375_v51  ;;  %v1408_v18 = vsel %vm1344_vm14, %v2967_v28, %v1376_v19 }
 0x1ff   :  { %v1409_v38 = vsel %vm1345_vm15, %v2970_v9, %v1377_v27  ;;  %v1878_v4 = vpack.c.bf16 %v1399_v45, %v1398_v34  ;;  %v1883_v10 = vpack.c.bf16 %v1401_v30, %v1400_v33  ;;  %vm3379_vm5 = vcmp.gt.f32.partialorder %v2973_v17, 0.0 }
 0x200   :  { %v1410_v26 = vsel %vm3379_vm5, %v2973_v17, %v1378_v36  ;;  %vm3380_vm6 = vcmp.gt.f32.partialorder %v2976_v61, 0.0  ;;  %v1888_v43 = vpack.c.bf16 %v1403_v60, %v1402_v37  ;;  %v1893_v32 = vpack.c.bf16 %v1405_v5, %v1404_v31 }
 0x201   :  { %v1411_v14 = vsel %vm3380_vm6, %v2976_v61, %v1379_v13  ;;  %v1393_v12 = vmul.f32 0.01, %v3018_v3  ;;  %vm3381_vm7 = vcmp.gt.f32.partialorder %v2979_v40, 0.0  ;;  %vm3382_vm11 = vcmp.gt.f32.partialorder %v2982_v48, 0.0  ;;  %1970 = vst [vmem:[%s3242_s4 + $0x80] sm:$0xff] %v1878_v4  }
 0x202   :  { %v1412_v28 = vsel %vm3381_vm7, %v2979_v40, %v1380_v22  ;;  %v1413_v9 = vsel %vm3382_vm11, %v2982_v48, %v1381_v42  ;;  %v1898_v17 = vpack.c.bf16 %v1407_v8, %v1406_v58  ;;  %v1394_v41 = vmul.f32 0.01, %v3021_v6  ;;  %1971 = vst [vmem:[%s3242_s4 + $0x88] sm:$0xff] %v1883_v10  }
 0x203   :  { %vm3383_vm12 = vcmp.gt.f32.partialorder %v2985_v25, 0.0  ;;  %vm3384_vm13 = vcmp.gt.f32.partialorder %v2988_v52, 0.0  ;;  %v1903_v40 = vpack.c.bf16 %v1409_v38, %v1408_v18  ;;  %v1395_v48 = vmul.f32 0.01, %v3024_v35  ;;  %1972 = vst [vmem:[%s3242_s4 + $0x90] sm:$0xff] %v1888_v43  }
 0x204   :  { %v1414_v61 = vsel %vm3383_vm12, %v2985_v25, %v1382_v46  ;;  %v1415_v16 = vsel %vm3384_vm13, %v2988_v52, %v1383_v7  ;;  %vm3385_vm14 = vcmp.gt.f32.partialorder %v2991_v55, 0.0  ;;  %vm3386_vm15 = vcmp.gt.f32.partialorder %v2994_v15, 0.0  ;;  %1973 = vst [vmem:[%s3242_s4 + $0x98] sm:$0xff] %v1893_v32  }
 0x205   :  { %v1416_v11 = vsel %vm3385_vm14, %v2991_v55, %v1384_v50  ;;  %v1417_v29 = vsel %vm3386_vm15, %v2994_v15, %v1385_v53  ;;  %v1908_v25 = vpack.c.bf16 %v1411_v14, %v1410_v26  ;;  %v1396_v52 = vmul.f32 0.01, %v3044_v47  ;;  %1974 = vst [vmem:[%s3242_s4 + $0xa0] sm:$0xff] %v1898_v17  }
 0x206   :  { %v1418_v24 = vsel %vm1354_vm8, %v2997_v21, %v1386_v23  ;;  %vm3387_vm5 = vcmp.gt.f32.partialorder %v3000_v57, 0.0  ;;  %v1913_v55 = vpack.c.bf16 %v1413_v9, %v1412_v28  ;;  %v1397_v15 = vmul.f32 0.01, %v3052_v49  ;;  %1975 = vst [vmem:[%s3242_s4 + $0xa8] sm:$0xff] %v1903_v40  }
 0x207   :  { %v1419_v51 = vsel %vm3387_vm5, %v3000_v57, %v1387_v20  ;;  %v1420_v19 = vsel %vm1356_vm0, %v3003_v56, %v1388_v39  ;;  %vm3388_vm6 = vcmp.gt.f32.partialorder %v3006_v59, 0.0  ;;  %v1918_v21 = vpack.c.bf16 %v1415_v16, %v1414_v61  ;;  %1976 = vst [vmem:[%s3242_s4 + $0xb0] sm:$0xff] %v1908_v25  }
 0x208   :  { %v1421_v27 = vsel %vm3388_vm6, %v3006_v59, %v1389_v54  ;;  %vm1365_vm8 = vcmp.gt.f32.partialorder %v3052_v49, 0.0  ;;  %v1422_v57 = vsel %vm1358_vm1, %v3009_v62, %v1390_v1  ;;  %vm3389_vm7 = vcmp.gt.f32.partialorder %v3012_v63, 0.0  ;;  %1977 = vst [vmem:[%s3242_s4 + $0xb8] sm:$0xff] %v1913_v55  }
 0x209   :  { %v1423_v34 = vsel %vm3389_vm7, %v3012_v63, %v1391_v0  ;;  %v1923_v56 = vpack.c.bf16 %v1417_v29, %v1416_v11  ;;  %v1424_v59 = vsel %vm1360_vm2, %v3015_v2, %v1392_v44  ;;  %v1425_v36 = vsel %vm1361_vm10, %v3018_v3, %v1393_v12  ;;  %1978 = vst [vmem:[%s3242_s4 + $0xc0] sm:$0xff] %v1918_v21  }
 0x20a   :  { %v1928_v62 = vpack.c.bf16 %v1419_v51, %v1418_v24  ;;  %v1426_v63 = vsel %vm1362_vm3, %v3021_v6, %v1394_v41  ;;  %v1427_v13 = vsel %vm1363_vm9, %v3024_v35, %v1395_v48  ;;  %v1933_v2 = vpack.c.bf16 %v1421_v27, %v1420_v19 }
 0x20b   :  { %v1428_v3 = vsel %vm1364_vm4, %v3044_v47, %v1396_v52  ;;  %v1429_v22 = vsel %vm1365_vm8, %v3052_v49, %v1397_v15  ;;  %v1938_v6 = vpack.c.bf16 %v1423_v34, %v1422_v57  ;;  %1979 = vst [vmem:[%s3242_s4 + $0xc8] sm:$0xff] %v1923_v56   ;;  %v1943_v35 = vpack.c.bf16 %v1425_v36, %v1424_v59 }
 0x20c   :  { %1980 = vst [vmem:[%s3242_s4 + $0xd0] sm:$0xff] %v1928_v62   ;;  %v1948_v45 = vpack.c.bf16 %v1427_v13, %v1426_v63  ;;  %v1953_v47 = vpack.c.bf16 %v1429_v22, %v1428_v3 }
 0x20d   :  { %1981 = vst [vmem:[%s3242_s4 + $0xd8] sm:$0xff] %v1933_v2  }
 0x20e   :  { %1982 = vst [vmem:[%s3242_s4 + $0xe0] sm:$0xff] %v1938_v6  }
 0x20f   :  { %1983 = vst [vmem:[%s3242_s4 + $0xe8] sm:$0xff] %v1943_v35  }
 0x210   :  { %1984 = vst [vmem:[%s3242_s4 + $0xf0] sm:$0xff] %v1948_v45  }
 0x211   :  { %1985 = vst [vmem:[%s3242_s4 + $0xf8] sm:$0xff] %v1953_v47  }

// kernel: _lambda_.5
= control target key start
LH: loop header
LB: loop body
LE: loop exit
PB: predicated region body
PF: predicated region fallthrough
CT: control target
= control target key end

     0   :  { %s3510_s9 = inlined_call_operand.vmem [shape: bf16[1,1152,128], index: 9, kind: input, shape index: {}]   ;;  %s3511_s1 = inlined_call_operand.vmem [shape: bf16[128,128], index: 1, kind: input, shape index: {}]   ;;  %s3512_s0 = inlined_call_operand.vmem [shape: bf16[128,128], index: 0, kind: input, shape index: {}]   ;;  %s3513_s2 = inlined_call_operand.vmem [shape: bf16[128,128], index: 2, kind: input, shape index: {}]   ;;  %s3514_s3 = inlined_call_operand.vmem [shape: bf16[128,128], index: 3, kind: input, shape index: {}]   ;;  %s3515_s4 = inlined_call_operand.vmem [shape: bf16[128,128], index: 4, kind: input, shape index: {}]   ;;  %s3516_s5 = inlined_call_operand.vmem [shape: bf16[128,128], index: 5, kind: input, shape index: {}]   ;;  %s3517_s6 = inlined_call_operand.vmem [shape: bf16[128,128], index: 6, kind: input, shape index: {}]   ;;  %s3518_s7 = inlined_call_operand.vmem [shape: bf16[128,128], index: 7, kind: input, shape index: {}]   ;;  %s3519_s8 = inlined_call_operand.vmem [shape: bf16[128,128], index: 8, kind: input, shape index: {}]   ;;  %s3520_s10 = inlined_call_operand.vmem [shape: f32[1,128], index: 10, kind: input, shape index: {}]   ;;  %s3521_s11 = inlined_call_operand.vmem [shape: f32[1,128], index: 11, kind: input, shape index: {}]   ;;  %s3522_s12 = inlined_call_operand.vmem [shape: bf16[128,128], index: 12, kind: output, shape index: {}]  }
   0x1   :  { %v2600_v0 = vld [vmem:[%s3510_s9 + $0x78] sm:$0xff]  ;;  %v2599_v1 = vld [vmem:[%s3510_s9 + $0x70] sm:$0xff]  ;;  %v2598_v2 = vld [vmem:[%s3510_s9 + $0x68] sm:$0xff] }
   0x2   :  { %2760 = vmatpush.bf16.msra.mxu1 %v2600_v0  ;;  %2761 = vmatpush.bf16.msra.mxu2 %v2600_v0  ;;  %v2597_v3 = vld [vmem:[%s3510_s9 + $0x60] sm:$0xff]  ;;  %v2596_v4 = vld [vmem:[%s3510_s9 + $0x58] sm:$0xff]  ;;  %v2595_v5 = vld [vmem:[%s3510_s9 + $0x50] sm:$0xff] }
   0x3   :  { %2762 = vmatpush.bf16.msra.mxu3 %v2600_v0  ;;  %201 = vmatpush.bf16.msra.mxu0 %v2600_v0  ;;  %v2594_v6 = vld [vmem:[%s3510_s9 + $0x48] sm:$0xff]  ;;  %v2593_v7 = vld [vmem:[%s3510_s9 + $0x40] sm:$0xff]  ;;  %v2616_v8 = vld [vmem:[%s3510_s9 + $0xb8] sm:$0xff] }
   0x4   :  { %v2584_v9 = vld [vmem:[%s3510_s9 + $0x38] sm:$0xff]  ;;  %v2587_v10 = vld [vmem:[%s3511_s1 + $0x10] sm:$0xff]  ;;  %v2589_v11 = vld [vmem:[%s3511_s1 + $0x20] sm:$0xff] }
   0x5   :  { %v2591_v12 = vld [vmem:[%s3511_s1 + $0x30] sm:$0xff]  ;;  %v2585_v13 = vld [vmem:[%s3511_s1] sm:$0xff]  ;;  %v2632_v14 = vld [vmem:[%s3510_s9 + $0xf8] sm:$0xff] }
   0x6   :  { %2763 = vmatpush.bf16.msra.mxu1 %v2599_v1  ;;  %2764 = vmatpush.bf16.msra.mxu2 %v2599_v1  ;;  %v2648_v15 = vld [vmem:[%s3510_s9 + $0x138] sm:$0xff]  ;;  %v2615_v16 = vld [vmem:[%s3510_s9 + $0xb0] sm:$0xff]  ;;  %v2614_v20 = vld [vmem:[%s3510_s9 + $0xa8] sm:$0xff] }
   0x7   :  { %2765 = vmatpush.bf16.msra.mxu3 %v2599_v1  ;;  %202 = vmatpush.bf16.msra.mxu0 %v2599_v1  ;;  %v2583_v17 = vld [vmem:[%s3510_s9 + $0x30] sm:$0xff]  ;;  %v2582_v21 = vld [vmem:[%s3510_s9 + $0x28] sm:$0xff]  ;;  %v2613_v24 = vld [vmem:[%s3510_s9 + $0xa0] sm:$0xff] }
   0x8   :  { %v2631_v18 = vld [vmem:[%s3510_s9 + $0xf0] sm:$0xff]  ;;  %v2630_v22 = vld [vmem:[%s3510_s9 + $0xe8] sm:$0xff]  ;;  %v2581_v25 = vld [vmem:[%s3510_s9 + $0x20] sm:$0xff] }
   0x9   :  { %v2647_v19 = vld [vmem:[%s3510_s9 + $0x130] sm:$0xff]  ;;  %v2646_v23 = vld [vmem:[%s3510_s9 + $0x128] sm:$0xff]  ;;  %v2629_v26 = vld [vmem:[%s3510_s9 + $0xe0] sm:$0xff] }
   0xa   :  { %2766 = vmatpush.bf16.msra.mxu1 %v2598_v2  ;;  %2767 = vmatpush.bf16.msra.mxu2 %v2598_v2  ;;  %v2645_v27 = vld [vmem:[%s3510_s9 + $0x120] sm:$0xff]  ;;  %v2612_v28 = vld [vmem:[%s3510_s9 + $0x98] sm:$0xff]  ;;  %v2590_v31 = vld [vmem:[%s3511_s1 + $0x28] sm:$0xff] }
   0xb   :  { %2768 = vmatpush.bf16.msra.mxu3 %v2598_v2  ;;  %203 = vmatpush.bf16.msra.mxu0 %v2598_v2  ;;  %v2580_v29 = vld [vmem:[%s3510_s9 + $0x18] sm:$0xff]  ;;  %v2586_v33 = vld [vmem:[%s3511_s1 + $0x8] sm:$0xff]  ;;  %v2611_v36 = vld [vmem:[%s3510_s9 + $0x90] sm:$0xff] }
   0xc   :  { %v2588_v30 = vld [vmem:[%s3511_s1 + $0x18] sm:$0xff]  ;;  %v2579_v37 = vld [vmem:[%s3510_s9 + $0x10] sm:$0xff]  ;;  %v2610_v40 = vld [vmem:[%s3510_s9 + $0x88] sm:$0xff] }
   0xd   :  { %v2592_v32 = vld [vmem:[%s3511_s1 + $0x38] sm:$0xff]  ;;  %v2627_v38 = vld [vmem:[%s3510_s9 + $0xd0] sm:$0xff]  ;;  %v2578_v41 = vld [vmem:[%s3510_s9 + $0x8] sm:$0xff] }
   0xe   :  { %2769 = vmatpush.bf16.msra.mxu1 %v2597_v3  ;;  %2770 = vmatpush.bf16.msra.mxu2 %v2597_v3  ;;  %v2628_v34 = vld [vmem:[%s3510_s9 + $0xd8] sm:$0xff]  ;;  %v2643_v39 = vld [vmem:[%s3510_s9 + $0x110] sm:$0xff]  ;;  %v2626_v42 = vld [vmem:[%s3510_s9 + $0xc8] sm:$0xff] }
   0xf   :  { %2771 = vmatpush.bf16.msra.mxu3 %v2597_v3  ;;  %204 = vmatpush.bf16.msra.mxu0 %v2597_v3  ;;  %v2644_v35 = vld [vmem:[%s3510_s9 + $0x118] sm:$0xff]  ;;  %v2642_v43 = vld [vmem:[%s3510_s9 + $0x108] sm:$0xff]  ;;  %v2609_v44 = vld [vmem:[%s3510_s9 + $0x80] sm:$0xff] }
  0x10   :  { %v2577_v45 = vld [vmem:[%s3510_s9] sm:$0xff]  ;;  %v2680_v46 = vld [vmem:[%s3510_s9 + $0x1b8] sm:$0xff]  ;;  %v2679_v56 = vld [vmem:[%s3510_s9 + $0x1b0] sm:$0xff] }
  0x11   :  { %v2664_v47 = vld [vmem:[%s3510_s9 + $0x178] sm:$0xff]  ;;  %v2625_v48 = vld [vmem:[%s3510_s9 + $0xc0] sm:$0xff]  ;;  %v2663_v57 = vld [vmem:[%s3510_s9 + $0x170] sm:$0xff] }
  0x12   :  { %2772 = vmatpush.bf16.msra.mxu1 %v2596_v4  ;;  %2773 = vmatpush.bf16.msra.mxu2 %v2596_v4  ;;  %v2641_v49 = vld [vmem:[%s3510_s9 + $0x100] sm:$0xff]  ;;  %v2696_v50 = vld [vmem:[%s3510_s9 + $0x1f8] sm:$0xff]  ;;  %v2695_v58 = vld [vmem:[%s3510_s9 + $0x1f0] sm:$0xff] }
  0x13   :  { %2774 = vmatpush.bf16.msra.mxu3 %v2596_v4  ;;  %205 = vmatpush.bf16.msra.mxu0 %v2596_v4  ;;  %v2712_v51 = vld [vmem:[%s3510_s9 + $0x238] sm:$0xff]  ;;  %v2569_v52 = vld [vmem:[%s3512_s0] sm:$0xff]  ;;  %v2711_v59 = vld [vmem:[%s3510_s9 + $0x230] sm:$0xff] }
  0x14   :  { %v2601_v53 = vld [vmem:[%s3513_s2] sm:$0xff]  ;;  %v2678_v60 = vld [vmem:[%s3510_s9 + $0x1a8] sm:$0xff] }
  0x15   :  { %v2617_v54 = vld [vmem:[%s3514_s3] sm:$0xff]  ;;  %v2662_v61 = vld [vmem:[%s3510_s9 + $0x168] sm:$0xff] }
  0x16   :  { %2775 = vmatpush.bf16.msra.mxu1 %v2595_v5  ;;  %2776 = vmatpush.bf16.msra.mxu2 %v2595_v5  ;;  %v2633_v55 = vld [vmem:[%s3515_s4] sm:$0xff]  ;;  %v2694_v62 = vld [vmem:[%s3510_s9 + $0x1e8] sm:$0xff] }
  0x17   :  { %2777 = vmatpush.bf16.msra.mxu3 %v2595_v5  ;;  %206 = vmatpush.bf16.msra.mxu0 %v2595_v5  ;;  %v2710_v63 = vld [vmem:[%s3510_s9 + $0x228] sm:$0xff]  ;;  %v2677_v4 = vld [vmem:[%s3510_s9 + $0x1a0] sm:$0xff] }
  0x18   :  { %v2570_v0 = vld [vmem:[%s3512_s0 + $0x8] sm:$0xff]  ;;  %v2693_v5 = vld [vmem:[%s3510_s9 + $0x1e0] sm:$0xff] }
  0x19   :  { %v2602_v1 = vld [vmem:[%s3513_s2 + $0x8] sm:$0xff] }
  0x1a   :  { %2778 = vmatpush.bf16.msra.mxu1 %v2594_v6  ;;  %2779 = vmatpush.bf16.msra.mxu2 %v2594_v6  ;;  %v2618_v2 = vld [vmem:[%s3514_s3 + $0x8] sm:$0xff] }
  0x1b   :  { %2780 = vmatpush.bf16.msra.mxu3 %v2594_v6  ;;  %207 = vmatpush.bf16.msra.mxu0 %v2594_v6  ;;  %v2634_v3 = vld [vmem:[%s3515_s4 + $0x8] sm:$0xff]  ;;  %v2661_v6 = vld [vmem:[%s3510_s9 + $0x160] sm:$0xff] }
  0x1e   :  { %2781 = vmatpush.bf16.msra.mxu1 %v2593_v7  ;;  %2782 = vmatpush.bf16.msra.mxu2 %v2593_v7 }
  0x1f   :  { %2783 = vmatpush.bf16.msra.mxu3 %v2593_v7  ;;  %208 = vmatpush.bf16.msra.mxu0 %v2593_v7  ;;  %v2709_v7 = vld [vmem:[%s3510_s9 + $0x220] sm:$0xff] }
  0x21   :  { %219 = vmatmul.bf16.vlgmr.msra.gmra.mxu1 %v2587_v10  ;;  %229 = vmatmul.bf16.vlgmr.msra.gmra.mxu2 %v2589_v11  ;;  %v2619_v10 = vld [vmem:[%s3514_s3 + $0x10] sm:$0xff] }
  0x22   :  { %523 = vmatpush.bf16.msrb.mxu2 %v2616_v8  ;;  %346 = vmatpush.bf16.msrb.mxu1 %v2584_v9  ;;  %v2571_v8 = vld [vmem:[%s3512_s0 + $0x10] sm:$0xff] }
  0x23   :  { %239 = vmatmul.bf16.vlgmr.msra.gmra.mxu3 %v2591_v12  ;;  %209 = vmatmul.bf16.vlgmr.msra.gmra.mxu0 %v2585_v13  ;;  %v2603_v9 = vld [vmem:[%s3513_s2 + $0x10] sm:$0xff]  ;;  %v2676_v12 = vld [vmem:[%s3510_s9 + $0x198] sm:$0xff] }
  0x24   :  { %716 = vmatpush.bf16.msrb.mxu3 %v2632_v14  ;;  %909 = vmatpush.bf16.msrb.mxu0 %v2648_v15  ;;  %v2635_v11 = vld [vmem:[%s3515_s4 + $0x10] sm:$0xff]  ;;  %v2692_v13 = vld [vmem:[%s3510_s9 + $0x1d8] sm:$0xff] }
  0x25   :  { %v2660_v14 = vld [vmem:[%s3510_s9 + $0x158] sm:$0xff] }
  0x26   :  { %524 = vmatpush.bf16.msrb.mxu2 %v2615_v16  ;;  %347 = vmatpush.bf16.msrb.mxu1 %v2583_v17  ;;  %v2708_v15 = vld [vmem:[%s3510_s9 + $0x218] sm:$0xff] }
  0x27   :  { %v2572_v16 = vld [vmem:[%s3512_s0 + $0x18] sm:$0xff] }
  0x28   :  { %717 = vmatpush.bf16.msrb.mxu3 %v2631_v18  ;;  %910 = vmatpush.bf16.msrb.mxu0 %v2647_v19  ;;  %v2604_v17 = vld [vmem:[%s3513_s2 + $0x18] sm:$0xff] }
  0x29   :  { %v2620_v18 = vld [vmem:[%s3514_s3 + $0x18] sm:$0xff] }
  0x2a   :  { %525 = vmatpush.bf16.msrb.mxu2 %v2614_v20  ;;  %348 = vmatpush.bf16.msrb.mxu1 %v2582_v21  ;;  %v2636_v19 = vld [vmem:[%s3515_s4 + $0x18] sm:$0xff]  ;;  %v2675_v20 = vld [vmem:[%s3510_s9 + $0x190] sm:$0xff] }
  0x2b   :  { %v2691_v21 = vld [vmem:[%s3510_s9 + $0x1d0] sm:$0xff] }
  0x2c   :  { %718 = vmatpush.bf16.msrb.mxu3 %v2630_v22  ;;  %911 = vmatpush.bf16.msrb.mxu0 %v2646_v23  ;;  %v2659_v22 = vld [vmem:[%s3510_s9 + $0x150] sm:$0xff] }
  0x2d   :  { %v2707_v23 = vld [vmem:[%s3510_s9 + $0x210] sm:$0xff] }
  0x2e   :  { %526 = vmatpush.bf16.msrb.mxu2 %v2613_v24  ;;  %349 = vmatpush.bf16.msrb.mxu1 %v2581_v25  ;;  %v2573_v24 = vld [vmem:[%s3512_s0 + $0x20] sm:$0xff] }
  0x2f   :  { %v2605_v25 = vld [vmem:[%s3513_s2 + $0x20] sm:$0xff] }
  0x30   :  { %719 = vmatpush.bf16.msrb.mxu3 %v2629_v26  ;;  %912 = vmatpush.bf16.msrb.mxu0 %v2645_v27  ;;  %v2621_v26 = vld [vmem:[%s3514_s3 + $0x20] sm:$0xff] }
  0x31   :  { %224 = vmatmul.bf16.gmra.mxu1 %v2588_v30  ;;  %234 = vmatmul.bf16.gmra.mxu2 %v2590_v31  ;;  %v2637_v27 = vld [vmem:[%s3515_s4 + $0x20] sm:$0xff]  ;;  %v2658_v30 = vld [vmem:[%s3510_s9 + $0x148] sm:$0xff] }
  0x32   :  { %527 = vmatpush.bf16.msrb.mxu2 %v2612_v28  ;;  %350 = vmatpush.bf16.msrb.mxu1 %v2580_v29  ;;  %v2674_v28 = vld [vmem:[%s3510_s9 + $0x188] sm:$0xff] }
  0x33   :  { %244 = vmatmul.bf16.gmra.mxu3 %v2592_v32  ;;  %214 = vmatmul.bf16.gmra.mxu0 %v2586_v33  ;;  %v2690_v29 = vld [vmem:[%s3510_s9 + $0x1c8] sm:$0xff] }
  0x34   :  { %720 = vmatpush.bf16.msrb.mxu3 %v2628_v34  ;;  %913 = vmatpush.bf16.msrb.mxu0 %v2644_v35  ;;  %v2706_v31 = vld [vmem:[%s3510_s9 + $0x208] sm:$0xff] }
  0x35   :  { %v2574_v32 = vld [vmem:[%s3512_s0 + $0x28] sm:$0xff] }
  0x36   :  { %528 = vmatpush.bf16.msrb.mxu2 %v2611_v36  ;;  %351 = vmatpush.bf16.msrb.mxu1 %v2579_v37  ;;  %v2606_v33 = vld [vmem:[%s3513_s2 + $0x28] sm:$0xff]  ;;  %v2673_v36 = vld [vmem:[%s3510_s9 + $0x180] sm:$0xff] }
  0x37   :  { %v2622_v34 = vld [vmem:[%s3514_s3 + $0x28] sm:$0xff]  ;;  %v2689_v37 = vld [vmem:[%s3510_s9 + $0x1c0] sm:$0xff] }
  0x38   :  { %721 = vmatpush.bf16.msrb.mxu3 %v2627_v38  ;;  %914 = vmatpush.bf16.msrb.mxu0 %v2643_v39  ;;  %v2638_v35 = vld [vmem:[%s3515_s4 + $0x28] sm:$0xff]  ;;  %v2657_v38 = vld [vmem:[%s3510_s9 + $0x140] sm:$0xff] }
  0x39   :  { %v2705_v39 = vld [vmem:[%s3510_s9 + $0x200] sm:$0xff] }
  0x3a   :  { %529 = vmatpush.bf16.msrb.mxu2 %v2610_v40  ;;  %352 = vmatpush.bf16.msrb.mxu1 %v2578_v41  ;;  %v2575_v40 = vld [vmem:[%s3512_s0 + $0x30] sm:$0xff] }
  0x3b   :  { %v2607_v41 = vld [vmem:[%s3513_s2 + $0x30] sm:$0xff] }
  0x3c   :  { %722 = vmatpush.bf16.msrb.mxu3 %v2626_v42  ;;  %915 = vmatpush.bf16.msrb.mxu0 %v2642_v43  ;;  %v2623_v43 = vld [vmem:[%s3514_s3 + $0x30] sm:$0xff] }
  0x3e   :  { %530 = vmatpush.bf16.msrb.mxu2 %v2609_v44  ;;  %353 = vmatpush.bf16.msrb.mxu1 %v2577_v45  ;;  %v2639_v44 = vld [vmem:[%s3515_s4 + $0x30] sm:$0xff] }
  0x40   :  { %723 = vmatpush.bf16.msrb.mxu3 %v2625_v48  ;;  %916 = vmatpush.bf16.msrb.mxu0 %v2641_v49 }
  0x41   :  { %354 = vmatmul.bf16.vlgmr.msrb.gmra.mxu1 %v2569_v52  ;;  %531 = vmatmul.bf16.vlgmr.msrb.gmra.mxu2 %v2601_v53  ;;  %v2576_v52 = vld [vmem:[%s3512_s0 + $0x38] sm:$0xff] }
  0x42   :  { %1295 = vmatpush.bf16.msra.mxu2 %v2680_v46  ;;  %1102 = vmatpush.bf16.msra.mxu1 %v2664_v47  ;;  %v2608_v53 = vld [vmem:[%s3513_s2 + $0x38] sm:$0xff] }
  0x43   :  { %724 = vmatmul.bf16.vlgmr.msrb.gmra.mxu3 %v2617_v54  ;;  %917 = vmatmul.bf16.vlgmr.msrb.gmra.mxu0 %v2633_v55  ;;  %v2624_v55 = vld [vmem:[%s3514_s3 + $0x38] sm:$0xff] }
  0x44   :  { %1488 = vmatpush.bf16.msra.mxu3 %v2696_v50  ;;  %1681 = vmatpush.bf16.msra.mxu0 %v2712_v51 }
  0x46   :  { %1296 = vmatpush.bf16.msra.mxu2 %v2679_v56  ;;  %1103 = vmatpush.bf16.msra.mxu1 %v2663_v57  ;;  %v2640_v56 = vld [vmem:[%s3515_s4 + $0x38] sm:$0xff] }
  0x48   :  { %1489 = vmatpush.bf16.msra.mxu3 %v2695_v58  ;;  %1682 = vmatpush.bf16.msra.mxu0 %v2711_v59 }
  0x4a   :  { %1297 = vmatpush.bf16.msra.mxu2 %v2678_v60  ;;  %1104 = vmatpush.bf16.msra.mxu1 %v2662_v61 }
  0x4c   :  { %1490 = vmatpush.bf16.msra.mxu3 %v2694_v62  ;;  %1683 = vmatpush.bf16.msra.mxu0 %v2710_v63 }
  0x4e   :  { %1298 = vmatpush.bf16.msra.mxu2 %v2677_v4  ;;  %1105 = vmatpush.bf16.msra.mxu1 %v2661_v6  ;;  %v2697_v4 = vld [vmem:[%s3519_s8] sm:$0xff] }
  0x50   :  { %1491 = vmatpush.bf16.msra.mxu3 %v2693_v5  ;;  %1684 = vmatpush.bf16.msra.mxu0 %v2709_v7 }
  0x51   :  { %359 = vmatmul.bf16.gmra.mxu1 %v2570_v0  ;;  %536 = vmatmul.bf16.gmra.mxu2 %v2602_v1  ;;  %v2649_v0 = vld [vmem:[%s3516_s5] sm:$0xff] }
  0x52   :  { %1299 = vmatpush.bf16.msra.mxu2 %v2676_v12  ;;  %1106 = vmatpush.bf16.msra.mxu1 %v2660_v14  ;;  %v2665_v1 = vld [vmem:[%s3517_s6] sm:$0xff] }
  0x53   :  { %729 = vmatmul.bf16.gmra.mxu3 %v2618_v2  ;;  %922 = vmatmul.bf16.gmra.mxu0 %v2634_v3  ;;  %v2681_v3 = vld [vmem:[%s3518_s7] sm:$0xff] }
  0x54   :  { %1492 = vmatpush.bf16.msra.mxu3 %v2692_v13  ;;  %1685 = vmatpush.bf16.msra.mxu0 %v2708_v15 }
  0x56   :  { %1300 = vmatpush.bf16.msra.mxu2 %v2675_v20  ;;  %1107 = vmatpush.bf16.msra.mxu1 %v2659_v22  ;;  %v2698_v22 = vld [vmem:[%s3519_s8 + $0x8] sm:$0xff] }
  0x58   :  { %1493 = vmatpush.bf16.msra.mxu3 %v2691_v21  ;;  %1686 = vmatpush.bf16.msra.mxu0 %v2707_v23  ;;  %v2682_v21 = vld [vmem:[%s3518_s7 + $0x8] sm:$0xff] }
  0x5a   :  { %1301 = vmatpush.bf16.msra.mxu2 %v2674_v28  ;;  %1108 = vmatpush.bf16.msra.mxu1 %v2658_v30 }
  0x5c   :  { %1494 = vmatpush.bf16.msra.mxu3 %v2690_v29  ;;  %1687 = vmatpush.bf16.msra.mxu0 %v2706_v31 }
  0x5e   :  { %1302 = vmatpush.bf16.msra.mxu2 %v2673_v36  ;;  %1109 = vmatpush.bf16.msra.mxu1 %v2657_v38  ;;  %v2651_v38 = vld [vmem:[%s3516_s5 + $0x10] sm:$0xff] }
  0x60   :  { %1495 = vmatpush.bf16.msra.mxu3 %v2689_v37  ;;  %1688 = vmatpush.bf16.msra.mxu0 %v2705_v39  ;;  %v2667_v39 = vld [vmem:[%s3517_s6 + $0x10] sm:$0xff] }
  0x61   :  { %364 = vmatmul.bf16.gmra.mxu1 %v2571_v8  ;;  %541 = vmatmul.bf16.gmra.mxu2 %v2603_v9 }
  0x63   :  { %734 = vmatmul.bf16.gmra.mxu3 %v2619_v10  ;;  %927 = vmatmul.bf16.gmra.mxu0 %v2635_v11 }
  0x71   :  { %369 = vmatmul.bf16.gmra.mxu1 %v2572_v16  ;;  %546 = vmatmul.bf16.gmra.mxu2 %v2604_v17 }
  0x73   :  { %739 = vmatmul.bf16.gmra.mxu3 %v2620_v18  ;;  %932 = vmatmul.bf16.gmra.mxu0 %v2636_v19  ;;  %v2650_v18 = vld [vmem:[%s3516_s5 + $0x8] sm:$0xff] }
  0x74   :  { %v2666_v19 = vld [vmem:[%s3517_s6 + $0x8] sm:$0xff] }
  0x81   :  { %374 = vmatmul.bf16.gmra.mxu1 %v2573_v24  ;;  %551 = vmatmul.bf16.gmra.mxu2 %v2605_v25 }
  0x83   :  { %744 = vmatmul.bf16.gmra.mxu3 %v2621_v26  ;;  %937 = vmatmul.bf16.gmra.mxu0 %v2637_v27 }
  0x91   :  { %379 = vmatmul.bf16.gmra.mxu1 %v2574_v32  ;;  %556 = vmatmul.bf16.gmra.mxu2 %v2606_v33 }
  0x93   :  { %749 = vmatmul.bf16.gmra.mxu3 %v2622_v34  ;;  %942 = vmatmul.bf16.gmra.mxu0 %v2638_v35 }
  0x9e   :  { %v3169_v42 = vpop.f32.mrf.mxu1 }
  0xa0   :  { %v210_v45 = vpop.f32.mrf.mxu0 }
  0xa1   :  { %384 = vmatmul.bf16.gmra.mxu1 %v2575_v40  ;;  %561 = vmatmul.bf16.gmra.mxu2 %v2607_v41  ;;  %v2683_v41 = vld [vmem:[%s3518_s7 + $0x10] sm:$0xff] }
  0xa3   :  { %754 = vmatmul.bf16.gmra.mxu3 %v2623_v43  ;;  %947 = vmatmul.bf16.gmra.mxu0 %v2639_v44  ;;  %v2699_v43 = vld [vmem:[%s3519_s8 + $0x10] sm:$0xff] }
  0xa4   :  { %v3177_v46 = vpop.f32.mrf.mxu2 }
  0xa6   :  { %v3179_v47 = vpop.f32.mrf.mxu3  ;;  %v3181_v48 = vpop.f32.mrf.mxu1 }
  0xa8   :  { %v212_v49 = vpop.f32.mrf.mxu0 }
  0xac   :  { %v3183_v50 = vpop.f32.mrf.mxu2 }
  0xae   :  { %v3185_v51 = vpop.f32.mrf.mxu3  ;;  %v3193_v54 = vpop.f32.mrf.mxu1 }
  0xb0   :  { %v215_v57 = vpop.f32.mrf.mxu0 }
  0xb1   :  { %389 = vmatmul.bf16.gmra.mxu1 %v2576_v52  ;;  %566 = vmatmul.bf16.gmra.mxu2 %v2608_v53 }
  0xb3   :  { %759 = vmatmul.bf16.gmra.mxu3 %v2624_v55  ;;  %952 = vmatmul.bf16.gmra.mxu0 %v2640_v56 }
  0xb4   :  { %v3201_v58 = vpop.f32.mrf.mxu2 }
  0xb6   :  { %v3203_v59 = vpop.f32.mrf.mxu3  ;;  %v3205_v60 = vpop.f32.mrf.mxu1 }
  0xb8   :  { %v217_v61 = vpop.f32.mrf.mxu0 }
  0xbc   :  { %v3207_v62 = vpop.f32.mrf.mxu2 }
  0xbe   :  { %v3209_v63 = vpop.f32.mrf.mxu3  ;;  %v355_v2 = vpop.f32.mrf.mxu1 }
  0xbf   :  { %v356_v5 = vadd.f32 %v355_v2, %v210_v45 }
  0xc0   :  { %v918_v6 = vpop.f32.mrf.mxu0 }
  0xc1   :  { %1110 = vmatmul.bf16.vlgmr.msra.gmra.mxu1 %v2649_v0  ;;  %1303 = vmatmul.bf16.vlgmr.msra.gmra.mxu2 %v2665_v1 }
  0xc3   :  { %1496 = vmatmul.bf16.vlgmr.msra.gmra.mxu3 %v2681_v3  ;;  %1689 = vmatmul.bf16.vlgmr.msra.gmra.mxu0 %v2697_v4 }
  0xc4   :  { %v532_v7 = vpop.f32.mrf.mxu2 }
  0xc5   :  { %v572_v8 = vadd.f32 %v532_v7, %v356_v5  ;;  %v2652_v5 = vld [vmem:[%s3516_s5 + $0x18] sm:$0xff] }
  0xc6   :  { %v725_v9 = vpop.f32.mrf.mxu3  ;;  %v357_v10 = vpop.f32.mrf.mxu1 }
  0xc7   :  { %v765_v11 = vadd.f32 %v725_v9, %v572_v8  ;;  %v358_v12 = vadd.f32 %v357_v10, %v212_v49  ;;  %v2684_v8 = vld [vmem:[%s3518_s7 + $0x18] sm:$0xff] }
  0xc8   :  { %v920_v13 = vpop.f32.mrf.mxu0 }
  0xc9   :  { %v3223_v14 = vadd.f32 %v918_v6, %v765_v11  ;;  %v2668_v6 = vld [vmem:[%s3517_s6 + $0x18] sm:$0xff] }
  0xcc   :  { %v534_v15 = vpop.f32.mrf.mxu2 }
  0xcd   :  { %v573_v16 = vadd.f32 %v534_v15, %v358_v12 }
  0xce   :  { %v727_v17 = vpop.f32.mrf.mxu3  ;;  %v360_v20 = vpop.f32.mrf.mxu1 }
  0xcf   :  { %v766_v23 = vadd.f32 %v727_v17, %v573_v16  ;;  %v361_v24 = vadd.f32 %v360_v20, %v215_v57 }
  0xd0   :  { %v923_v25 = vpop.f32.mrf.mxu0 }
  0xd1   :  { %1115 = vmatmul.bf16.gmra.mxu1 %v2650_v18  ;;  %1308 = vmatmul.bf16.gmra.mxu2 %v2666_v19  ;;  %v3237_v26 = vadd.f32 %v920_v13, %v766_v23 }
  0xd3   :  { %1501 = vmatmul.bf16.gmra.mxu3 %v2682_v21  ;;  %1694 = vmatmul.bf16.gmra.mxu0 %v2698_v22 }
  0xd4   :  { %v537_v27 = vpop.f32.mrf.mxu2 }
  0xd5   :  { %v574_v28 = vadd.f32 %v537_v27, %v361_v24  ;;  %v2653_v24 = vld [vmem:[%s3516_s5 + $0x20] sm:$0xff] }
  0xd6   :  { %v730_v29 = vpop.f32.mrf.mxu3  ;;  %v362_v30 = vpop.f32.mrf.mxu1 }
  0xd7   :  { %v767_v31 = vadd.f32 %v730_v29, %v574_v28  ;;  %v363_v32 = vadd.f32 %v362_v30, %v217_v61  ;;  %v2685_v28 = vld [vmem:[%s3518_s7 + $0x20] sm:$0xff] }
  0xd8   :  { %v925_v33 = vpop.f32.mrf.mxu0 }
  0xd9   :  { %v3239_v34 = vadd.f32 %v923_v25, %v767_v31  ;;  %v2669_v25 = vld [vmem:[%s3517_s6 + $0x20] sm:$0xff] }
  0xdc   :  { %v539_v35 = vpop.f32.mrf.mxu2 }
  0xdd   :  { %v575_v36 = vadd.f32 %v539_v35, %v363_v32 }
  0xde   :  { %v732_v37 = vpop.f32.mrf.mxu3  ;;  %v365_v40 = vpop.f32.mrf.mxu1 }
  0xdf   :  { %v768_v44 = vadd.f32 %v732_v37, %v575_v36  ;;  %v366_v45 = vadd.f32 %v365_v40, %v3169_v42 }
  0xe0   :  { %v928_v49 = vpop.f32.mrf.mxu0 }
  0xe1   :  { %1120 = vmatmul.bf16.gmra.mxu1 %v2651_v38  ;;  %1313 = vmatmul.bf16.gmra.mxu2 %v2667_v39  ;;  %v3254_v52 = vadd.f32 %v925_v33, %v768_v44 }
  0xe3   :  { %1506 = vmatmul.bf16.gmra.mxu3 %v2683_v41  ;;  %1699 = vmatmul.bf16.gmra.mxu0 %v2699_v43 }
  0xe4   :  { %v542_v53 = vpop.f32.mrf.mxu2 }
  0xe5   :  { %v576_v55 = vadd.f32 %v542_v53, %v366_v45 }
  0xe6   :  { %v735_v56 = vpop.f32.mrf.mxu3  ;;  %v367_v57 = vpop.f32.mrf.mxu1 }
  0xe7   :  { %v769_v61 = vadd.f32 %v735_v56, %v576_v55  ;;  %v368_v0 = vadd.f32 %v367_v57, %v3181_v48  ;;  %v2700_v48 = vld [vmem:[%s3519_s8 + $0x18] sm:$0xff]  ;;  %v2686_v55 = vld [vmem:[%s3518_s7 + $0x28] sm:$0xff] }
  0xe8   :  { %v930_v1 = vpop.f32.mrf.mxu0 }
  0xe9   :  { %v3257_v2 = vadd.f32 %v928_v49, %v769_v61  ;;  %v2654_v49 = vld [vmem:[%s3516_s5 + $0x28] sm:$0xff] }
  0xec   :  { %v544_v3 = vpop.f32.mrf.mxu2 }
  0xed   :  { %v577_v4 = vadd.f32 %v544_v3, %v368_v0 }
  0xee   :  { %v737_v42 = vpop.f32.mrf.mxu3  ;;  %v370_v7 = vpop.f32.mrf.mxu1 }
  0xef   :  { %v770_v9 = vadd.f32 %v737_v42, %v577_v4  ;;  %v371_v10 = vadd.f32 %v370_v7, %v3193_v54 }
  0xf0   :  { %v933_v11 = vpop.f32.mrf.mxu0 }
  0xf1   :  { %1125 = vmatmul.bf16.gmra.mxu1 %v2652_v5  ;;  %1318 = vmatmul.bf16.gmra.mxu2 %v2668_v6  ;;  %v3272_v12 = vadd.f32 %v930_v1, %v770_v9 }
  0xf3   :  { %1511 = vmatmul.bf16.gmra.mxu3 %v2684_v8  ;;  %1704 = vmatmul.bf16.gmra.mxu0 %v2700_v48 }
  0xf4   :  { %v547_v13 = vpop.f32.mrf.mxu2 }
  0xf5   :  { %v578_v15 = vadd.f32 %v547_v13, %v371_v10 }
  0xf6   :  { %v740_v16 = vpop.f32.mrf.mxu3  ;;  %v372_v17 = vpop.f32.mrf.mxu1 }
  0xf7   :  { %v771_v18 = vadd.f32 %v740_v16, %v578_v15  ;;  %v373_v19 = vadd.f32 %v372_v17, %v3205_v60  ;;  %v2701_v60 = vld [vmem:[%s3519_s8 + $0x20] sm:$0xff]  ;;  %v2687_v15 = vld [vmem:[%s3518_s7 + $0x30] sm:$0xff] }
  0xf8   :  { %v935_v20 = vpop.f32.mrf.mxu0 }
  0xf9   :  { %v3275_v21 = vadd.f32 %v933_v11, %v771_v18  ;;  %v2655_v11 = vld [vmem:[%s3516_s5 + $0x30] sm:$0xff] }
  0xfc   :  { %v549_v22 = vpop.f32.mrf.mxu2 }
  0xfd   :  { %v579_v23 = vadd.f32 %v549_v22, %v373_v19 }
  0xfe   :  { %v742_v54 = vpop.f32.mrf.mxu3  ;;  %v375_v27 = vpop.f32.mrf.mxu1 }
  0xff   :  { %v772_v29 = vadd.f32 %v742_v54, %v579_v23  ;;  %v376_v32 = vadd.f32 %v375_v27, %v3177_v46  ;;  %v2670_v46 = vld [vmem:[%s3517_s6 + $0x28] sm:$0xff] }
 0x100   :  { %v938_v30 = vpop.f32.mrf.mxu0 }
 0x101   :  { %1130 = vmatmul.bf16.gmra.mxu1 %v2653_v24  ;;  %1323 = vmatmul.bf16.gmra.mxu2 %v2669_v25  ;;  %v3289_v31 = vadd.f32 %v935_v20, %v772_v29 }
 0x103   :  { %1516 = vmatmul.bf16.gmra.mxu3 %v2685_v28  ;;  %1709 = vmatmul.bf16.gmra.mxu0 %v2701_v60 }
 0x104   :  { %v552_v33 = vpop.f32.mrf.mxu2 }
 0x105   :  { %v580_v35 = vadd.f32 %v552_v33, %v376_v32  ;;  %v2656_v32 = vld [vmem:[%s3516_s5 + $0x38] sm:$0xff] }
 0x106   :  { %v745_v36 = vpop.f32.mrf.mxu3  ;;  %v377_v37 = vpop.f32.mrf.mxu1 }
 0x107   :  { %v773_v38 = vadd.f32 %v745_v36, %v580_v35  ;;  %v378_v41 = vadd.f32 %v377_v37, %v3183_v50  ;;  %v2702_v50 = vld [vmem:[%s3519_s8 + $0x28] sm:$0xff]  ;;  %v2688_v35 = vld [vmem:[%s3518_s7 + $0x38] sm:$0xff] }
 0x108   :  { %v940_v39 = vpop.f32.mrf.mxu0 }
 0x109   :  { %v3292_v40 = vadd.f32 %v938_v30, %v773_v38 }
 0x10c   :  { %v554_v43 = vpop.f32.mrf.mxu2 }
 0x10d   :  { %v581_v44 = vadd.f32 %v554_v43, %v378_v41 }
 0x10e   :  { %v747_v45 = vpop.f32.mrf.mxu3  ;;  %v380_v53 = vpop.f32.mrf.mxu1 }
 0x10f   :  { %v774_v56 = vadd.f32 %v747_v45, %v581_v44  ;;  %v381_v0 = vadd.f32 %v380_v53, %v3201_v58  ;;  %v2671_v58 = vld [vmem:[%s3517_s6 + $0x30] sm:$0xff] }
 0x110   :  { %v943_v57 = vpop.f32.mrf.mxu0 }
 0x111   :  { %1135 = vmatmul.bf16.gmra.mxu1 %v2654_v49  ;;  %1328 = vmatmul.bf16.gmra.mxu2 %v2670_v46  ;;  %v3307_v61 = vadd.f32 %v940_v39, %v774_v56 }
 0x113   :  { %1521 = vmatmul.bf16.gmra.mxu3 %v2686_v55  ;;  %1714 = vmatmul.bf16.gmra.mxu0 %v2702_v50 }
 0x114   :  { %v557_v1 = vpop.f32.mrf.mxu2 }
 0x115   :  { %v582_v3 = vadd.f32 %v557_v1, %v381_v0 }
 0x116   :  { %v750_v4 = vpop.f32.mrf.mxu3  ;;  %v382_v42 = vpop.f32.mrf.mxu1 }
 0x117   :  { %v775_v5 = vadd.f32 %v750_v4, %v582_v3  ;;  %v383_v8 = vadd.f32 %v382_v42, %v3207_v62  ;;  %v2703_v62 = vld [vmem:[%s3519_s8 + $0x30] sm:$0xff] }
 0x118   :  { %v945_v6 = vpop.f32.mrf.mxu0 }
 0x119   :  { %v3310_v7 = vadd.f32 %v943_v57, %v775_v5 }
 0x11c   :  { %v559_v48 = vpop.f32.mrf.mxu2 }
 0x11d   :  { %v583_v9 = vadd.f32 %v559_v48, %v383_v8 }
 0x11e   :  { %v752_v10 = vpop.f32.mrf.mxu3  ;;  %v385_v13 = vpop.f32.mrf.mxu1 }
 0x11f   :  { %v776_v16 = vadd.f32 %v752_v10, %v583_v9  ;;  %v386_v19 = vadd.f32 %v385_v13, %v3179_v47  ;;  %v2672_v47 = vld [vmem:[%s3517_s6 + $0x38] sm:$0xff] }
 0x120   :  { %v948_v17 = vpop.f32.mrf.mxu0 }
 0x121   :  { %1140 = vmatmul.bf16.gmra.mxu1 %v2655_v11  ;;  %1333 = vmatmul.bf16.gmra.mxu2 %v2671_v58  ;;  %v3325_v18 = vadd.f32 %v945_v6, %v776_v16 }
 0x123   :  { %1526 = vmatmul.bf16.gmra.mxu3 %v2687_v15  ;;  %1719 = vmatmul.bf16.gmra.mxu0 %v2703_v62 }
 0x124   :  { %v562_v20 = vpop.f32.mrf.mxu2 }
 0x125   :  { %v584_v22 = vadd.f32 %v562_v20, %v386_v19 }
 0x126   :  { %v755_v23 = vpop.f32.mrf.mxu3  ;;  %v387_v54 = vpop.f32.mrf.mxu1 }
 0x127   :  { %v777_v24 = vadd.f32 %v755_v23, %v584_v22  ;;  %v388_v28 = vadd.f32 %v387_v54, %v3185_v51  ;;  %v2704_v51 = vld [vmem:[%s3519_s8 + $0x38] sm:$0xff] }
 0x128   :  { %v950_v25 = vpop.f32.mrf.mxu0 }
 0x129   :  { %v3328_v27 = vadd.f32 %v948_v17, %v777_v24 }
 0x12c   :  { %v564_v60 = vpop.f32.mrf.mxu2 }
 0x12d   :  { %v585_v29 = vadd.f32 %v564_v60, %v388_v28 }
 0x12e   :  { %v757_v30 = vpop.f32.mrf.mxu3  ;;  %v390_v33 = vpop.f32.mrf.mxu1 }
 0x12f   :  { %v778_v36 = vadd.f32 %v757_v30, %v585_v29  ;;  %v391_v39 = vadd.f32 %v390_v33, %v3203_v59 }
 0x130   :  { %v953_v37 = vpop.f32.mrf.mxu0 }
 0x131   :  { %1145 = vmatmul.bf16.gmra.mxu1 %v2656_v32  ;;  %1338 = vmatmul.bf16.gmra.mxu2 %v2672_v47  ;;  %v3343_v38 = vadd.f32 %v950_v25, %v778_v36 }
 0x133   :  { %1531 = vmatmul.bf16.gmra.mxu3 %v2688_v35  ;;  %1724 = vmatmul.bf16.gmra.mxu0 %v2704_v51 }
 0x134   :  { %v567_v41 = vpop.f32.mrf.mxu2 }
 0x135   :  { %v586_v43 = vadd.f32 %v567_v41, %v391_v39 }
 0x136   :  { %v760_v44 = vpop.f32.mrf.mxu3  ;;  %v392_v45 = vpop.f32.mrf.mxu1 }
 0x137   :  { %v779_v49 = vadd.f32 %v760_v44, %v586_v43  ;;  %v393_v55 = vadd.f32 %v392_v45, %v3209_v63 }
 0x138   :  { %v955_v46 = vpop.f32.mrf.mxu0 }
 0x139   :  { %v3346_v53 = vadd.f32 %v953_v37, %v779_v49 }
 0x13c   :  { %v569_v50 = vpop.f32.mrf.mxu2 }
 0x13d   :  { %v587_v56 = vadd.f32 %v569_v50, %v393_v55 }
 0x13e   :  { %v762_v57 = vpop.f32.mrf.mxu3  ;;  %v1111_v0 = vpop.f32.mrf.mxu1 }
 0x13f   :  { %v780_v1 = vadd.f32 %v762_v57, %v587_v56  ;;  %v1151_v3 = vadd.f32 %v1111_v0, %v3223_v14 }
 0x140   :  { %v1690_v4 = vpop.f32.mrf.mxu0 }
 0x141   :  { %v3350_v42 = vadd.f32 %v955_v46, %v780_v1 }
 0x144   :  { %v1304_v59 = vpop.f32.mrf.mxu2 }
 0x145   :  { %v1344_v5 = vadd.f32 %v1304_v59, %v1151_v3 }
 0x146   :  { %v1497_v6 = vpop.f32.mrf.mxu3  ;;  %v1113_v8 = vpop.f32.mrf.mxu1 }
 0x147   :  { %v1537_v48 = vadd.f32 %v1497_v6, %v1344_v5  ;;  %v1152_v9 = vadd.f32 %v1113_v8, %v3237_v26 }
 0x148   :  { %v1692_v10 = vpop.f32.mrf.mxu0 }
 0x149   :  { %v3353_v11 = vadd.f32 %v1690_v4, %v1537_v48 }
 0x14c   :  { %v1306_v63 = vpop.f32.mrf.mxu2 }
 0x14d   :  { %v1345_v58 = vadd.f32 %v1306_v63, %v1152_v9 }
 0x14e   :  { %v1499_v13 = vpop.f32.mrf.mxu3  ;;  %v1116_v15 = vpop.f32.mrf.mxu1 }
 0x14f   :  { %v1538_v62 = vadd.f32 %v1499_v13, %v1345_v58  ;;  %v1153_v14 = vadd.f32 %v1116_v15, %v3239_v34 }
 0x150   :  { %v1695_v16 = vpop.f32.mrf.mxu0 }
 0x151   :  { %v3356_v17 = vadd.f32 %v1692_v10, %v1538_v62 }
 0x154   :  { %v1309_v19 = vpop.f32.mrf.mxu2 }
 0x155   :  { %v1346_v20 = vadd.f32 %v1309_v19, %v1153_v14 }
 0x156   :  { %v1502_v22 = vpop.f32.mrf.mxu3  ;;  %v1118_v23 = vpop.f32.mrf.mxu1 }
 0x157   :  { %v1539_v54 = vadd.f32 %v1502_v22, %v1346_v20  ;;  %v1154_v26 = vadd.f32 %v1118_v23, %v3254_v52 }
 0x158   :  { %v1697_v24 = vpop.f32.mrf.mxu0 }
 0x159   :  { %v3359_v25 = vadd.f32 %v1695_v16, %v1539_v54 }
 0x15c   :  { %v1311_v28 = vpop.f32.mrf.mxu2 }
 0x15d   :  { %v1347_v60 = vadd.f32 %v1311_v28, %v1154_v26  ;;  %v1762_v28 = vadd.f32 %v3356_v17, %v3353_v11 }
 0x15e   :  { %v1504_v29 = vpop.f32.mrf.mxu3  ;;  %v1121_v30 = vpop.f32.mrf.mxu1 }
 0x15f   :  { %v1540_v32 = vadd.f32 %v1504_v29, %v1347_v60  ;;  %v1155_v34 = vadd.f32 %v1121_v30, %v3257_v2 }
 0x160   :  { %v1700_v47 = vpop.f32.mrf.mxu0 }
 0x161   :  { %v3362_v33 = vadd.f32 %v1697_v24, %v1540_v32 }
 0x164   :  { %v1314_v35 = vpop.f32.mrf.mxu2 }
 0x165   :  { %v1348_v51 = vadd.f32 %v1314_v35, %v1155_v34  ;;  %v1763_v34 = vadd.f32 %v1762_v28, %v3359_v25 }
 0x166   :  { %v1507_v36 = vpop.f32.mrf.mxu3  ;;  %v1123_v37 = vpop.f32.mrf.mxu1 }
 0x167   :  { %v1541_v39 = vadd.f32 %v1507_v36, %v1348_v51  ;;  %v1156_v16 = vadd.f32 %v1123_v37, %v3272_v12  ;;  %v1764_v35 = vadd.f32 %v1763_v34, %v3362_v33 }
 0x168   :  { %v1702_v41 = vpop.f32.mrf.mxu0 }
 0x169   :  { %v3364_v52 = vadd.f32 %v1700_v47, %v1541_v39 }
 0x16b   :  { %v1765_v39 = vadd.f32 %v1764_v35, %v3364_v52 }
 0x16c   :  { %v1316_v43 = vpop.f32.mrf.mxu2 }
 0x16d   :  { %v1349_v19 = vadd.f32 %v1316_v43, %v1156_v16 }
 0x16e   :  { %v1509_v44 = vpop.f32.mrf.mxu3  ;;  %v1126_v45 = vpop.f32.mrf.mxu1 }
 0x16f   :  { %v1157_v20 = vadd.f32 %v1126_v45, %v3275_v21  ;;  %v1542_v60 = vadd.f32 %v1509_v44, %v1349_v19 }
 0x170   :  { %v1705_v49 = vpop.f32.mrf.mxu0 }
 0x171   :  { %v3375_v51 = vadd.f32 %v1702_v41, %v1542_v60 }
 0x174   :  { %v1319_v46 = vpop.f32.mrf.mxu2 }
 0x175   :  { %v1350_v23 = vadd.f32 %v1319_v46, %v1157_v20 }
 0x176   :  { %v1512_v55 = vpop.f32.mrf.mxu3  ;;  %v1128_v50 = vpop.f32.mrf.mxu1 }
 0x177   :  { %v1158_v54 = vadd.f32 %v1128_v50, %v3289_v31  ;;  %v1543_v12 = vadd.f32 %v1512_v55, %v1350_v23 }
 0x178   :  { %v1707_v56 = vpop.f32.mrf.mxu0 }
 0x179   :  { %v3379_v43 = vadd.f32 %v1705_v49, %v1543_v12 }
 0x17c   :  { %v1321_v2 = vpop.f32.mrf.mxu2 }
 0x17d   :  { %v1351_v29 = vadd.f32 %v1321_v2, %v1158_v54 }
 0x17e   :  { %v1514_v57 = vpop.f32.mrf.mxu3  ;;  %v1131_v0 = vpop.f32.mrf.mxu1 }
 0x17f   :  { %v1159_v32 = vadd.f32 %v1131_v0, %v3292_v40  ;;  %v1544_v31 = vadd.f32 %v1514_v57, %v1351_v29 }
 0x180   :  { %v1710_v1 = vpop.f32.mrf.mxu0 }
 0x181   :  { %v3383_v2 = vadd.f32 %v1707_v56, %v1544_v31 }
 0x184   :  { %v1324_v3 = vpop.f32.mrf.mxu2 }
 0x185   :  { %v1352_v47 = vadd.f32 %v1324_v3, %v1159_v32 }
 0x186   :  { %v1517_v4 = vpop.f32.mrf.mxu3  ;;  %v1133_v59 = vpop.f32.mrf.mxu1 }
 0x187   :  { %v1160_v21 = vadd.f32 %v1133_v59, %v3307_v61  ;;  %v1545_v45 = vadd.f32 %v1517_v4, %v1352_v47  ;;  %v1766_v61 = vadd.f32 %v1765_v39, %v3375_v51 }
 0x188   :  { %v1712_v5 = vpop.f32.mrf.mxu0 }
 0x189   :  { %v1767_v3 = vadd.f32 %v1766_v61, %v3379_v43  ;;  %v3387_v49 = vadd.f32 %v1710_v1, %v1545_v45 }
 0x18c   :  { %v1326_v6 = vpop.f32.mrf.mxu2 }
 0x18d   :  { %v1353_v36 = vadd.f32 %v1326_v6, %v1160_v21 }
 0x18e   :  { %v1519_v8 = vpop.f32.mrf.mxu3  ;;  %v1136_v48 = vpop.f32.mrf.mxu1 }
 0x18f   :  { %v1161_v37 = vadd.f32 %v1136_v48, %v3310_v7  ;;  %v1546_v57 = vadd.f32 %v1519_v8, %v1353_v36 }
 0x190   :  { %v1715_v9 = vpop.f32.mrf.mxu0 }
 0x191   :  { %v3391_v48 = vadd.f32 %v1712_v5, %v1546_v57 }
 0x194   :  { %v1329_v10 = vpop.f32.mrf.mxu2 }
 0x195   :  { %v1354_v46 = vadd.f32 %v1329_v10, %v1161_v37 }
 0x196   :  { %v1522_v63 = vpop.f32.mrf.mxu3  ;;  %v1138_v58 = vpop.f32.mrf.mxu1 }
 0x197   :  { %v1162_v55 = vadd.f32 %v1138_v58, %v3325_v18  ;;  %v1547_v59 = vadd.f32 %v1522_v63, %v1354_v46  ;;  %v1768_v18 = vadd.f32 %v1767_v3, %v3383_v2 }
 0x198   :  { %v1717_v13 = vpop.f32.mrf.mxu0 }
 0x19c   :  { %v1331_v15 = vpop.f32.mrf.mxu2 }
 0x19d   :  { %v1355_v0 = vadd.f32 %v1331_v15, %v1162_v55  ;;  %v1769_v15 = vadd.f32 %v1768_v18, %v3387_v49 }
 0x19e   :  { %v1524_v62 = vpop.f32.mrf.mxu3  ;;  %v1141_v14 = vpop.f32.mrf.mxu1 }
 0x19f   :  { %v1163_v7 = vadd.f32 %v1141_v14, %v3328_v27  ;;  %v1548_v10 = vadd.f32 %v1524_v62, %v1355_v0  ;;  %v3395_v27 = vadd.f32 %v1715_v9, %v1547_v59  ;;  %v1770_v19 = vadd.f32 %v1769_v15, %v3391_v48 }
 0x1a0   :  { %v1720_v22 = vpop.f32.mrf.mxu0 }
 0x1a1   :  { %v1771_v62 = vadd.f32 %v1770_v19, %v3395_v27 }
 0x1a4   :  { %v1334_v26 = vpop.f32.mrf.mxu2 }
 0x1a5   :  { %v1356_v6 = vadd.f32 %v1334_v26, %v1163_v7 }
 0x1a6   :  { %v1527_v24 = vpop.f32.mrf.mxu3  ;;  %v1143_v30 = vpop.f32.mrf.mxu1 }
 0x1a7   :  { %v1164_v4 = vadd.f32 %v1143_v30, %v3343_v38  ;;  %v1549_v14 = vadd.f32 %v1527_v24, %v1356_v6  ;;  %v3398_v38 = vadd.f32 %v1717_v13, %v1548_v10 }
 0x1a8   :  { %v1722_v44 = vpop.f32.mrf.mxu0 }
 0x1a9   :  { %v3401_v23 = vadd.f32 %v1720_v22, %v1549_v14  ;;  %v1772_v54 = vadd.f32 %v1771_v62, %v3398_v38 }
 0x1ab   :  { %v1773_v28 = vadd.f32 %v1772_v54, %v3401_v23 }
 0x1ac   :  { %v1336_v40 = vpop.f32.mrf.mxu2 }
 0x1ad   :  { %v1357_v56 = vadd.f32 %v1336_v40, %v1164_v4 }
 0x1ae   :  { %v1529_v50 = vpop.f32.mrf.mxu3  ;;  %v1146_v41 = vpop.f32.mrf.mxu1 }
 0x1af   :  { %v1165_v58 = vadd.f32 %v1146_v41, %v3346_v53  ;;  %v1550_v20 = vadd.f32 %v1529_v50, %v1357_v56 }
 0x1b0   :  { %v1725_v63 = vpop.f32.mrf.mxu0 }
 0x1b1   :  { %v3404_v26 = vadd.f32 %v1722_v44, %v1550_v20 }
 0x1b3   :  { %v1774_v30 = vadd.f32 %v1773_v28, %v3404_v26 }
 0x1b4   :  { %v1339_v8 = vpop.f32.mrf.mxu2 }
 0x1b5   :  { %v1358_v1 = vadd.f32 %v1339_v8, %v1165_v58 }
 0x1b6   :  { %v1532_v16 = vpop.f32.mrf.mxu3  ;;  %v1148_v5 = vpop.f32.mrf.mxu1 }
 0x1b7   :  { %v1551_v53 = vadd.f32 %v1532_v16, %v1358_v1  ;;  %v1166_v9 = vadd.f32 %v1148_v5, %v3350_v42 }
 0x1b8   :  { %v1727_v34 = vpop.f32.mrf.mxu0 }
 0x1b9   :  { %v3408_v60 = vadd.f32 %v1725_v63, %v1551_v53 }
 0x1bb   :  { %v1775_v22 = vadd.f32 %v1774_v30, %v3408_v60 }
 0x1bc   :  { %v1341_v24 = vpop.f32.mrf.mxu2 }
 0x1bd   :  { %v1359_v13 = vadd.f32 %v1341_v24, %v1166_v9 }
 0x1be   :  { %v1534_v29 = vpop.f32.mrf.mxu3 }
 0x1bf   :  { %v1552_v32 = vadd.f32 %v1534_v29, %v1359_v13 }
 0x1c1   :  { %v3412_v12 = vadd.f32 %v1727_v34, %v1552_v32 }
 0x1c3   :  { %v1776_v47 = vadd.f32 %v1775_v22, %v3412_v12 }
 0x1c5   :  { %v1777_v21 = vrot.slane %v1776_v47, 4 }
 0x1c7   :  { %v1778_v35 = vadd.f32 %v1777_v21, %v1776_v47 }
 0x1c9   :  { %v1779_v42 = vrot.slane %v1778_v35, 2 }
 0x1cb   :  { %v1780_v31 = vadd.f32 %v1779_v42, %v1778_v35 }
 0x1cd   :  { %v1781_v36 = vrot.slane %v1780_v31, 1 }
 0x1cf   :  { %v1782_v37 = vadd.f32 %v1781_v36, %v1780_v31 }
 0x1d1   :  { %v3415_v39 = vmul.f32 0.0078125, %v1782_v37 }
 0x1d3   :  { %v1801_v44 = vsub.f32 %v3353_v11, %v3415_v39  ;;  %v1802_v40 = vsub.f32 %v3356_v17, %v3415_v39  ;;  %v1803_v45 = vsub.f32 %v3359_v25, %v3415_v39  ;;  %v1804_v50 = vsub.f32 %v3362_v33, %v3415_v39 }
 0x1d4   :  { %v1805_v61 = vsub.f32 %v3364_v52, %v3415_v39  ;;  %v1806_v0 = vsub.f32 %v3375_v51, %v3415_v39  ;;  %v1807_v59 = vsub.f32 %v3379_v43, %v3415_v39  ;;  %v1808_v18 = vsub.f32 %v3383_v2, %v3415_v39 }
 0x1d5   :  { %v1817_v46 = vmul.f32 %v1801_v44, %v1801_v44  ;;  %v1818_v55 = vmul.f32 %v1802_v40, %v1802_v40  ;;  %v1819_v41 = vmul.f32 %v1803_v45, %v1803_v45  ;;  %v1820_v7 = vmul.f32 %v1804_v50, %v1804_v50 }
 0x1d6   :  { %v1821_v6 = vmul.f32 %v1805_v61, %v1805_v61  ;;  %v1822_v10 = vmul.f32 %v1806_v0, %v1806_v0  ;;  %v1809_v58 = vsub.f32 %v3387_v49, %v3415_v39  ;;  %v1823_v8 = vmul.f32 %v1807_v59, %v1807_v59 }
 0x1d7   :  { %v1833_v57 = vadd.f32 %v1818_v55, %v1817_v46  ;;  %v1810_v14 = vsub.f32 %v3391_v48, %v3415_v39  ;;  %v1824_v1 = vmul.f32 %v1808_v18, %v1808_v18  ;;  %v1811_v63 = vsub.f32 %v3395_v27, %v3415_v39  ;;  %v1868_v18 = vld [vmem:[%s3520_s10] sm:$0x1] }
 0x1d8   :  { %v1825_v19 = vmul.f32 %v1809_v58, %v1809_v58  ;;  %v1812_v5 = vsub.f32 %v3398_v38, %v3415_v39  ;;  %v1813_v54 = vsub.f32 %v3401_v23, %v3415_v39  ;;  %v1814_v28 = vsub.f32 %v3404_v26, %v3415_v39  ;;  %v1870_v58 = vld [vmem:[%s3521_s11] sm:$0x1] }
 0x1d9   :  { %v1834_v3 = vadd.f32 %v1833_v57, %v1819_v41  ;;  %v1826_v62 = vmul.f32 %v1810_v14, %v1810_v14  ;;  %v1827_v9 = vmul.f32 %v1811_v63, %v1811_v63  ;;  %v1815_v30 = vsub.f32 %v3408_v60, %v3415_v39 }
 0x1da   :  { %v1828_v13 = vmul.f32 %v1812_v5, %v1812_v5  ;;  %v1829_v32 = vmul.f32 %v1813_v54, %v1813_v54  ;;  %v1816_v22 = vsub.f32 %v3412_v12, %v3415_v39  ;;  %v1830_v47 = vmul.f32 %v1814_v28, %v1814_v28 }
 0x1db   :  { %v1835_v4 = vadd.f32 %v1834_v3, %v1820_v7  ;;  %v1831_v35 = vmul.f32 %v1815_v30, %v1815_v30 }
 0x1dc   :  { %v1832_v31 = vmul.f32 %v1816_v22, %v1816_v22 }
 0x1dd   :  { %v1836_v56 = vadd.f32 %v1835_v4, %v1821_v6 }
 0x1df   :  { %v1837_v15 = vadd.f32 %v1836_v56, %v1822_v10 }
 0x1e1   :  { %v1838_v16 = vadd.f32 %v1837_v15, %v1823_v8 }
 0x1e3   :  { %v1839_v20 = vadd.f32 %v1838_v16, %v1824_v1 }
 0x1e5   :  { %v1840_v53 = vadd.f32 %v1839_v20, %v1825_v19 }
 0x1e7   :  { %v1841_v24 = vadd.f32 %v1840_v53, %v1826_v62 }
 0x1e9   :  { %v1842_v29 = vadd.f32 %v1841_v24, %v1827_v9 }
 0x1eb   :  { %v1843_v34 = vadd.f32 %v1842_v29, %v1828_v13 }
 0x1ed   :  { %v1844_v21 = vadd.f32 %v1843_v34, %v1829_v32 }
 0x1ef   :  { %v1845_v42 = vadd.f32 %v1844_v21, %v1830_v47 }
 0x1f1   :  { %v1846_v36 = vadd.f32 %v1845_v42, %v1831_v35 }
 0x1f3   :  { %v1847_v37 = vadd.f32 %v1846_v36, %v1832_v31 }
 0x1f5   :  { %v1848_v44 = vrot.slane %v1847_v37, 4 }
 0x1f7   :  { %v1849_v40 = vadd.f32 %v1848_v44, %v1847_v37 }
 0x1f9   :  { %v1850_v45 = vrot.slane %v1849_v40, 2 }
 0x1fb   :  { %v1851_v46 = vadd.f32 %v1850_v45, %v1849_v40 }
 0x1fd   :  { %v1852_v55 = vrot.slane %v1851_v46, 1 }
 0x1ff   :  { %v1853_v50 = vadd.f32 %v1852_v55, %v1851_v46 }
 0x201   :  { %v1855_v61 = vmul.f32 0.0078125, %v1853_v50 }
 0x203   :  { %v1856_v41 = vmax.f32 %v1855_v61, 0.0 }
 0x205   :  { %v1857_v57 = vadd.f32 1e-05, %v1856_v41 }
 0x207   :  { %2784 = vrsqrt.f32 %v1857_v57  ;;  %vm1864_vm1 = vweird.f32 %v1857_v57 }
 0x20d   :  { %v2785_v0 = vpop.eup %2784 }
 0x20e   :  { %v1859_v7 = vmul.f32 %v2785_v0, %v1857_v57  ;;  %vm1865_vm0 = vweird.f32 %v2785_v0 }
 0x20f   :  { %vm1866_vm2 = vmor %vm1864_vm1, %vm1865_vm0 }
 0x210   :  { %v1860_v3 = vmul.f32 %v2785_v0, %v1859_v7 }
 0x212   :  { %v1861_v59 = vmul.f32 0.5, %v1860_v3 }
 0x214   :  { %v1862_v6 = vsub.f32 1.5, %v1861_v59 }
 0x216   :  { %v1863_v4 = vmul.f32 %v2785_v0, %v1862_v6 }
 0x218   :  { %v1867_v10 = vsel %vm1866_vm2, %v2785_v0, %v1863_v4 }
 0x219   :  { %v1869_v56 = vmul.f32 %v1868_v18, %v1867_v10 }
 0x21b   :  { %v1871_v8 = vmul.f32 %v1869_v56, %v3415_v39  ;;  %v1873_v15 = vperm.slane %v1869_v56, 0 }
 0x21d   :  { %v1872_v14 = vsub.f32 %v1870_v58, %v1871_v8  ;;  %v1874_v1 = vmul.f32 %v1873_v15, %v3353_v11  ;;  %v1875_v16 = vmul.f32 %v1873_v15, %v3356_v17  ;;  %v1876_v63 = vmul.f32 %v1873_v15, %v3359_v25 }
 0x21e   :  { %v1877_v19 = vmul.f32 %v1873_v15, %v3362_v33  ;;  %v1878_v20 = vmul.f32 %v1873_v15, %v3364_v52  ;;  %v1879_v5 = vmul.f32 %v1873_v15, %v3375_v51  ;;  %v1880_v62 = vmul.f32 %v1873_v15, %v3379_v43 }
 0x21f   :  { %v1891_v53 = vperm.slane %v1872_v14, 0  ;;  %v1881_v54 = vmul.f32 %v1873_v15, %v3383_v2  ;;  %v1882_v39 = vmul.f32 %v1873_v15, %v3387_v49  ;;  %v1883_v9 = vmul.f32 %v1873_v15, %v3391_v48 }
 0x220   :  { %v1884_v11 = vmul.f32 %v1873_v15, %v3395_v27  ;;  %v1885_v17 = vmul.f32 %v1873_v15, %v3398_v38  ;;  %v1886_v25 = vmul.f32 %v1873_v15, %v3401_v23  ;;  %v1887_v33 = vmul.f32 %v1873_v15, %v3404_v26 }
 0x221   :  { %v1888_v52 = vmul.f32 %v1873_v15, %v3408_v60  ;;  %v1893_v51 = vadd.f32 %v1891_v53, %v1874_v1  ;;  %v1894_v24 = vadd.f32 %v1891_v53, %v1875_v16  ;;  %v1895_v43 = vadd.f32 %v1891_v53, %v1876_v63 }
 0x222   :  { %v1896_v28 = vadd.f32 %v1891_v53, %v1877_v19  ;;  %v1897_v13 = vadd.f32 %v1891_v53, %v1878_v20  ;;  %v1898_v2 = vadd.f32 %v1891_v53, %v1879_v5  ;;  %v1899_v29 = vadd.f32 %v1891_v53, %v1880_v62 }
 0x223   :  { %v1900_v49 = vadd.f32 %v1891_v53, %v1881_v54  ;;  %v1901_v30 = vadd.f32 %v1891_v53, %v1882_v39  ;;  %v1902_v48 = vadd.f32 %v1891_v53, %v1883_v9  ;;  %v1903_v32 = vadd.f32 %v1891_v53, %v1884_v11 }
 0x224   :  { %v1904_v27 = vadd.f32 %v1891_v53, %v1885_v17  ;;  %v1889_v38 = vmul.f32 %v1873_v15, %v3412_v12  ;;  %v1905_v34 = vadd.f32 %v1891_v53, %v1886_v25  ;;  %v1906_v23 = vadd.f32 %v1891_v53, %v1887_v33 }
 0x225   :  { %v1907_v22 = vadd.f32 %v1891_v53, %v1888_v52  ;;  %vm1909_vm3 = vcmp.gt.f32.partialorder %v1893_v51, 0.0  ;;  %vm1910_vm4 = vcmp.gt.f32.partialorder %v1894_v24, 0.0  ;;  %vm1911_vm5 = vcmp.gt.f32.partialorder %v1895_v43, 0.0 }
 0x226   :  { %vm1912_vm6 = vcmp.gt.f32.partialorder %v1896_v28, 0.0  ;;  %vm1913_vm7 = vcmp.gt.f32.partialorder %v1897_v13, 0.0  ;;  %vm1914_vm8 = vcmp.gt.f32.partialorder %v1898_v2, 0.0  ;;  %vm1915_vm9 = vcmp.gt.f32.partialorder %v1899_v29, 0.0 }
 0x227   :  { %vm1916_vm10 = vcmp.gt.f32.partialorder %v1900_v49, 0.0  ;;  %vm1917_vm11 = vcmp.gt.f32.partialorder %v1901_v30, 0.0  ;;  %vm1918_vm12 = vcmp.gt.f32.partialorder %v1902_v48, 0.0  ;;  %vm1919_vm13 = vcmp.gt.f32.partialorder %v1903_v32, 0.0 }
 0x228   :  { %vm1920_vm14 = vcmp.gt.f32.partialorder %v1904_v27, 0.0  ;;  %vm1921_vm15 = vcmp.gt.f32.partialorder %v1905_v34, 0.0  ;;  %vm1922_vm0 = vcmp.gt.f32.partialorder %v1906_v23, 0.0  ;;  %v1925_v26 = vmul.f32 0.01, %v1893_v51 }
 0x229   :  { %v1926_v60 = vmul.f32 0.01, %v1894_v24  ;;  %v1908_v12 = vadd.f32 %v1891_v53, %v1889_v38  ;;  %v1927_v47 = vmul.f32 0.01, %v1895_v43  ;;  %v1928_v21 = vmul.f32 0.01, %v1896_v28 }
 0x22a   :  { %v1929_v35 = vmul.f32 0.01, %v1897_v13  ;;  %v1930_v42 = vmul.f32 0.01, %v1898_v2  ;;  %v1931_v31 = vmul.f32 0.01, %v1899_v29  ;;  %v1941_v45 = vsel %vm1909_vm3, %v1893_v51, %v1925_v26 }
 0x22b   :  { %v1932_v36 = vmul.f32 0.01, %v1900_v49  ;;  %v1933_v37 = vmul.f32 0.01, %v1901_v30  ;;  %v1934_v44 = vmul.f32 0.01, %v1902_v48  ;;  %v1942_v61 = vsel %vm1910_vm4, %v1894_v24, %v1926_v60 }
 0x22c   :  { %v1935_v40 = vmul.f32 0.01, %v1903_v32  ;;  %v1936_v46 = vmul.f32 0.01, %v1904_v27  ;;  %v1937_v55 = vmul.f32 0.01, %v1905_v34  ;;  %v1943_v0 = vsel %vm1911_vm5, %v1895_v43, %v1927_v47 }
 0x22d   :  { %v1938_v50 = vmul.f32 0.01, %v1906_v23  ;;  %v1939_v41 = vmul.f32 0.01, %v1907_v22  ;;  %v1940_v57 = vmul.f32 0.01, %v1908_v12  ;;  %v1944_v7 = vsel %vm1912_vm6, %v1896_v28, %v1928_v21 }
 0x22e   :  { %v1945_v3 = vsel %vm1913_vm7, %v1897_v13, %v1929_v35  ;;  %v1946_v59 = vsel %vm1914_vm8, %v1898_v2, %v1930_v42  ;;  %v1947_v6 = vsel %vm1915_vm9, %v1899_v29, %v1931_v31  ;;  %v1948_v4 = vsel %vm1916_vm10, %v1900_v49, %v1932_v36 }
 0x22f   :  { %vm1923_vm1 = vcmp.gt.f32.partialorder %v1907_v22, 0.0  ;;  %vm1924_vm2 = vcmp.gt.f32.partialorder %v1908_v12, 0.0  ;;  %v1949_v18 = vsel %vm1917_vm11, %v1901_v30, %v1933_v37  ;;  %v1950_v10 = vsel %vm1918_vm12, %v1902_v48, %v1934_v44 }
 0x230   :  { %v1951_v56 = vsel %vm1919_vm13, %v1903_v32, %v1935_v40  ;;  %v1952_v58 = vsel %vm1920_vm14, %v1904_v27, %v1936_v46  ;;  %v2716_v8 = vpack.c.bf16 %v1942_v61, %v1941_v45  ;;  %v2721_v15 = vpack.c.bf16 %v1944_v7, %v1943_v0 }
 0x231   :  { %v1953_v14 = vsel %vm1921_vm15, %v1905_v34, %v1937_v55  ;;  %v1954_v1 = vsel %vm1922_vm0, %v1906_v23, %v1938_v50  ;;  %v2726_v16 = vpack.c.bf16 %v1946_v59, %v1945_v3  ;;  %v2731_v63 = vpack.c.bf16 %v1948_v4, %v1947_v6 }
 0x232   :  { %v1955_v19 = vsel %vm1923_vm1, %v1907_v22, %v1939_v41  ;;  %v1956_v20 = vsel %vm1924_vm2, %v1908_v12, %v1940_v57  ;;  %2717 = vst [vmem:[%s3522_s12] sm:$0xff] %v2716_v8   ;;  %v2736_v5 = vpack.c.bf16 %v1950_v10, %v1949_v18  ;;  %v2741_v62 = vpack.c.bf16 %v1952_v58, %v1951_v56 }
 0x233   :  { %2753 = vst [vmem:[%s3522_s12 + $0x8] sm:$0xff] %v2721_v15   ;;  %v2746_v53 = vpack.c.bf16 %v1954_v1, %v1953_v14  ;;  %v2751_v54 = vpack.c.bf16 %v1956_v20, %v1955_v19 }
 0x234   :  { %2754 = vst [vmem:[%s3522_s12 + $0x10] sm:$0xff] %v2726_v16  }
 0x235   :  { %2755 = vst [vmem:[%s3522_s12 + $0x18] sm:$0xff] %v2731_v63  }
 0x236   :  { %2756 = vst [vmem:[%s3522_s12 + $0x20] sm:$0xff] %v2736_v5  }
 0x237   :  { %2757 = vst [vmem:[%s3522_s12 + $0x28] sm:$0xff] %v2741_v62  }
 0x238   :  { %2758 = vst [vmem:[%s3522_s12 + $0x30] sm:$0xff] %v2746_v53  }
 0x239   :  { %2759 = vst [vmem:[%s3522_s12 + $0x38] sm:$0xff] %v2751_v54  }

</bundles_post_ra>
